<compile_context>
chip_gen: v6e
topology: v6e:2x2x1
jax: 0.10.0
libtpu: 0.0.40
codegen_flags: <defaults>
</compile_context>

<pallas_src>
import jax
import jax.numpy as jnp
from jax.experimental import pallas as pl
from jax.experimental.pallas import tpu as pltpu


def dqn_kernel(x_ref, w1_ref, b1_ref, w2_ref, b2_ref, w3_ref, b3_ref, o_ref):
    # Layer 1: Linear(input_size -> 1024) + ReLU.  bf16 MXU inputs, f32 acc.
    x = x_ref[...].astype(jnp.bfloat16)
    h1 = jnp.dot(x, w1_ref[...], preferred_element_type=jnp.float32)
    h1 = jnp.maximum(h1 + b1_ref[...], 0.0)           # f32 epilogue (VPU)
    # Dropout(0.2) -> identity in eval mode.

    # Layer 2: Linear(1024 -> 1024) + ReLU.
    h2 = jnp.dot(h1.astype(jnp.bfloat16), w2_ref[...],
                 preferred_element_type=jnp.float32)
    h2 = jnp.maximum(h2 + b2_ref[...], 0.0)
    # Dropout(0.2) -> identity in eval mode.

    # Layer 3: Linear(1024 -> padded output).  Lane-dense store (Np % 128 == 0).
    o_ref[...] = (
        jnp.dot(h2.astype(jnp.bfloat16), w3_ref[...],
                preferred_element_type=jnp.float32) + b3_ref[...]
    ).astype(o_ref.dtype)


def _round_up(n, m):
    return ((n + m - 1) // m) * m


def _pick_tile(B):
    """Default batch-tile selection.  Returns (tm, padded_batch).

    - B <= 256: one tile, rounded up to the 8-sublane minimum.
    - B  > 256: pad the batch to a multiple of 256 (small padding waste),
      then pick the largest tm in {1024, 768, 512} that evenly divides the
      padded batch while leaving >=2 grid points (v7x megacore); otherwise
      fall back to tm=256 (grid >= 2 automatically).
    """
    if B <= 256:
        tm = _round_up(max(B, 1), 8)
        return tm, tm
    b_pad = _round_up(B, 256)
    n = b_pad // 256
    for chunks in (4, 3, 2):           # tm = 1024 / 768 / 512
        if n % chunks == 0 and n // chunks >= 2:
            return 256 * chunks, b_pad
    return 256, b_pad                  # grid = n >= 2


def dqn_forward(x, params, *, tm=None):
    """x: (B, input_size) float32.  params: dict of f32 weights/biases."""
    B, in_size = x.shape
    H = params["w1"].shape[1]
    out_size = params["w3"].shape[1]

    # bf16 weights (halve HBM traffic; MXU-native).  Biases stay f32 for the
    # f32 epilogue.
    w1 = params["w1"].astype(jnp.bfloat16)
    w2 = params["w2"].astype(jnp.bfloat16)
    b1 = params["b1"].astype(jnp.float32)
    b2 = params["b2"].astype(jnp.float32)

    # Pad the final layer to a lane-dense width (multiple of 128 lanes).
    n_pad = _round_up(out_size, 128)
    w3 = jnp.zeros((H, n_pad), jnp.bfloat16).at[:, :out_size].set(
        params["w3"].astype(jnp.bfloat16))
    b3 = jnp.zeros((1, n_pad), jnp.float32).at[:, :out_size].set(
        params["b3"].astype(jnp.float32))

    if tm is None:
        tm, b_pad = _pick_tile(B)
    else:
        # Honor caller tm, but floor it at 128 whenever it would create a
        # multi-step grid (tiny tiles pay full per-step overhead).
        tm = _round_up(max(int(tm), 1), 8)
        if _round_up(B, tm) // tm > 1 and tm < 128:
            tm = 128
        b_pad = _round_up(B, tm)

    if b_pad != B:
        x = jnp.pad(x, ((0, b_pad - B), (0, 0)))
    grid = (b_pad // tm,)

    const = lambda i: (0, 0)   # weights: same block every tile -> stay resident
    out = pl.pallas_call(
        dqn_kernel,
        out_shape=jax.ShapeDtypeStruct((b_pad, n_pad), jnp.float32),
        grid=grid,
        in_specs=[
            pl.BlockSpec((tm, in_size), lambda i: (i, 0)),   # x: batch-tiled
            pl.BlockSpec((in_size, H), const),
            pl.BlockSpec((1, H), const),
            pl.BlockSpec((H, H), const),
            pl.BlockSpec((1, H), const),
            pl.BlockSpec((H, n_pad), const),
            pl.BlockSpec((1, n_pad), const),
        ],
        out_specs=pl.BlockSpec((tm, n_pad), lambda i: (i, 0)),
        compiler_params=pltpu.CompilerParams(
            dimension_semantics=("parallel",),
            vmem_limit_bytes=48 << 20,
        ),
    )(x, w1, b1, w2, b2, w3, b3)

    return out[:B, :out_size]


def init_params(key, input_size, hidden, output_size):
    ks = jax.random.split(key, 6)

    def lin(kw, kb, fan_in, fan_out):
        # PyTorch-like uniform(-1/sqrt(fan_in), 1/sqrt(fan_in)).
        bound = 1.0 / jnp.sqrt(jnp.float32(fan_in))
        w = jax.random.uniform(kw, (fan_in, fan_out), jnp.float32, -bound, bound)
        b = jax.random.uniform(kb, (1, fan_out), jnp.float32, -bound, bound)
        return w, b

    w1, b1 = lin(ks[0], ks[1], input_size, hidden)
    w2, b2 = lin(ks[2], ks[3], hidden, hidden)
    w3, b3 = lin(ks[4], ks[5], hidden, output_size)
    return {"w1": w1, "b1": b1, "w2": w2, "b2": b2, "w3": w3, "b3": b3}


def _ref_forward(x, params):
    """Pure-JAX mixed-precision reference (bf16 weights, f32 accumulation)."""
    w1 = params["w1"].astype(jnp.bfloat16)
    w2 = params["w2"].astype(jnp.bfloat16)
    w3 = params["w3"].astype(jnp.bfloat16)
    h = jnp.dot(x.astype(jnp.bfloat16), w1,
                preferred_element_type=jnp.float32) + params["b1"]
    h = jnp.maximum(h, 0.0)
    h = jnp.dot(h.astype(jnp.bfloat16), w2,
                preferred_element_type=jnp.float32) + params["b2"]
    h = jnp.maximum(h, 0.0)
    return jnp.dot(h.astype(jnp.bfloat16), w3,
                   preferred_element_type=jnp.float32) + params["b3"]


if __name__ == "__main__":
    key = jax.random.PRNGKey(0)
    k_x, k_p = jax.random.split(key)

    input_size = 64
    hidden = 1024        # fixed by the DQN architecture
    output_size = 8

    params = init_params(k_p, input_size, hidden, output_size)

    # Case 1: tiny batch (single grid point, padded to 8 sublanes) —
    # DQN acting path; weight-DMA bound.
    x = jax.random.normal(k_x, (2, input_size), jnp.float32)
    out = jax.block_until_ready(dqn_forward(x, params))
    ref = _ref_forward(x, params)
    assert out.shape == (2, output_size)
    assert jnp.allclose(out, ref, atol=2e-2, rtol=2e-2)

    # Case 2: awkward mid-size batch (B=300 -> pads to 512, tm=256, grid=2;
    # exercises the 256-granularity padding and the multi-tile parallel axis).
    x2 = jax.random.normal(k_x, (300, input_size), jnp.float32)
    out2 = jax.block_until_ready(dqn_forward(x2, params))
    ref2 = _ref_forward(x2, params)
    assert out2.shape == (300, output_size)
    assert jnp.allclose(out2, ref2, atol=2e-2, rtol=2e-2)

    # Case 3: large batch (B=2048 -> tm=1024, grid=2; exercises the big-tile
    # path that amortizes per-step overhead and feeds both TCs on v7x).
    x3 = jax.random.normal(k_x, (2048, input_size), jnp.float32)
    out3 = jax.block_until_ready(dqn_forward(x3, params))
    ref3 = _ref_forward(x3, params)
    assert out3.shape == (2048, output_size)
    assert jnp.allclose(out3, ref3, atol=2e-2, rtol=2e-2)

    print("KERNEL_OK")
</pallas_src>

<mosaic_0001>
module attributes {stable_mosaic.version = 11 : i64} {
  func.func @dqn_kernel(%arg0: i32, %arg1: memref<8x64xf32, #tpu.memory_space<vmem>>, %arg2: memref<64x1024xbf16, #tpu.memory_space<vmem>>, %arg3: memref<1x1024xf32, #tpu.memory_space<vmem>>, %arg4: memref<1024x1024xbf16, #tpu.memory_space<vmem>>, %arg5: memref<1x1024xf32, #tpu.memory_space<vmem>>, %arg6: memref<1024x128xbf16, #tpu.memory_space<vmem>>, %arg7: memref<1x128xf32, #tpu.memory_space<vmem>>, %arg8: memref<8x128xf32, #tpu.memory_space<vmem>>) attributes {dimension_semantics = [#tpu.dimension_semantics<parallel>], iteration_bounds = array<i64: 1>, scalar_prefetch = 0 : i64, scratch_operands = 0 : i64, tpu.core_type = #tpu.core_type<tc>, window_params = [{transform_indices = @transform_0, window_bounds = array<i64: 8, 64>}, {pipeline_mode = #tpu.pipeline_mode<synchronous>, transform_indices = @transform_1, window_bounds = array<i64: 64, 1024>}, {pipeline_mode = #tpu.pipeline_mode<synchronous>, transform_indices = @transform_2, window_bounds = array<i64: 1, 1024>}, {pipeline_mode = #tpu.pipeline_mode<synchronous>, transform_indices = @transform_3, window_bounds = array<i64: 1024, 1024>}, {pipeline_mode = #tpu.pipeline_mode<synchronous>, transform_indices = @transform_4, window_bounds = array<i64: 1, 1024>}, {pipeline_mode = #tpu.pipeline_mode<synchronous>, transform_indices = @transform_5, window_bounds = array<i64: 1024, 128>}, {pipeline_mode = #tpu.pipeline_mode<synchronous>, transform_indices = @transform_6, window_bounds = array<i64: 1, 128>}, {transform_indices = @transform_7, window_bounds = array<i64: 8, 128>}]} {
    %c0 = arith.constant 0 : index
    %c0_0 = arith.constant 0 : index
    %0 = vector.load %arg1[%c0, %c0_0] : memref<8x64xf32, #tpu.memory_space<vmem>>, vector<8x64xf32>
    %1 = arith.truncf %0 : vector<8x64xf32> to vector<8x64xbf16>
    %c0_1 = arith.constant 0 : index
    %c0_2 = arith.constant 0 : index
    %2 = vector.load %arg2[%c0_1, %c0_2] : memref<64x1024xbf16, #tpu.memory_space<vmem>>, vector<64x1024xbf16>
    %cst = arith.constant dense<0.000000e+00> : vector<8x1024xf32>
    %3 = tpu.matmul %1, %2, %cst {dimension_numbers = #tpu.dot_dimension_numbers<[1], [0], [0], [1], [0, 0, 1, 1], [], []>} : vector<8x64xbf16>, vector<64x1024xbf16>, vector<8x1024xf32> -> vector<8x1024xf32>
    %c0_3 = arith.constant 0 : index
    %c0_4 = arith.constant 0 : index
    %4 = vector.load %arg3[%c0_3, %c0_4] : memref<1x1024xf32, #tpu.memory_space<vmem>>, vector<1x1024xf32>
    %5 = vector.broadcast %4 : vector<1x1024xf32> to vector<8x1024xf32>
    %6 = arith.addf %3, %5 : vector<8x1024xf32>
    %cst_5 = arith.constant 0.000000e+00 : f32
    %7 = vector.broadcast %cst_5 : f32 to vector<8x1024xf32>
    %8 = arith.maximumf %6, %7 : vector<8x1024xf32>
    %9 = arith.truncf %8 : vector<8x1024xf32> to vector<8x1024xbf16>
    %c0_6 = arith.constant 0 : index
    %c0_7 = arith.constant 0 : index
    %10 = vector.load %arg4[%c0_6, %c0_7] : memref<1024x1024xbf16, #tpu.memory_space<vmem>>, vector<1024x1024xbf16>
    %cst_8 = arith.constant dense<0.000000e+00> : vector<8x1024xf32>
    %11 = tpu.matmul %9, %10, %cst_8 {dimension_numbers = #tpu.dot_dimension_numbers<[1], [0], [0], [1], [0, 0, 1, 1], [], []>} : vector<8x1024xbf16>, vector<1024x1024xbf16>, vector<8x1024xf32> -> vector<8x1024xf32>
    %c0_9 = arith.constant 0 : index
    %c0_10 = arith.constant 0 : index
    %12 = vector.load %arg5[%c0_9, %c0_10] : memref<1x1024xf32, #tpu.memory_space<vmem>>, vector<1x1024xf32>
    %13 = vector.broadcast %12 : vector<1x1024xf32> to vector<8x1024xf32>
    %14 = arith.addf %11, %13 : vector<8x1024xf32>
    %cst_11 = arith.constant 0.000000e+00 : f32
    %15 = vector.broadcast %cst_11 : f32 to vector<8x1024xf32>
    %16 = arith.maximumf %14, %15 : vector<8x1024xf32>
    %17 = arith.truncf %16 : vector<8x1024xf32> to vector<8x1024xbf16>
    %c0_12 = arith.constant 0 : index
    %c0_13 = arith.constant 0 : index
    %18 = vector.load %arg6[%c0_12, %c0_13] : memref<1024x128xbf16, #tpu.memory_space<vmem>>, vector<1024x128xbf16>
    %cst_14 = arith.constant dense<0.000000e+00> : vector<8x128xf32>
    %19 = tpu.matmul %17, %18, %cst_14 {dimension_numbers = #tpu.dot_dimension_numbers<[1], [0], [0], [1], [0, 0, 1, 1], [], []>} : vector<8x1024xbf16>, vector<1024x128xbf16>, vector<8x128xf32> -> vector<8x128xf32>
    %c0_15 = arith.constant 0 : index
    %c0_16 = arith.constant 0 : index
    %20 = vector.load %arg7[%c0_15, %c0_16] : memref<1x128xf32, #tpu.memory_space<vmem>>, vector<1x128xf32>
    %21 = vector.broadcast %20 : vector<1x128xf32> to vector<8x128xf32>
    %22 = arith.addf %19, %21 : vector<8x128xf32>
    %c0_17 = arith.constant 0 : index
    %c0_18 = arith.constant 0 : index
    %23 = vector.load %arg8[%c0_17, %c0_18] : memref<8x128xf32, #tpu.memory_space<vmem>>, vector<8x128xf32>
    tpu.vector_store %arg8[%c0_17, %c0_18], %22 {strides = array<i32>} : memref<8x128xf32, #tpu.memory_space<vmem>>, vector<8x128xf32>,
    return
  }
  func.func @transform_0(%arg0: i32) -> (i32, i32) {
    %c0_i32 = arith.constant 0 : i32
    %c0_i32_0 = arith.constant 0 : i32
    return %arg0, %c0_i32 : i32, i32
  }
  func.func @transform_1(%arg0: i32) -> (i32, i32) {
    %c0_i32 = arith.constant 0 : i32
    %c0_i32_0 = arith.constant 0 : i32
    %c0_i32_1 = arith.constant 0 : i32
    return %c0_i32, %c0_i32_0 : i32, i32
  }
  func.func @transform_2(%arg0: i32) -> (i32, i32) {
    %c0_i32 = arith.constant 0 : i32
    %c0_i32_0 = arith.constant 0 : i32
    %c0_i32_1 = arith.constant 0 : i32
    return %c0_i32, %c0_i32_0 : i32, i32
  }
  func.func @transform_3(%arg0: i32) -> (i32, i32) {
    %c0_i32 = arith.constant 0 : i32
    %c0_i32_0 = arith.constant 0 : i32
    %c0_i32_1 = arith.constant 0 : i32
    return %c0_i32, %c0_i32_0 : i32, i32
  }
  func.func @transform_4(%arg0: i32) -> (i32, i32) {
    %c0_i32 = arith.constant 0 : i32
    %c0_i32_0 = arith.constant 0 : i32
    %c0_i32_1 = arith.constant 0 : i32
    return %c0_i32, %c0_i32_0 : i32, i32
  }
  func.func @transform_5(%arg0: i32) -> (i32, i32) {
    %c0_i32 = arith.constant 0 : i32
    %c0_i32_0 = arith.constant 0 : i32
    %c0_i32_1 = arith.constant 0 : i32
    return %c0_i32, %c0_i32_0 : i32, i32
  }
  func.func @transform_6(%arg0: i32) -> (i32, i32) {
    %c0_i32 = arith.constant 0 : i32
    %c0_i32_0 = arith.constant 0 : i32
    %c0_i32_1 = arith.constant 0 : i32
    return %c0_i32, %c0_i32_0 : i32, i32
  }
  func.func @transform_7(%arg0: i32) -> (i32, i32) {
    %c0_i32 = arith.constant 0 : i32
    %c0_i32_0 = arith.constant 0 : i32
    return %arg0, %c0_i32 : i32, i32
  }
}

</mosaic_0001>

<bundles_post_ra>
// kernel: tpu_custom_call.1
= control target key start
LH: loop header
LB: loop body
LE: loop exit
PB: predicated region body
PF: predicated region fallthrough
CT: control target
= control target key end

     0   :  { %12 = vsyncpa [#allocation3], 0  ;;  %s6222_s0 = inlined_call_operand.hbm [shape: f32[8,64], index: 0, kind: input, shape index: {}]   ;;  %s6223_s1 = inlined_call_operand.hbm [shape: bf16[64,1024], index: 1, kind: input, shape index: {}]   ;;  %s6224_s2 = inlined_call_operand.hbm [shape: f32[1,1024], index: 2, kind: input, shape index: {}]   ;;  %s6225_s3 = inlined_call_operand.hbm [shape: bf16[1024,1024], index: 3, kind: input, shape index: {}]   ;;  %s6226_s4 = inlined_call_operand.hbm [shape: f32[1,1024], index: 4, kind: input, shape index: {}]   ;;  %s6227_s5 = inlined_call_operand.hbm [shape: bf16[1024,128], index: 5, kind: input, shape index: {}]   ;;  %s6228_s6 = inlined_call_operand.hbm [shape: f32[1,128], index: 6, kind: input, shape index: {}]   ;;  %s6229_s7 = inlined_call_operand.hbm [shape: f32[8,128], index: 7, kind: output, shape index: {}]  }
   0x1   :  { %13 = vsyncpa [#allocation6], 0 }
   0x2   :  { %14 = vsyncpa [#allocation9], 0 }
   0x3   :  { %15 = vsyncpa [#allocation12], 0 }
   0x4   :  { %16 = vsyncpa [#allocation4], 0  ;;  %s5968_s24 = smov [#allocation5]  }
   0x5   :  { %s32_s25 = sshll.u32 %s5968_s24, 4  ;;  %s33_s25 = int_to_ptr.vmem [resolvable:$true] %s32_s25 }
   0x6   :  { %s5806_s26 = scalar_lea.vmem %s33_s25, 4096  ;;  %p5811_p1 = scmp.lt.s32.totalorder %s33_s25, %s33_s25 }
   0x7   :  { %p5807_p0 = scmp.ne.s32.totalorder %s33_s25, %s5806_s26  ;;  %p5812_p2 = scmp.lt.s32.totalorder %s5806_s26, %s5806_s26 }
   0x9   :  { %p5813_p3 = por %p5812_p2, %p5811_p1 }
   0xb   :  { %p5814_p4 = pnand %p5813_p3, %p5807_p0 }
   0xd   :  { %5817 = shalt.err (!%p5814_p4)
}
   0xe   :  { %s5969_s27 = smov 512   ;;  %s5970_s28 = smov 32  }
   0xf   :  { %38 = dma.hbm_to_vmem [thread:$0]  %s6223_s1, 4096, %s33_s25, [#allocation6], %s5969_s27, %s5969_s27, %s5970_s28  }
  0x10   :  { %s5971_s8 = smov [#allocation8]   ;;  %s5972_s10 = smov [#allocation11]  }
  0x11   :  { %s54_s9 = sshll.u32 %s5971_s8, 4  ;;  %s76_s11 = sshll.u32 %s5972_s10, 4  ;;  %s55_s9 = int_to_ptr.vmem [resolvable:$true] %s54_s9  ;;  %s77_s11 = int_to_ptr.vmem [resolvable:$true] %s76_s11 }
  0x12   :  { %s5826_s12 = scalar_lea.vmem %s55_s9, 65536  ;;  %p5831_p6 = scmp.lt.s32.totalorder %s55_s9, %s55_s9 }
  0x13   :  { %p5827_p5 = scmp.ne.s32.totalorder %s55_s9, %s5826_s12  ;;  %p5832_p7 = scmp.lt.s32.totalorder %s5826_s12, %s5826_s12 }
  0x15   :  { %p5833_p8 = por %p5832_p7, %p5831_p6 }
  0x17   :  { %p5834_p9 = pnand %p5833_p8, %p5827_p5 }
  0x19   :  { %5837 = shalt.err (!%p5834_p9)
}
  0x1a   :  { %60 = dma.hbm_to_vmem [thread:$0]  %s6225_s3, 65536, %s55_s9, [#allocation9], %s5969_s27, %s5969_s27, %s5970_s28  }
  0x1b   :  { %s5846_s15 = scalar_lea.vmem %s77_s11, 8192  ;;  %p5851_p11 = scmp.lt.s32.totalorder %s77_s11, %s77_s11 }
  0x1c   :  { %p5847_p10 = scmp.ne.s32.totalorder %s77_s11, %s5846_s15  ;;  %p5852_p12 = scmp.lt.s32.totalorder %s5846_s15, %s5846_s15 }
  0x1e   :  { %p5853_p13 = por %p5852_p12, %p5851_p11 }
  0x20   :  { %p5854_p0 = pnand %p5853_p13, %p5847_p10 }
  0x22   :  { %5857 = shalt.err (!%p5854_p0)
}
  0x23   :  { %s5973_s1 = smov 64   ;;  %s5974_s16 = smov 4  }
  0x24   :  { %82 = dma.hbm_to_vmem [thread:$0]  %s6227_s5, 8192, %s77_s11, [#allocation12], %s5973_s1, %s5973_s1, %s5974_s16  }
  0x25   :  { %s5975_s19 = smov [#allocation2]   ;;  %s5976_s21 = smov [#allocation7]  }
  0x26   :  { %s23_s20 = sshll.u32 %s5975_s19, 4  ;;  %s45_s22 = sshll.u32 %s5976_s21, 4  ;;  %s24_s20 = int_to_ptr.vmem [resolvable:$true] %s23_s20  ;;  %s46_s22 = int_to_ptr.vmem [resolvable:$true] %s45_s22 }
  0x27   :  { %s5866_s3 = scalar_lea.vmem %s24_s20, 128  ;;  %p5871_p2 = scmp.lt.s32.totalorder %s24_s20, %s24_s20 }
  0x28   :  { %p5867_p1 = scmp.ne.s32.totalorder %s24_s20, %s5866_s3  ;;  %p5872_p3 = scmp.lt.s32.totalorder %s5866_s3, %s5866_s3 }
  0x2a   :  { %p5873_p4 = por %p5872_p3, %p5871_p2 }
  0x2c   :  { %p5874_p5 = pnand %p5873_p4, %p5867_p1 }
  0x2e   :  { %5877 = shalt.err (!%p5874_p5)
}
  0x2f   :  { %26 = dma.hbm_to_vmem [thread:$0]  %s6222_s0, 128, %s24_s20, [#allocation3]  }
  0x30   :  { %s5886_s25 = scalar_lea.vmem %s46_s22, 128  ;;  %p5891_p7 = scmp.lt.s32.totalorder %s46_s22, %s46_s22 }
  0x31   :  { %p5887_p6 = scmp.ne.s32.totalorder %s46_s22, %s5886_s25  ;;  %p5892_p8 = scmp.lt.s32.totalorder %s5886_s25, %s5886_s25 }
  0x33   :  { %p5893_p9 = por %p5892_p8, %p5891_p7 }
  0x35   :  { %p5894_p10 = pnand %p5893_p9, %p5887_p6 }
  0x37   :  { %5897 = shalt.err (!%p5894_p10)
}
  0x38   :  { %48 = dma.hbm_to_vmem [thread:$0]  %s6224_s2, 128, %s46_s22, [#allocation6]  }
  0x39   :  { %s5977_s27 = smov [#allocation10]   ;;  %s5978_s29 = smov [#allocation13]  }
  0x3a   :  { %s67_s28 = sshll.u32 %s5977_s27, 4  ;;  %s89_s30 = sshll.u32 %s5978_s29, 4  ;;  %s68_s28 = int_to_ptr.vmem [resolvable:$true] %s67_s28  ;;  %s90_s30 = int_to_ptr.vmem [resolvable:$true] %s89_s30 }
  0x3b   :  { %s5906_s8 = scalar_lea.vmem %s68_s28, 128  ;;  %p5911_p12 = scmp.lt.s32.totalorder %s68_s28, %s68_s28 }
  0x3c   :  { %p5907_p11 = scmp.ne.s32.totalorder %s68_s28, %s5906_s8  ;;  %p5912_p13 = scmp.lt.s32.totalorder %s5906_s8, %s5906_s8 }
  0x3e   :  { %p5913_p0 = por %p5912_p13, %p5911_p12 }
  0x40   :  { %p5914_p1 = pnand %p5913_p0, %p5907_p11 }
  0x42   :  { %5917 = shalt.err (!%p5914_p1)
}
  0x43   :  { %70 = dma.hbm_to_vmem [thread:$0]  %s6226_s4, 128, %s68_s28, [#allocation9]  }
  0x44   :  { %s5926_s10 = scalar_lea.vmem %s90_s30, 16  ;;  %s5930_s2 = scalar_lea.vmem %s90_s30, 32 }
  0x45   :  { %p5927_p2 = scmp.ne.s32.totalorder %s90_s30, %s5926_s10  ;;  %p5931_p3 = scmp.lt.s32.totalorder %s90_s30, %s90_s30 }
  0x46   :  { %p5932_p4 = scmp.lt.s32.totalorder %s5930_s2, %s5926_s10 }
  0x48   :  { %p5933_p5 = por %p5932_p4, %p5931_p3 }
  0x4a   :  { %p5934_p6 = pnand %p5933_p5, %p5927_p2 }
  0x4c   :  { %5937 = shalt.err (!%p5934_p6)
}
  0x4d   :  { %92 = dma.hbm_to_vmem [thread:$0]  %s6228_s6, 16, %s90_s30, [#allocation12]  }
  0x4e   :  { %5958 = dma.done.wait [#allocation3], 128  }
  0x4f   :  { %5959 = vsyncadd [#allocation3], 4294967168 }
  0x50   :  { %5960 = dma.done.wait [#allocation6], 4224  }
  0x51   :  { %5961 = vsyncadd [#allocation6], 4294963072 }
  0x52   :  { %5962 = dma.done.wait [#allocation9], 65664  }
  0x53   :  { %5963 = vsyncadd [#allocation9], 4294901632 }
  0x54   :  { %5964 = dma.done.wait [#allocation12], 8208  }
  0x55   :  { %5965 = vsyncadd [#allocation12], 4294959088  ;;  %v5979_v0 = vmov 0   ;;  %v141_v1 = vld [vmem:[#allocation5 + $0xc0] sm:$0xff]  ;;  %v142_v3 = vld [vmem:[#allocation5 + $0xc8] sm:$0xff]  ;;  %vm351_vm0 = vcmask 523264  }
  0x56   :  { %387 = vmatprep.mubr.bf16.mxu0 %v5979_v0  ;;  %428 = vmatprep.mubr.bf16.mxu1 %v5979_v0  ;;  %v145_v2 = vld [vmem:[#allocation5 + $0xe0] sm:$0xff]  ;;  %v146_v5 = vld [vmem:[#allocation5 + $0xe8] sm:$0xff]  ;;  %v143_v31 = vld [vmem:[#allocation5 + $0xd0] sm:$0xff]  ;;  %s5980_s4 = smov [#allocation14]  }
  0x57   :  { %v5044_v4 = vcombine.high %v141_v1, %v145_v2  ;;  %v5043_v6 = vcombine.low %v141_v1, %v145_v2  ;;  %v133_v7 = vld [vmem:[#allocation5 + $0x80] sm:$0xff]  ;;  %v5046_v9 = vcombine.high %v142_v3, %v146_v5  ;;  %v5045_v10 = vcombine.low %v142_v3, %v146_v5  ;;  %v134_v12 = vld [vmem:[#allocation5 + $0x88] sm:$0xff]  ;;  %v147_v32 = vld [vmem:[#allocation5 + $0xf0] sm:$0xff]  ;;  %s5007_s6 = sshll.u32 %s5980_s4, 4  ;;  %s5008_s6 = int_to_ptr.vmem [resolvable:$true] %s5007_s6 }
  0x58   :  { %v137_v8 = vld [vmem:[#allocation5 + $0xa0] sm:$0xff]  ;;  %v138_v13 = vld [vmem:[#allocation5 + $0xa8] sm:$0xff]  ;;  %v144_v33 = vld [vmem:[#allocation5 + $0xd8] sm:$0xff]  ;;  %v5048_v38 = vcombine.high %v143_v31, %v147_v32  ;;  %v5047_v45 = vcombine.low %v143_v31, %v147_v32  ;;  %s5938_s13 = scalar_lea.vmem %s5008_s6, 128  ;;  %p5943_p8 = scmp.lt.s32.totalorder %s5008_s6, %s5008_s6 }
  0x59   :  { %v5036_v11 = vcombine.high %v133_v7, %v137_v8  ;;  %v125_v14 = vld [vmem:[#allocation5 + $0x40] sm:$0xff]  ;;  %363 = vmatprep.subr.bf16.mxu0 %v5044_v4  ;;  %v5038_v15 = vcombine.high %v134_v12, %v138_v13  ;;  %v126_v17 = vld [vmem:[#allocation5 + $0x48] sm:$0xff]  ;;  %404 = vmatprep.subr.bf16.mxu1 %v5046_v9  ;;  %v5035_v19 = vcombine.low %v133_v7, %v137_v8  ;;  %v148_v34 = vld [vmem:[#allocation5 + $0xf8] sm:$0xff]  ;;  %p5939_p7 = scmp.ne.s32.totalorder %s5008_s6, %s5938_s13  ;;  %p5944_p9 = scmp.lt.s32.totalorder %s5938_s13, %s5938_s13 }
  0x5a   :  { %v129_v16 = vld [vmem:[#allocation5 + $0x60] sm:$0xff]  ;;  %v130_v18 = vld [vmem:[#allocation5 + $0x68] sm:$0xff]  ;;  %364 = vmatpush1.bf16.msra.mxu0 %v5043_v6  ;;  %405 = vmatpush1.bf16.msra.mxu1 %v5045_v10  ;;  %v5037_v20 = vcombine.low %v134_v12, %v138_v13  ;;  %v115_v36 = vld [vmem:[#allocation2] sm:$0xff]  ;;  %v5050_v39 = vcombine.high %v144_v33, %v148_v34  ;;  %v5049_v46 = vcombine.low %v144_v33, %v148_v34 }
  0x5b   :  { %365 = vmatprep.subr.bf16.mxu0 %v5036_v11  ;;  %v5028_v21 = vcombine.high %v125_v14, %v129_v16  ;;  %406 = vmatprep.subr.bf16.mxu1 %v5038_v15  ;;  %v5030_v22 = vcombine.high %v126_v17, %v130_v18  ;;  %v117_v23 = vld [vmem:[#allocation5] sm:$0xff]  ;;  %v118_v25 = vld [vmem:[#allocation5 + $0x8] sm:$0xff]  ;;  %v5027_v27 = vcombine.low %v125_v14, %v129_v16  ;;  %v135_v40 = vld [vmem:[#allocation5 + $0x90] sm:$0xff]  ;;  %p5945_p10 = por %p5944_p9, %p5943_p8 }
  0x5c   :  { %v121_v24 = vld [vmem:[#allocation5 + $0x20] sm:$0xff]  ;;  %v122_v26 = vld [vmem:[#allocation5 + $0x28] sm:$0xff]  ;;  %v5029_v28 = vcombine.low %v126_v17, %v130_v18  ;;  %v139_v41 = vld [vmem:[#allocation5 + $0xb0] sm:$0xff]  ;;  %v6044_v42 = vpack.c.bf16 %v115_v36, %v115_v36 }
  0x5d   :  { %v5020_v29 = vcombine.high %v117_v23, %v121_v24  ;;  %v5022_v30 = vcombine.high %v118_v25, %v122_v26  ;;  %v5019_v35 = vcombine.low %v117_v23, %v121_v24  ;;  %v5021_v37 = vcombine.low %v118_v25, %v122_v26  ;;  %v136_v43 = vld [vmem:[#allocation5 + $0x98] sm:$0xff]  ;;  %v127_v49 = vld [vmem:[#allocation5 + $0x50] sm:$0xff]  ;;  %v591_v2 = vld [vmem:[#allocation8 + $0x1c0] sm:$0xff]  ;;  %p5946_p11 = pnand %p5945_p10, %p5939_p7 }
  0x5e   :  { %366 = vmatpush1.bf16.msra.mxu0 %v5035_v19  ;;  %407 = vmatpush1.bf16.msra.mxu1 %v5037_v20  ;;  %v140_v44 = vld [vmem:[#allocation5 + $0xb8] sm:$0xff]  ;;  %v5040_v47 = vcombine.high %v135_v40, %v139_v41  ;;  %v131_v50 = vld [vmem:[#allocation5 + $0x70] sm:$0xff]  ;;  %v5039_v53 = vcombine.low %v135_v40, %v139_v41  ;;  %v595_v3 = vld [vmem:[#allocation8 + $0x1e0] sm:$0xff] }
  0x5f   :  { %367 = vmatprep.subr.bf16.mxu0 %v5028_v21  ;;  %408 = vmatprep.subr.bf16.mxu1 %v5030_v22  ;;  %v5042_v48 = vcombine.high %v136_v43, %v140_v44  ;;  %v128_v51 = vld [vmem:[#allocation5 + $0x58] sm:$0xff]  ;;  %v5041_v54 = vcombine.low %v136_v43, %v140_v44  ;;  %v5032_v55 = vcombine.high %v127_v49, %v131_v50  ;;  %v119_v57 = vld [vmem:[#allocation5 + $0x10] sm:$0xff]  ;;  %v719_v4 = vld [vmem:[#allocation8 + $0x5c0] sm:$0xff] }
  0x60   :  { %v132_v52 = vld [vmem:[#allocation5 + $0x78] sm:$0xff]  ;;  %v123_v58 = vld [vmem:[#allocation5 + $0x30] sm:$0xff]  ;;  %v5031_v61 = vcombine.low %v127_v49, %v131_v50  ;;  %v723_v5 = vld [vmem:[#allocation8 + $0x5e0] sm:$0xff]  ;;  %v5112_v9 = vcombine.high %v591_v2, %v595_v3  ;;  %v5111_v13 = vcombine.low %v591_v2, %v595_v3 }
  0x61   :  { %v5034_v56 = vcombine.high %v128_v51, %v132_v52  ;;  %v120_v59 = vld [vmem:[#allocation5 + $0x18] sm:$0xff]  ;;  %v5033_v62 = vcombine.low %v128_v51, %v132_v52  ;;  %v5024_v63 = vcombine.high %v119_v57, %v123_v58  ;;  %v5023_v6 = vcombine.low %v119_v57, %v123_v58  ;;  %v583_v7 = vld [vmem:[#allocation8 + $0x180] sm:$0xff] }
  0x62   :  { %368 = vmatpush1.bf16.msra.mxu0 %v5027_v27  ;;  %409 = vmatpush1.bf16.msra.mxu1 %v5029_v28  ;;  %v124_v60 = vld [vmem:[#allocation5 + $0x38] sm:$0xff]  ;;  %v711_v10 = vld [vmem:[#allocation8 + $0x580] sm:$0xff]  ;;  %v5240_v12 = vcombine.high %v719_v4, %v723_v5  ;;  %v5239_v16 = vcombine.low %v719_v4, %v723_v5 }
  0x63   :  { %369 = vmatprep.subr.bf16.mxu0 %v5020_v29  ;;  %410 = vmatprep.subr.bf16.mxu1 %v5022_v30  ;;  %v5026_v1 = vcombine.high %v120_v59, %v124_v60  ;;  %v5025_v8 = vcombine.low %v120_v59, %v124_v60  ;;  %v715_v11 = vld [vmem:[#allocation8 + $0x5a0] sm:$0xff] }
  0x64   :  { %v575_v14 = vld [vmem:[#allocation8 + $0x140] sm:$0xff]  ;;  %v5232_v20 = vcombine.high %v711_v10, %v715_v11  ;;  %v5231_v24 = vcombine.low %v711_v10, %v715_v11 }
  0x65   :  { %v579_v15 = vld [vmem:[#allocation8 + $0x160] sm:$0xff] }
  0x66   :  { %370 = vmatpush1.bf16.msra.mxu0 %v5019_v35  ;;  %411 = vmatpush1.bf16.msra.mxu1 %v5021_v37  ;;  %v703_v18 = vld [vmem:[#allocation8 + $0x540] sm:$0xff]  ;;  %v5096_v25 = vcombine.high %v575_v14, %v579_v15  ;;  %v5095_v29 = vcombine.low %v575_v14, %v579_v15 }
  0x67   :  { %445 = vmatprep.subr.bf16.mxu0 %v5048_v38  ;;  %486 = vmatprep.subr.bf16.mxu1 %v5050_v39  ;;  %v707_v19 = vld [vmem:[#allocation8 + $0x560] sm:$0xff] }
  0x68   :  { %v567_v22 = vld [vmem:[#allocation8 + $0x100] sm:$0xff]  ;;  %v5224_v28 = vcombine.high %v703_v18, %v707_v19  ;;  %v5223_v32 = vcombine.low %v703_v18, %v707_v19 }
  0x69   :  { %5051 = vmatmul.mubr.msk.bf16.vlgmr.msra.gmra.mxu0 %vm351_vm0, %v6044_v42  ;;  %5052 = vmatmul.mubr.msk.bf16.vlgmr.msra.gmra.mxu1 %vm351_vm0, %v6044_v42  ;;  %v571_v23 = vld [vmem:[#allocation8 + $0x120] sm:$0xff] }
  0x6a   :  { %446 = vmatpush1.bf16.msra.mxu0 %v5047_v45  ;;  %487 = vmatpush1.bf16.msra.mxu1 %v5049_v46  ;;  %v695_v26 = vld [vmem:[#allocation8 + $0x500] sm:$0xff]  ;;  %v5088_v33 = vcombine.high %v567_v22, %v571_v23  ;;  %v5087_v37 = vcombine.low %v567_v22, %v571_v23 }
  0x6b   :  { %447 = vmatprep.subr.bf16.mxu0 %v5040_v47  ;;  %488 = vmatprep.subr.bf16.mxu1 %v5042_v48  ;;  %v699_v27 = vld [vmem:[#allocation8 + $0x520] sm:$0xff] }
  0x6c   :  { %469 = vmatprep.mubr.bf16.mxu0 %v5979_v0  ;;  %510 = vmatprep.mubr.bf16.mxu1 %v5979_v0  ;;  %v587_v0 = vld [vmem:[#allocation8 + $0x1a0] sm:$0xff]  ;;  %v5216_v36 = vcombine.high %v695_v26, %v699_v27  ;;  %v5215_v40 = vcombine.low %v695_v26, %v699_v27 }
  0x6d   :  { %v5104_v17 = vcombine.high %v583_v7, %v587_v0  ;;  %v5103_v21 = vcombine.low %v583_v7, %v587_v0  ;;  %v559_v30 = vld [vmem:[#allocation8 + $0xc0] sm:$0xff] }
  0x6e   :  { %448 = vmatpush1.bf16.msra.mxu0 %v5039_v53  ;;  %489 = vmatpush1.bf16.msra.mxu1 %v5041_v54  ;;  %v563_v31 = vld [vmem:[#allocation8 + $0xe0] sm:$0xff] }
  0x6f   :  { %449 = vmatprep.subr.bf16.mxu0 %v5032_v55  ;;  %490 = vmatprep.subr.bf16.mxu1 %v5034_v56  ;;  %v687_v34 = vld [vmem:[#allocation8 + $0x4c0] sm:$0xff]  ;;  %v5080_v41 = vcombine.high %v559_v30, %v563_v31  ;;  %v5079_v45 = vcombine.low %v559_v30, %v563_v31 }
  0x70   :  { %v691_v35 = vld [vmem:[#allocation8 + $0x4e0] sm:$0xff] }
  0x71   :  { %v551_v38 = vld [vmem:[#allocation8 + $0x80] sm:$0xff]  ;;  %v5208_v44 = vcombine.high %v687_v34, %v691_v35  ;;  %v5207_v48 = vcombine.low %v687_v34, %v691_v35 }
  0x72   :  { %450 = vmatpush1.bf16.msra.mxu0 %v5031_v61  ;;  %491 = vmatpush1.bf16.msra.mxu1 %v5033_v62  ;;  %v555_v39 = vld [vmem:[#allocation8 + $0xa0] sm:$0xff] }
  0x73   :  { %451 = vmatprep.subr.bf16.mxu0 %v5024_v63  ;;  %492 = vmatprep.subr.bf16.mxu1 %v5026_v1  ;;  %v683_v43 = vld [vmem:[#allocation8 + $0x4a0] sm:$0xff]  ;;  %v5072_v49 = vcombine.high %v551_v38, %v555_v39  ;;  %v5071_v53 = vcombine.low %v551_v38, %v555_v39 }
  0x74   :  { %v543_v46 = vld [vmem:[#allocation8 + $0x40] sm:$0xff] }
  0x75   :  { %v547_v47 = vld [vmem:[#allocation8 + $0x60] sm:$0xff] }
  0x76   :  { %452 = vmatpush1.bf16.msra.mxu0 %v5023_v6  ;;  %493 = vmatpush1.bf16.msra.mxu1 %v5025_v8  ;;  %v671_v50 = vld [vmem:[#allocation8 + $0x440] sm:$0xff]  ;;  %v5064_v57 = vcombine.high %v543_v46, %v547_v47  ;;  %v5063_v61 = vcombine.low %v543_v46, %v547_v47 }
  0x77   :  { %3649 = vmatprep.subr.bf16.mxu0 %v5112_v9  ;;  %3690 = vmatprep.subr.bf16.mxu1 %v5240_v12  ;;  %v675_v51 = vld [vmem:[#allocation8 + $0x460] sm:$0xff] }
  0x78   :  { %v535_v54 = vld [vmem:[#allocation8] sm:$0xff]  ;;  %v5192_v60 = vcombine.high %v671_v50, %v675_v51  ;;  %v5191_v1 = vcombine.low %v671_v50, %v675_v51 }
  0x79   :  { %5053 = vmatmul.mubr.msk.bf16.vlgmr.msra.gmra.mxu0 %vm351_vm0, %v6044_v42  ;;  %5054 = vmatmul.mubr.msk.bf16.vlgmr.msra.gmra.mxu1 %vm351_vm0, %v6044_v42  ;;  %v679_v42 = vld [vmem:[#allocation8 + $0x480] sm:$0xff] }
  0x7a   :  { %3650 = vmatpush1.bf16.msra.mxu0 %v5111_v13  ;;  %3691 = vmatpush1.bf16.msra.mxu1 %v5239_v16  ;;  %v5200_v52 = vcombine.high %v679_v42, %v683_v43  ;;  %v539_v55 = vld [vmem:[#allocation8 + $0x20] sm:$0xff]  ;;  %v5199_v56 = vcombine.low %v679_v42, %v683_v43 }
  0x7b   :  { %3651 = vmatprep.subr.bf16.mxu0 %v5104_v17  ;;  %3692 = vmatprep.subr.bf16.mxu1 %v5232_v20  ;;  %v663_v58 = vld [vmem:[#allocation8 + $0x400] sm:$0xff]  ;;  %v5056_v2 = vcombine.high %v535_v54, %v539_v55  ;;  %v5055_v6 = vcombine.low %v535_v54, %v539_v55 }
  0x7c   :  { %v667_v59 = vld [vmem:[#allocation8 + $0x420] sm:$0xff] }
  0x7d   :  { %v655_v62 = vld [vmem:[#allocation8 + $0x3c0] sm:$0xff]  ;;  %v5184_v5 = vcombine.high %v663_v58, %v667_v59  ;;  %v5183_v9 = vcombine.low %v663_v58, %v667_v59 }
  0x7e   :  { %3652 = vmatpush1.bf16.msra.mxu0 %v5103_v21  ;;  %3693 = vmatpush1.bf16.msra.mxu1 %v5231_v24  ;;  %v659_v63 = vld [vmem:[#allocation8 + $0x3e0] sm:$0xff] }
  0x7f   :  { %3653 = vmatprep.subr.bf16.mxu0 %v5096_v25  ;;  %3694 = vmatprep.subr.bf16.mxu1 %v5224_v28  ;;  %v783_v3 = vld [vmem:[#allocation8 + $0x7c0] sm:$0xff]  ;;  %v5176_v0 = vcombine.high %v655_v62, %v659_v63  ;;  %v5175_v13 = vcombine.low %v655_v62, %v659_v63 }
  0x80   :  { %v787_v4 = vld [vmem:[#allocation8 + $0x7e0] sm:$0xff] }
  0x81   :  { %v647_v7 = vld [vmem:[#allocation8 + $0x380] sm:$0xff]  ;;  %v5304_v12 = vcombine.high %v783_v3, %v787_v4  ;;  %v5303_v16 = vcombine.low %v783_v3, %v787_v4 }
  0x82   :  { %3654 = vmatpush1.bf16.msra.mxu0 %v5095_v29  ;;  %3695 = vmatpush1.bf16.msra.mxu1 %v5223_v32  ;;  %v651_v8 = vld [vmem:[#allocation8 + $0x3a0] sm:$0xff] }
  0x83   :  { %3655 = vmatprep.subr.bf16.mxu0 %v5088_v33  ;;  %3696 = vmatprep.subr.bf16.mxu1 %v5216_v36  ;;  %v775_v10 = vld [vmem:[#allocation8 + $0x780] sm:$0xff]  ;;  %v5168_v17 = vcombine.high %v647_v7, %v651_v8  ;;  %v5167_v21 = vcombine.low %v647_v7, %v651_v8 }
  0x84   :  { %v779_v11 = vld [vmem:[#allocation8 + $0x7a0] sm:$0xff] }
  0x85   :  { %v639_v14 = vld [vmem:[#allocation8 + $0x340] sm:$0xff]  ;;  %v5296_v20 = vcombine.high %v775_v10, %v779_v11  ;;  %v5295_v24 = vcombine.low %v775_v10, %v779_v11  ;;  %v151_v11 = vlaneseq }
  0x86   :  { %3656 = vmatpush1.bf16.msra.mxu0 %v5087_v37  ;;  %3697 = vmatpush1.bf16.msra.mxu1 %v5215_v40  ;;  %v643_v15 = vld [vmem:[#allocation8 + $0x360] sm:$0xff] }
  0x87   :  { %3657 = vmatprep.subr.bf16.mxu0 %v5080_v41  ;;  %3698 = vmatprep.subr.bf16.mxu1 %v5208_v44  ;;  %v767_v18 = vld [vmem:[#allocation8 + $0x740] sm:$0xff]  ;;  %v5160_v25 = vcombine.high %v639_v14, %v643_v15  ;;  %v5159_v29 = vcombine.low %v639_v14, %v643_v15  ;;  %v6071_v14 = vld [vmem:[#allocation7] sm:$0xff] }
  0x88   :  { %v771_v19 = vld [vmem:[#allocation8 + $0x760] sm:$0xff] }
  0x89   :  { %v631_v22 = vld [vmem:[#allocation8 + $0x300] sm:$0xff]  ;;  %v5288_v28 = vcombine.high %v767_v18, %v771_v19  ;;  %v5287_v30 = vcombine.low %v767_v18, %v771_v19 }
  0x8a   :  { %3658 = vmatpush1.bf16.msra.mxu0 %v5079_v45  ;;  %3699 = vmatpush1.bf16.msra.mxu1 %v5207_v48  ;;  %v635_v23 = vld [vmem:[#allocation8 + $0x320] sm:$0xff] }
  0x8b   :  { %3659 = vmatprep.subr.bf16.mxu0 %v5072_v49  ;;  %3700 = vmatprep.subr.bf16.mxu1 %v5200_v52  ;;  %v759_v26 = vld [vmem:[#allocation8 + $0x700] sm:$0xff]  ;;  %v5152_v31 = vcombine.high %v631_v22, %v635_v23  ;;  %v5151_v37 = vcombine.low %v631_v22, %v635_v23 }
  0x8c   :  { %v763_v27 = vld [vmem:[#allocation8 + $0x720] sm:$0xff] }
  0x8d   :  { %v5280_v32 = vcombine.high %v759_v26, %v763_v27  ;;  %v623_v33 = vld [vmem:[#allocation8 + $0x2c0] sm:$0xff]  ;;  %v5279_v38 = vcombine.low %v759_v26, %v763_v27 }
  0x8e   :  { %3660 = vmatpush1.bf16.msra.mxu0 %v5071_v53  ;;  %3701 = vmatpush1.bf16.msra.mxu1 %v5199_v56  ;;  %v627_v34 = vld [vmem:[#allocation8 + $0x2e0] sm:$0xff] }
  0x8f   :  { %3661 = vmatprep.subr.bf16.mxu0 %v5064_v57  ;;  %3702 = vmatprep.subr.bf16.mxu1 %v5192_v60  ;;  %v751_v35 = vld [vmem:[#allocation8 + $0x6c0] sm:$0xff]  ;;  %v5144_v39 = vcombine.high %v623_v33, %v627_v34  ;;  %v5143_v45 = vcombine.low %v623_v33, %v627_v34 }
  0x90   :  { %v755_v36 = vld [vmem:[#allocation8 + $0x6e0] sm:$0xff] }
  0x91   :  { %v5272_v40 = vcombine.high %v751_v35, %v755_v36  ;;  %v615_v41 = vld [vmem:[#allocation8 + $0x280] sm:$0xff]  ;;  %v5271_v46 = vcombine.low %v751_v35, %v755_v36 }
  0x92   :  { %3662 = vmatpush1.bf16.msra.mxu0 %v5063_v61  ;;  %3703 = vmatpush1.bf16.msra.mxu1 %v5191_v1  ;;  %v619_v42 = vld [vmem:[#allocation8 + $0x2a0] sm:$0xff] }
  0x93   :  { %3663 = vmatprep.subr.bf16.mxu0 %v5056_v2  ;;  %3704 = vmatprep.subr.bf16.mxu1 %v5184_v5  ;;  %v743_v43 = vld [vmem:[#allocation8 + $0x680] sm:$0xff]  ;;  %v5136_v47 = vcombine.high %v615_v41, %v619_v42  ;;  %v5135_v53 = vcombine.low %v615_v41, %v619_v42 }
  0x94   :  { %v747_v44 = vld [vmem:[#allocation8 + $0x6a0] sm:$0xff] }
  0x95   :  { %v5264_v48 = vcombine.high %v743_v43, %v747_v44  ;;  %v607_v49 = vld [vmem:[#allocation8 + $0x240] sm:$0xff]  ;;  %v5263_v54 = vcombine.low %v743_v43, %v747_v44 }
  0x96   :  { %3664 = vmatpush1.bf16.msra.mxu0 %v5055_v6  ;;  %3705 = vmatpush1.bf16.msra.mxu1 %v5183_v9  ;;  %v611_v50 = vld [vmem:[#allocation8 + $0x260] sm:$0xff] }
  0x97   :  { %3665 = vmatprep.subr.bf16.mxu0 %v5176_v0  ;;  %3706 = vmatprep.subr.bf16.mxu1 %v5304_v12  ;;  %v735_v51 = vld [vmem:[#allocation8 + $0x640] sm:$0xff]  ;;  %v5128_v55 = vcombine.high %v607_v49, %v611_v50  ;;  %v5127_v61 = vcombine.low %v607_v49, %v611_v50  ;;  %v6068_v12 = vshrl.u32 %v151_v11, 7 }
  0x98   :  { %v739_v52 = vld [vmem:[#allocation8 + $0x660] sm:$0xff] }
  0x99   :  { %v5256_v56 = vcombine.high %v735_v51, %v739_v52  ;;  %v599_v57 = vld [vmem:[#allocation8 + $0x200] sm:$0xff]  ;;  %v5255_v62 = vcombine.low %v735_v51, %v739_v52  ;;  %v161_v15 = vsub.s32 2, %v6068_v12 }
  0x9a   :  { %3666 = vmatpush2.bf16.msra.mxu0 %v5175_v13  ;;  %3707 = vmatpush2.bf16.msra.mxu1 %v5303_v16  ;;  %v603_v58 = vld [vmem:[#allocation8 + $0x220] sm:$0xff]  ;;  %v153_v13 = vsub.s32 0, %v6068_v12  ;;  %v157_v16 = vsub.s32 1, %v6068_v12 }
  0x9b   :  { %3667 = vmatprep.subr.bf16.mxu0 %v5168_v17  ;;  %3708 = vmatprep.subr.bf16.mxu1 %v5296_v20  ;;  %v727_v59 = vld [vmem:[#allocation8 + $0x600] sm:$0xff]  ;;  %v5120_v63 = vcombine.high %v599_v57, %v603_v58  ;;  %v5119_v6 = vcombine.low %v599_v57, %v603_v58  ;;  %v165_v17 = vsub.s32 3, %v6068_v12  ;;  %v162_v19 = vrot.slane %v6071_v14, %v161_v15 }
  0x9c   :  { %v731_v60 = vld [vmem:[#allocation8 + $0x620] sm:$0xff]  ;;  %v154_v18 = vrot.slane %v6071_v14, %v153_v13  ;;  %v158_v20 = vrot.slane %v6071_v14, %v157_v16 }
  0x9d   :  { %v5248_v1 = vcombine.high %v727_v59, %v731_v60  ;;  %v6056_v2 = vld [vmem:[#allocation8 + $0x9c0] sm:$0xff]  ;;  %v5247_v9 = vcombine.low %v727_v59, %v731_v60  ;;  %v166_v22 = vrot.slane %v6071_v14, %v165_v17 }
  0x9e   :  { %3668 = vmatpush2.bf16.msra.mxu0 %v5167_v21  ;;  %3709 = vmatpush2.bf16.msra.mxu1 %v5295_v24  ;;  %v851_v3 = vld [vmem:[#allocation8 + $0x9e0] sm:$0xff] }
  0x9f   :  { %3669 = vmatprep.subr.bf16.mxu0 %v5160_v25  ;;  %3710 = vmatprep.subr.bf16.mxu1 %v5288_v28  ;;  %v6058_v4 = vld [vmem:[#allocation8 + $0xdc0] sm:$0xff]  ;;  %v5367_v7 = vcombine.low %v6056_v2, %v851_v3  ;;  %v5368_v0 = vcombine.high %v6056_v2, %v851_v3 }
  0xa0   :  { %v6060_v5 = vld [vmem:[#allocation8 + $0xde0] sm:$0xff] }
  0xa1   :  { %v5495_v8 = vcombine.low %v6058_v4, %v6060_v5  ;;  %v5496_v10 = vcombine.high %v6058_v4, %v6060_v5  ;;  %v839_v35 = vld [vmem:[#allocation8 + $0x980] sm:$0xff] }
  0xa2   :  { %3670 = vmatpush2.bf16.msra.mxu0 %v5159_v29  ;;  %3711 = vmatpush2.bf16.msra.mxu1 %v5287_v30  ;;  %v843_v36 = vld [vmem:[#allocation8 + $0x9a0] sm:$0xff] }
  0xa3   :  { %3671 = vmatprep.subr.bf16.mxu0 %v5152_v31  ;;  %3712 = vmatprep.subr.bf16.mxu1 %v5280_v32  ;;  %v835_v49 = vld [vmem:[#allocation8 + $0x960] sm:$0xff]  ;;  %v5359_v52 = vcombine.low %v839_v35, %v843_v36 }
  0xa4   :  { %v959_v50 = vld [vmem:[#allocation8 + $0xd40] sm:$0xff] }
  0xa5   :  { %v963_v51 = vld [vmem:[#allocation8 + $0xd60] sm:$0xff] }
  0xa6   :  { %3672 = vmatpush2.bf16.msra.mxu0 %v5151_v37  ;;  %3713 = vmatpush2.bf16.msra.mxu1 %v5279_v38  ;;  %v5480_v57 = vcombine.high %v959_v50, %v963_v51  ;;  %v823_v58 = vld [vmem:[#allocation8 + $0x900] sm:$0xff] }
  0xa7   :  { %3673 = vmatprep.subr.bf16.mxu0 %v5144_v39  ;;  %3714 = vmatprep.subr.bf16.mxu1 %v5272_v40  ;;  %v967_v39 = vld [vmem:[#allocation8 + $0xd80] sm:$0xff] }
  0xa8   :  { %v971_v40 = vld [vmem:[#allocation8 + $0xda0] sm:$0xff] }
  0xa9   :  { %v827_v59 = vld [vmem:[#allocation8 + $0x920] sm:$0xff] }
  0xaa   :  { %3674 = vmatpush2.bf16.msra.mxu0 %v5143_v45  ;;  %3715 = vmatpush2.bf16.msra.mxu1 %v5271_v46  ;;  %v5360_v46 = vcombine.high %v839_v35, %v843_v36  ;;  %v951_v60 = vld [vmem:[#allocation8 + $0xd00] sm:$0xff]  ;;  %v5344_v2 = vcombine.high %v823_v58, %v827_v59  ;;  %v5343_v11 = vcombine.low %v823_v58, %v827_v59 }
  0xab   :  { %3675 = vmatprep.subr.bf16.mxu0 %v5136_v47  ;;  %3716 = vmatprep.subr.bf16.mxu1 %v5264_v48  ;;  %v5488_v47 = vcombine.high %v967_v39, %v971_v40  ;;  %v831_v48 = vld [vmem:[#allocation8 + $0x940] sm:$0xff] }
  0xae   :  { %3676 = vmatpush2.bf16.msra.mxu0 %v5135_v53  ;;  %3717 = vmatpush2.bf16.msra.mxu1 %v5263_v54  ;;  %v173_v53 = vsub.s32 5, %v6068_v12  ;;  %v5487_v54 = vcombine.low %v967_v39, %v971_v40  ;;  %v799_v40 = vld [vmem:[#allocation8 + $0x840] sm:$0xff] }
  0xaf   :  { %3677 = vmatprep.subr.bf16.mxu0 %v5128_v55  ;;  %3718 = vmatprep.subr.bf16.mxu1 %v5256_v56  ;;  %v5352_v55 = vcombine.high %v831_v48, %v835_v49  ;;  %v181_v56 = vsub.s32 7, %v6068_v12 }
  0xb1   :  { %v182_v4 = vrot.slane %v6071_v14, %v181_v56 }
  0xb2   :  { %3678 = vmatpush2.bf16.msra.mxu0 %v5127_v61  ;;  %3719 = vmatpush2.bf16.msra.mxu1 %v5255_v62  ;;  %v955_v61 = vld [vmem:[#allocation8 + $0xd20] sm:$0xff]  ;;  %v5351_v62 = vcombine.low %v831_v48, %v835_v49 }
  0xb3   :  { %3679 = vmatprep.subr.bf16.mxu0 %v5120_v63  ;;  %3720 = vmatprep.subr.bf16.mxu1 %v5248_v1  ;;  %v174_v63 = vrot.slane %v6071_v14, %v173_v53  ;;  %v5479_v1 = vcombine.low %v959_v50, %v963_v51  ;;  %v5472_v5 = vcombine.high %v951_v60, %v955_v61 }
  0xb6   :  { %3680 = vmatpush2.bf16.msra.mxu0 %v5119_v6  ;;  %3721 = vmatpush2.bf16.msra.mxu1 %v5247_v9  ;;  %v815_v6 = vld [vmem:[#allocation8 + $0x8c0] sm:$0xff] }
  0xb7   :  { %3731 = vmatprep.subr.bf16.mxu0 %v5368_v0  ;;  %3772 = vmatprep.subr.bf16.mxu1 %v5496_v10  ;;  %v943_v9 = vld [vmem:[#allocation8 + $0xcc0] sm:$0xff] }
  0xb8   :  { %v947_v0 = vld [vmem:[#allocation8 + $0xce0] sm:$0xff] }
  0xb9   :  { %v5463_v36 = vcombine.low %v943_v9, %v947_v0 }
 0x129   :  { %v389_v21 = vpop.f32.mrf.mxu0  ;;  %v430_v24 = vpop.f32.mrf.mxu1 }
 0x12a   :  { %v390_v23 = vadd.f32 %v389_v21, %v154_v18  ;;  %v431_v25 = vadd.f32 %v430_v24, %v162_v19  ;;  %v5464_v24 = vcombine.high %v943_v9, %v947_v0  ;;  %v903_v9 = vld [vmem:[#allocation8 + $0xb80] sm:$0xff] }
 0x12b   :  { %v391_v26 = vpop.f32.mrf.mxu0  ;;  %v432_v28 = vpop.f32.mrf.mxu1  ;;  %v907_v0 = vld [vmem:[#allocation8 + $0xba0] sm:$0xff] }
 0x12c   :  { %v392_v27 = vadd.f32 %v391_v26, %v158_v20  ;;  %v519_v29 = vmax.f32 %v390_v23, 0.0  ;;  %v521_v30 = vmax.f32 %v431_v25, 0.0  ;;  %v433_v31 = vadd.f32 %v432_v28, %v166_v22  ;;  %v807_v25 = vld [vmem:[#allocation8 + $0x880] sm:$0xff] }
 0x12d   :  { %v393_v32 = vpop.f32.mrf.mxu0  ;;  %v434_v34 = vpop.f32.mrf.mxu1  ;;  %v5471_v20 = vcombine.low %v951_v60, %v955_v61  ;;  %v811_v26 = vld [vmem:[#allocation8 + $0x8a0] sm:$0xff] }
 0x12e   :  { %v520_v33 = vmax.f32 %v392_v27, 0.0  ;;  %v522_v37 = vmax.f32 %v433_v31, 0.0  ;;  %v6088_v41 = vpack.c.bf16 %v521_v30, %v521_v30  ;;  %v6092_v44 = vpack.c.bf16 %v519_v29, %v519_v29  ;;  %v935_v29 = vld [vmem:[#allocation8 + $0xc80] sm:$0xff] }
 0x12f   :  { %v394_v38 = vpop.f32.mrf.mxu0  ;;  %v435_v43 = vpop.f32.mrf.mxu1  ;;  %v939_v30 = vld [vmem:[#allocation8 + $0xca0] sm:$0xff]  ;;  %v5327_v48 = vcombine.low %v807_v25, %v811_v26 }
 0x130   :  { %v6090_v42 = vpack.c.bf16 %v520_v33, %v520_v33  ;;  %v6094_v45 = vpack.c.bf16 %v522_v37, %v522_v37  ;;  %v5328_v37 = vcombine.high %v807_v25, %v811_v26  ;;  %v5456_v39 = vcombine.high %v935_v29, %v939_v30  ;;  %v803_v43 = vld [vmem:[#allocation8 + $0x860] sm:$0xff] }
 0x131   :  { %v5455_v49 = vcombine.low %v935_v29, %v939_v30  ;;  %v5320_v50 = vcombine.high %v799_v40, %v803_v43  ;;  %v5319_v58 = vcombine.low %v799_v40, %v803_v43  ;;  %v1027_v25 = vld [vmem:[#allocation8 + $0xf60] sm:$0xff]  ;;  %v5423_v26 = vcombine.low %v903_v9, %v907_v0 }
 0x132   :  { %3681 = vmatprep.mubr.bf16.mxu0 %v6090_v42  ;;  %3722 = vmatprep.mubr.bf16.mxu1 %v6094_v45  ;;  %v887_v30 = vld [vmem:[#allocation8 + $0xb00] sm:$0xff] }
 0x133   :  { %3682 = vmatmul.mubr.bf16.vlgmr.msra.gmra.mxu0 %v6092_v44  ;;  %3723 = vmatmul.mubr.bf16.vlgmr.msra.gmra.mxu1 %v6088_v41  ;;  %v879_v40 = vld [vmem:[#allocation8 + $0xac0] sm:$0xff] }
 0x134   :  { %3732 = vmatpush1.bf16.msra.mxu0 %v5367_v7  ;;  %3773 = vmatpush1.bf16.msra.mxu1 %v5495_v8  ;;  %v819_v7 = vld [vmem:[#allocation8 + $0x8e0] sm:$0xff] }
 0x135   :  { %3733 = vmatprep.subr.bf16.mxu0 %v5360_v46  ;;  %3774 = vmatprep.subr.bf16.mxu1 %v5488_v47  ;;  %v5336_v21 = vcombine.high %v815_v6, %v819_v7  ;;  %v5335_v33 = vcombine.low %v815_v6, %v819_v7  ;;  %v927_v46 = vld [vmem:[#allocation8 + $0xc40] sm:$0xff] }
 0x136   :  { %v931_v47 = vld [vmem:[#allocation8 + $0xc60] sm:$0xff] }
 0x137   :  { %v5448_v51 = vcombine.high %v927_v46, %v931_v47  ;;  %v5447_v59 = vcombine.low %v927_v46, %v931_v47  ;;  %v883_v43 = vld [vmem:[#allocation8 + $0xae0] sm:$0xff] }
 0x138   :  { %3734 = vmatpush1.bf16.msra.mxu0 %v5359_v52  ;;  %3775 = vmatpush1.bf16.msra.mxu1 %v5487_v54  ;;  %v791_v52 = vld [vmem:[#allocation8 + $0x800] sm:$0xff] }
 0x139   :  { %3735 = vmatprep.subr.bf16.mxu0 %v5352_v55  ;;  %v6105_v3 = vpop.f32.mrf.mxu0  ;;  %3776 = vmatprep.subr.bf16.mxu1 %v5480_v57  ;;  %v6110_v8 = vpop.f32.mrf.mxu1  ;;  %v795_v54 = vld [vmem:[#allocation8 + $0x820] sm:$0xff] }
 0x13a   :  { %v919_v55 = vld [vmem:[#allocation8 + $0xc00] sm:$0xff]  ;;  %v5312_v60 = vcombine.high %v791_v52, %v795_v54 }
 0x13b   :  { %v473_v10 = vpop.f32.mrf.mxu0  ;;  %v514_v19 = vpop.f32.mrf.mxu1  ;;  %v923_v57 = vld [vmem:[#allocation8 + $0xc20] sm:$0xff] }
 0x13c   :  { %3736 = vmatpush1.bf16.msra.mxu0 %v5351_v62  ;;  %v474_v18 = vadd.f32 %v473_v10, %v174_v63  ;;  %3777 = vmatpush1.bf16.msra.mxu1 %v5479_v1  ;;  %v515_v23 = vadd.f32 %v514_v19, %v182_v4  ;;  %v5440_v61 = vcombine.high %v919_v55, %v923_v57  ;;  %v911_v62 = vld [vmem:[#allocation8 + $0xbc0] sm:$0xff] }
 0x13d   :  { %3737 = vmatprep.subr.bf16.mxu0 %v5344_v2  ;;  %v475_v22 = vpop.f32.mrf.mxu0  ;;  %3778 = vmatprep.subr.bf16.mxu1 %v5472_v5  ;;  %v516_v28 = vpop.f32.mrf.mxu1  ;;  %v915_v63 = vld [vmem:[#allocation8 + $0xbe0] sm:$0xff]  ;;  %v5311_v4 = vcombine.low %v791_v52, %v795_v54  ;;  %v5439_v5 = vcombine.low %v919_v55, %v923_v57 }
 0x13e   :  { %v524_v27 = vmax.f32 %v474_v18, 0.0  ;;  %v526_v31 = vmax.f32 %v515_v23, 0.0  ;;  %v1039_v1 = vld [vmem:[#allocation8 + $0xfc0] sm:$0xff]  ;;  %v5432_v6 = vcombine.high %v911_v62, %v915_v63  ;;  %v5431_v18 = vcombine.low %v911_v62, %v915_v63 }
 0x13f   :  { %v476_v32 = vpop.f32.mrf.mxu0  ;;  %v517_v35 = vpop.f32.mrf.mxu1  ;;  %v1043_v2 = vld [vmem:[#allocation8 + $0xfe0] sm:$0xff] }
 0x140   :  { %3738 = vmatpush1.bf16.msra.mxu0 %v5343_v11  ;;  %v6112_v34 = vpack.c.bf16 %v524_v27, %v524_v27  ;;  %3779 = vmatpush1.bf16.msra.mxu1 %v5471_v20  ;;  %v6114_v38 = vpack.c.bf16 %v526_v31, %v526_v31  ;;  %v5560_v7 = vcombine.high %v1039_v1, %v1043_v2  ;;  %v1031_v10 = vld [vmem:[#allocation8 + $0xf80] sm:$0xff] }
 0x141   :  { %3739 = vmatprep.subr.bf16.mxu0 %v5336_v21  ;;  %3780 = vmatprep.subr.bf16.mxu1 %v5464_v24  ;;  %v1035_v11 = vld [vmem:[#allocation8 + $0xfa0] sm:$0xff]  ;;  %v5559_v19 = vcombine.low %v1039_v1, %v1043_v2  ;;  %v5424_v20 = vcombine.high %v903_v9, %v907_v0 }
 0x142   :  { %3763 = vmatprep.mubr.bf16.mxu0 %v6112_v34  ;;  %3804 = vmatprep.mubr.bf16.mxu1 %v6114_v38  ;;  %v5552_v21 = vcombine.high %v1031_v10, %v1035_v11  ;;  %v895_v22 = vld [vmem:[#allocation8 + $0xb40] sm:$0xff]  ;;  %v5551_v27 = vcombine.low %v1031_v10, %v1035_v11 }
 0x143   :  { %v899_v23 = vld [vmem:[#allocation8 + $0xb60] sm:$0xff] }
 0x144   :  { %3740 = vmatpush1.bf16.msra.mxu0 %v5335_v33  ;;  %3781 = vmatpush1.bf16.msra.mxu1 %v5463_v36  ;;  %v1023_v24 = vld [vmem:[#allocation8 + $0xf40] sm:$0xff]  ;;  %v5416_v28 = vcombine.high %v895_v22, %v899_v23  ;;  %v5415_v35 = vcombine.low %v895_v22, %v899_v23 }
 0x145   :  { %3741 = vmatprep.subr.bf16.mxu0 %v5328_v37  ;;  %3782 = vmatprep.subr.bf16.mxu1 %v5456_v39  ;;  %v5544_v29 = vcombine.high %v1023_v24, %v1027_v25  ;;  %v891_v31 = vld [vmem:[#allocation8 + $0xb20] sm:$0xff]  ;;  %v5543_v36 = vcombine.low %v1023_v24, %v1027_v25 }
 0x146   :  { %v1015_v32 = vld [vmem:[#allocation8 + $0xf00] sm:$0xff]  ;;  %v5408_v37 = vcombine.high %v887_v30, %v891_v31 }
 0x147   :  { %v1019_v33 = vld [vmem:[#allocation8 + $0xf20] sm:$0xff] }
 0x148   :  { %3742 = vmatpush1.bf16.msra.mxu0 %v5327_v48  ;;  %3783 = vmatpush1.bf16.msra.mxu1 %v5455_v49  ;;  %v5536_v39 = vcombine.high %v1015_v32, %v1019_v33  ;;  %v1007_v46 = vld [vmem:[#allocation8 + $0xec0] sm:$0xff]  ;;  %v5407_v48 = vcombine.low %v887_v30, %v891_v31  ;;  %v5535_v49 = vcombine.low %v1015_v32, %v1019_v33  ;;  %v724_v30 = vld [vmem:[#allocation8 + $0x5e8] sm:$0xff] }
 0x149   :  { %3743 = vmatprep.subr.bf16.mxu0 %v5320_v50  ;;  %3784 = vmatprep.subr.bf16.mxu1 %v5448_v51  ;;  %v1011_v47 = vld [vmem:[#allocation8 + $0xee0] sm:$0xff]  ;;  %v5400_v50 = vcombine.high %v879_v40, %v883_v43 }
 0x14a   :  { %v5528_v51 = vcombine.high %v1007_v46, %v1011_v47  ;;  %v871_v52 = vld [vmem:[#allocation8 + $0xa80] sm:$0xff] }
 0x14b   :  { %v875_v54 = vld [vmem:[#allocation8 + $0xaa0] sm:$0xff] }
 0x14c   :  { %3744 = vmatpush1.bf16.msra.mxu0 %v5319_v58  ;;  %3785 = vmatpush1.bf16.msra.mxu1 %v5447_v59  ;;  %v999_v55 = vld [vmem:[#allocation8 + $0xe80] sm:$0xff]  ;;  %v5399_v58 = vcombine.low %v879_v40, %v883_v43  ;;  %v177_v59 = vsub.s32 6, %v6068_v12  ;;  %v5392_v62 = vcombine.high %v871_v52, %v875_v54  ;;  %v712_v43 = vld [vmem:[#allocation8 + $0x588] sm:$0xff] }
 0x14d   :  { %3745 = vmatprep.subr.bf16.mxu0 %v5312_v60  ;;  %3786 = vmatprep.subr.bf16.mxu1 %v5440_v61  ;;  %v1003_v57 = vld [vmem:[#allocation8 + $0xea0] sm:$0xff]  ;;  %v5527_v60 = vcombine.low %v1007_v46, %v1011_v47  ;;  %v169_v61 = vsub.s32 4, %v6068_v12  ;;  %v716_v46 = vld [vmem:[#allocation8 + $0x5a8] sm:$0xff] }
 0x14e   :  { %v5520_v63 = vcombine.high %v999_v55, %v1003_v57  ;;  %v863_v1 = vld [vmem:[#allocation8 + $0xa40] sm:$0xff]  ;;  %v5519_v0 = vcombine.low %v999_v55, %v1003_v57  ;;  %v708_v55 = vld [vmem:[#allocation8 + $0x568] sm:$0xff] }
 0x14f   :  { %v867_v2 = vld [vmem:[#allocation8 + $0xa60] sm:$0xff]  ;;  %v170_v9 = vrot.slane %v6071_v14, %v169_v61 }
 0x150   :  { %3746 = vmatpush1.bf16.msra.mxu0 %v5311_v4  ;;  %3787 = vmatpush1.bf16.msra.mxu1 %v5439_v5  ;;  %v991_v4 = vld [vmem:[#allocation8 + $0xe40] sm:$0xff]  ;;  %v5384_v10 = vcombine.high %v863_v1, %v867_v2  ;;  %v5383_v23 = vcombine.low %v863_v1, %v867_v2  ;;  %v572_v1 = vld [vmem:[#allocation8 + $0x128] sm:$0xff] }
 0x151   :  { %3747 = vmatprep.subr.bf16.mxu0 %v5432_v6  ;;  %3788 = vmatprep.subr.bf16.mxu1 %v5560_v7  ;;  %v995_v5 = vld [vmem:[#allocation8 + $0xe60] sm:$0xff]  ;;  %v178_v6 = vrot.slane %v6071_v14, %v177_v59  ;;  %v5391_v7 = vcombine.low %v871_v52, %v875_v54  ;;  %v472_v24 = vadd.f32 %v6105_v3, %v170_v9  ;;  %v704_v54 = vld [vmem:[#allocation8 + $0x548] sm:$0xff] }
 0x152   :  { %v5512_v11 = vcombine.high %v991_v4, %v995_v5  ;;  %v5511_v25 = vcombine.low %v991_v4, %v995_v5  ;;  %v5234_v52 = vcombine.high %v712_v43, %v716_v46  ;;  %v696_v2 = vld [vmem:[#allocation8 + $0x508] sm:$0xff] }
 0x153   :  { %v513_v22 = vadd.f32 %v6110_v8, %v178_v6  ;;  %v523_v33 = vmax.f32 %v472_v24, 0.0  ;;  %v700_v4 = vld [vmem:[#allocation8 + $0x528] sm:$0xff]  ;;  %v5225_v6 = vcombine.low %v704_v54, %v708_v55 }
 0x154   :  { %3748 = vmatpush2.bf16.msra.mxu0 %v5431_v18  ;;  %3789 = vmatpush2.bf16.msra.mxu1 %v5559_v19  ;;  %v855_v18 = vld [vmem:[#allocation8 + $0xa00] sm:$0xff]  ;;  %v5218_v9 = vcombine.high %v696_v2, %v700_v4  ;;  %v556_v24 = vld [vmem:[#allocation8 + $0xa8] sm:$0xff] }
 0x155   :  { %3749 = vmatprep.subr.bf16.mxu0 %v5424_v20  ;;  %3790 = vmatprep.subr.bf16.mxu1 %v5552_v21  ;;  %v859_v19 = vld [vmem:[#allocation8 + $0xa20] sm:$0xff]  ;;  %v525_v31 = vmax.f32 %v513_v22, 0.0  ;;  %v6130_v47 = vpack.c.bf16 %v523_v33, %v523_v33  ;;  %v676_v33 = vld [vmem:[#allocation8 + $0x468] sm:$0xff] }
 0x156   :  { %v983_v20 = vld [vmem:[#allocation8 + $0xe00] sm:$0xff]  ;;  %v5376_v14 = vcombine.high %v855_v18, %v859_v19  ;;  %v5375_v32 = vcombine.low %v855_v18, %v859_v19  ;;  %v692_v18 = vld [vmem:[#allocation8 + $0x4e8] sm:$0xff] }
 0x157   :  { %v987_v21 = vld [vmem:[#allocation8 + $0xe20] sm:$0xff] }
 0x158   :  { %3750 = vmatpush2.bf16.msra.mxu0 %v5423_v26  ;;  %3791 = vmatpush2.bf16.msra.mxu1 %v5551_v27  ;;  %v5504_v26 = vcombine.high %v983_v20, %v987_v21  ;;  %v592_v27 = vld [vmem:[#allocation8 + $0x1c8] sm:$0xff]  ;;  %v5503_v8 = vcombine.low %v983_v20, %v987_v21  ;;  %v5217_v20 = vcombine.low %v696_v2, %v700_v4 }
 0x159   :  { %3751 = vmatprep.subr.bf16.mxu0 %v5416_v28  ;;  %3792 = vmatprep.subr.bf16.mxu1 %v5544_v29  ;;  %v596_v28 = vld [vmem:[#allocation8 + $0x1e8] sm:$0xff] }
 0x15a   :  { %v720_v29 = vld [vmem:[#allocation8 + $0x5c8] sm:$0xff]  ;;  %v5113_v40 = vcombine.low %v592_v27, %v596_v28 }
 0x15b   :  { %v5242_v3 = vcombine.high %v720_v29, %v724_v30  ;;  %v652_v2 = vld [vmem:[#allocation8 + $0x3a8] sm:$0xff] }
 0x15c   :  { %3752 = vmatpush2.bf16.msra.mxu0 %v5415_v35  ;;  %3793 = vmatpush2.bf16.msra.mxu1 %v5543_v36  ;;  %v5114_v35 = vcombine.high %v592_v27, %v596_v28  ;;  %v584_v36 = vld [vmem:[#allocation8 + $0x188] sm:$0xff] }
 0x15d   :  { %3753 = vmatprep.subr.bf16.mxu0 %v5408_v37  ;;  %3794 = vmatprep.subr.bf16.mxu1 %v5536_v39  ;;  %v588_v37 = vld [vmem:[#allocation8 + $0x1a8] sm:$0xff]  ;;  %v6128_v39 = vpack.c.bf16 %v525_v31, %v525_v31 }
 0x15e   :  { %v5105_v57 = vcombine.low %v584_v36, %v588_v37  ;;  %v548_v31 = vld [vmem:[#allocation8 + $0x68] sm:$0xff] }
 0x15f   :  { %v776_v4 = vld [vmem:[#allocation8 + $0x788] sm:$0xff] }
 0x160   :  { %3754 = vmatpush2.bf16.msra.mxu0 %v5407_v48  ;;  %3795 = vmatpush2.bf16.msra.mxu1 %v5535_v49  ;;  %v5241_v48 = vcombine.low %v720_v29, %v724_v30  ;;  %v5106_v49 = vcombine.high %v584_v36, %v588_v37  ;;  %v544_v30 = vld [vmem:[#allocation8 + $0x48] sm:$0xff] }
 0x161   :  { %3755 = vmatprep.subr.bf16.mxu0 %v5400_v50  ;;  %3796 = vmatprep.subr.bf16.mxu1 %v5528_v51  ;;  %v576_v50 = vld [vmem:[#allocation8 + $0x148] sm:$0xff] }
 0x162   :  { %v580_v51 = vld [vmem:[#allocation8 + $0x168] sm:$0xff] }
 0x163   :  { %v5097_v5 = vcombine.low %v576_v50, %v580_v51  ;;  %v536_v37 = vld [vmem:[#allocation8 + $0x8] sm:$0xff] }
 0x164   :  { %3756 = vmatpush2.bf16.msra.mxu0 %v5399_v58  ;;  %3797 = vmatpush2.bf16.msra.mxu1 %v5527_v60  ;;  %v5233_v58 = vcombine.low %v712_v43, %v716_v46  ;;  %v5098_v60 = vcombine.high %v576_v50, %v580_v51  ;;  %v664_v43 = vld [vmem:[#allocation8 + $0x408] sm:$0xff] }
 0x165   :  { %3757 = vmatprep.subr.bf16.mxu0 %v5392_v62  ;;  %3798 = vmatprep.subr.bf16.mxu1 %v5520_v63  ;;  %v5226_v62 = vcombine.high %v704_v54, %v708_v55  ;;  %v568_v63 = vld [vmem:[#allocation8 + $0x108] sm:$0xff] }
 0x166   :  { %v5089_v19 = vcombine.low %v568_v63, %v572_v1  ;;  %v668_v46 = vld [vmem:[#allocation8 + $0x428] sm:$0xff] }
 0x167   :  { %v5186_v51 = vcombine.high %v664_v43, %v668_v46  ;;  %v660_v54 = vld [vmem:[#allocation8 + $0x3e8] sm:$0xff] }
 0x168   :  { %3758 = vmatpush2.bf16.msra.mxu0 %v5391_v7  ;;  %3799 = vmatpush2.bf16.msra.mxu1 %v5519_v0  ;;  %v5090_v7 = vcombine.high %v568_v63, %v572_v1  ;;  %v560_v0 = vld [vmem:[#allocation8 + $0xc8] sm:$0xff] }
 0x169   :  { %3759 = vmatprep.subr.bf16.mxu0 %v5384_v10  ;;  %3800 = vmatprep.subr.bf16.mxu1 %v5512_v11  ;;  %v564_v10 = vld [vmem:[#allocation8 + $0xe8] sm:$0xff] }
 0x16a   :  { %v688_v11 = vld [vmem:[#allocation8 + $0x4c8] sm:$0xff]  ;;  %v5082_v21 = vcombine.high %v560_v0, %v564_v10 }
 0x16b   :  { %v5210_v22 = vcombine.high %v688_v11, %v692_v18  ;;  %v5209_v27 = vcombine.low %v688_v11, %v692_v18  ;;  %v784_v55 = vld [vmem:[#allocation8 + $0x7c8] sm:$0xff] }
 0x16c   :  { %3760 = vmatpush2.bf16.msra.mxu0 %v5383_v23  ;;  %3801 = vmatpush2.bf16.msra.mxu1 %v5511_v25  ;;  %v552_v23 = vld [vmem:[#allocation8 + $0x88] sm:$0xff] }
 0x16d   :  { %3761 = vmatprep.subr.bf16.mxu0 %v5376_v14  ;;  %3802 = vmatprep.subr.bf16.mxu1 %v5504_v26  ;;  %v680_v25 = vld [vmem:[#allocation8 + $0x488] sm:$0xff]  ;;  %v5081_v26 = vcombine.low %v560_v0, %v564_v10  ;;  %v5074_v28 = vcombine.high %v552_v23, %v556_v24 }
 0x16e   :  { %v684_v14 = vld [vmem:[#allocation8 + $0x4a8] sm:$0xff] }
 0x16f   :  { %v5202_v29 = vcombine.high %v680_v25, %v684_v14  ;;  %v648_v1 = vld [vmem:[#allocation8 + $0x388] sm:$0xff] }
 0x170   :  { %3762 = vmatpush2.bf16.msra.mxu0 %v5375_v32  ;;  %3803 = vmatpush2.bf16.msra.mxu1 %v5503_v8  ;;  %v672_v32 = vld [vmem:[#allocation8 + $0x448] sm:$0xff]  ;;  %v5073_v8 = vcombine.low %v552_v23, %v556_v24 }
 0x171   :  { %3813 = vmatprep.subr.bf16.mxu0 %v5114_v35  ;;  %3854 = vmatprep.subr.bf16.mxu1 %v5242_v3  ;;  %v5201_v35 = vcombine.low %v680_v25, %v684_v14  ;;  %v5066_v3 = vcombine.high %v544_v30, %v548_v31  ;;  %v5194_v36 = vcombine.high %v672_v32, %v676_v33  ;;  %v640_v10 = vld [vmem:[#allocation8 + $0x348] sm:$0xff] }
 0x172   :  { %v644_v11 = vld [vmem:[#allocation8 + $0x368] sm:$0xff] }
 0x173   :  { %3764 = vmatmul.mubr.bf16.vlgmr.msra.gmra.mxu0 %v6130_v47  ;;  %3805 = vmatmul.mubr.bf16.vlgmr.msra.gmra.mxu1 %v6128_v39  ;;  %v768_v18 = vld [vmem:[#allocation8 + $0x748] sm:$0xff] }
 0x174   :  { %3814 = vmatpush1.bf16.msra.mxu0 %v5113_v40  ;;  %3845 = vmatprep.mubr.bf16.mxu0 %v6090_v42  ;;  %v540_v40 = vld [vmem:[#allocation8 + $0x28] sm:$0xff] }
 0x175   :  { %3855 = vmatpush1.bf16.msra.mxu1 %v5241_v48  ;;  %3886 = vmatprep.mubr.bf16.mxu1 %v6094_v45  ;;  %v5065_v48 = vcombine.low %v544_v30, %v548_v31  ;;  %v5058_v50 = vcombine.high %v536_v37, %v540_v40  ;;  %v632_v24 = vld [vmem:[#allocation8 + $0x308] sm:$0xff] }
 0x176   :  { %3815 = vmatprep.subr.bf16.mxu0 %v5106_v49  ;;  %3856 = vmatprep.subr.bf16.mxu1 %v5234_v52  ;;  %v5193_v49 = vcombine.low %v672_v32, %v676_v33  ;;  %v656_v52 = vld [vmem:[#allocation8 + $0x3c8] sm:$0xff] }
 0x177   :  { %v636_v25 = vld [vmem:[#allocation8 + $0x328] sm:$0xff] }
 0x178   :  { %3816 = vmatpush1.bf16.msra.mxu0 %v5105_v57  ;;  %v788_v57 = vld [vmem:[#allocation8 + $0x7e8] sm:$0xff] }
 0x179   :  { %3857 = vmatpush1.bf16.msra.mxu1 %v5233_v58  ;;  %3817 = vmatprep.subr.bf16.mxu0 %v5098_v60  ;;  %v5057_v58 = vcombine.low %v536_v37, %v540_v40  ;;  %v5185_v60 = vcombine.low %v664_v43, %v668_v46  ;;  %v5306_v63 = vcombine.high %v784_v55, %v788_v57  ;;  %v760_v14 = vld [vmem:[#allocation8 + $0x708] sm:$0xff] }
 0x17a   :  { %3858 = vmatprep.subr.bf16.mxu1 %v5226_v62  ;;  %v5178_v62 = vcombine.high %v656_v52, %v660_v54  ;;  %v624_v31 = vld [vmem:[#allocation8 + $0x2c8] sm:$0xff] }
 0x17b   :  { %v628_v32 = vld [vmem:[#allocation8 + $0x2e8] sm:$0xff] }
 0x17c   :  { %3818 = vmatpush1.bf16.msra.mxu0 %v5097_v5  ;;  %v780_v5 = vld [vmem:[#allocation8 + $0x7a8] sm:$0xff] }
 0x17d   :  { %3859 = vmatpush1.bf16.msra.mxu1 %v5225_v6  ;;  %3819 = vmatprep.subr.bf16.mxu0 %v5090_v7  ;;  %v5177_v6 = vcombine.low %v656_v52, %v660_v54  ;;  %v5305_v7 = vcombine.low %v784_v55, %v788_v57  ;;  %v5298_v0 = vcombine.high %v776_v4, %v780_v5  ;;  %v752_v33 = vld [vmem:[#allocation8 + $0x6c8] sm:$0xff] }
 0x17e   :  { %3860 = vmatprep.subr.bf16.mxu1 %v5218_v9  ;;  %v5170_v9 = vcombine.high %v648_v1, %v652_v2  ;;  %v616_v40 = vld [vmem:[#allocation8 + $0x288] sm:$0xff] }
 0x17f   :  { %v620_v43 = vld [vmem:[#allocation8 + $0x2a8] sm:$0xff] }
 0x180   :  { %3820 = vmatpush1.bf16.msra.mxu0 %v5089_v19  ;;  %v772_v19 = vld [vmem:[#allocation8 + $0x768] sm:$0xff] }
 0x181   :  { %3861 = vmatpush1.bf16.msra.mxu1 %v5217_v20  ;;  %3821 = vmatprep.subr.bf16.mxu0 %v5082_v21  ;;  %v5169_v20 = vcombine.low %v648_v1, %v652_v2  ;;  %v5297_v21 = vcombine.low %v776_v4, %v780_v5  ;;  %v5290_v23 = vcombine.high %v768_v18, %v772_v19  ;;  %v744_v46 = vld [vmem:[#allocation8 + $0x688] sm:$0xff] }
 0x182   :  { %3862 = vmatprep.subr.bf16.mxu1 %v5210_v22  ;;  %v5162_v22 = vcombine.high %v640_v10, %v644_v11  ;;  %v608_v54 = vld [vmem:[#allocation8 + $0x248] sm:$0xff] }
 0x183   :  { %v612_v55 = vld [vmem:[#allocation8 + $0x268] sm:$0xff] }
 0x184   :  { %3822 = vmatpush1.bf16.msra.mxu0 %v5081_v26  ;;  %v764_v26 = vld [vmem:[#allocation8 + $0x728] sm:$0xff] }
 0x185   :  { %3863 = vmatpush1.bf16.msra.mxu1 %v5209_v27  ;;  %3823 = vmatprep.subr.bf16.mxu0 %v5074_v28  ;;  %v5161_v27 = vcombine.low %v640_v10, %v644_v11  ;;  %v5289_v28 = vcombine.low %v768_v18, %v772_v19  ;;  %v5282_v30 = vcombine.high %v760_v14, %v764_v26  ;;  %v736_v57 = vld [vmem:[#allocation8 + $0x648] sm:$0xff] }
 0x186   :  { %3864 = vmatprep.subr.bf16.mxu1 %v5202_v29  ;;  %v5154_v29 = vcombine.high %v632_v24, %v636_v25  ;;  %v600_v2 = vld [vmem:[#allocation8 + $0x208] sm:$0xff] }
 0x187   :  { %v604_v4 = vld [vmem:[#allocation8 + $0x228] sm:$0xff] }
 0x188   :  { %3824 = vmatpush1.bf16.msra.mxu0 %v5073_v8  ;;  %v756_v8 = vld [vmem:[#allocation8 + $0x6e8] sm:$0xff] }
 0x189   :  { %3865 = vmatpush1.bf16.msra.mxu1 %v5201_v35  ;;  %3825 = vmatprep.subr.bf16.mxu0 %v5066_v3  ;;  %v5153_v35 = vcombine.low %v632_v24, %v636_v25  ;;  %v5281_v3 = vcombine.low %v760_v14, %v764_v26  ;;  %v5274_v37 = vcombine.high %v752_v33, %v756_v8  ;;  %v728_v5 = vld [vmem:[#allocation8 + $0x608] sm:$0xff] }
 0x18a   :  { %3866 = vmatprep.subr.bf16.mxu1 %v5194_v36  ;;  %v5146_v36 = vcombine.high %v624_v31, %v628_v32  ;;  %v848_v11 = vld [vmem:[#allocation8 + $0x9c8] sm:$0xff] }
 0x18b   :  { %v852_v18 = vld [vmem:[#allocation8 + $0x9e8] sm:$0xff] }
 0x18c   :  { %3826 = vmatpush1.bf16.msra.mxu0 %v5065_v48  ;;  %v748_v48 = vld [vmem:[#allocation8 + $0x6a8] sm:$0xff]  ;;  %v5369_v26 = vcombine.low %v848_v11, %v852_v18 }
 0x18d   :  { %3867 = vmatpush1.bf16.msra.mxu1 %v5193_v49  ;;  %3827 = vmatprep.subr.bf16.mxu0 %v5058_v50  ;;  %v5145_v49 = vcombine.low %v624_v31, %v628_v32  ;;  %v5273_v50 = vcombine.low %v752_v33, %v756_v8  ;;  %v5266_v52 = vcombine.high %v744_v46, %v748_v48  ;;  %v976_v19 = vld [vmem:[#allocation8 + $0xdc8] sm:$0xff] }
 0x18e   :  { %3868 = vmatprep.subr.bf16.mxu1 %v5186_v51  ;;  %v5138_v51 = vcombine.high %v616_v40, %v620_v43  ;;  %v840_v25 = vld [vmem:[#allocation8 + $0x988] sm:$0xff] }
 0x18f   :  { %v844_v14 = vld [vmem:[#allocation8 + $0x9a8] sm:$0xff] }
 0x190   :  { %3828 = vmatpush1.bf16.msra.mxu0 %v5057_v58  ;;  %v740_v58 = vld [vmem:[#allocation8 + $0x668] sm:$0xff] }
 0x191   :  { %3869 = vmatpush1.bf16.msra.mxu1 %v5185_v60  ;;  %3829 = vmatprep.subr.bf16.mxu0 %v5178_v62  ;;  %v5137_v60 = vcombine.low %v616_v40, %v620_v43  ;;  %v5265_v62 = vcombine.low %v744_v46, %v748_v48  ;;  %v5258_v1 = vcombine.high %v736_v57, %v740_v58  ;;  %v832_v31 = vld [vmem:[#allocation8 + $0x948] sm:$0xff] }
 0x192   :  { %3870 = vmatprep.subr.bf16.mxu1 %v5306_v63  ;;  %v5130_v63 = vcombine.high %v608_v54, %v612_v55  ;;  %v836_v32 = vld [vmem:[#allocation8 + $0x968] sm:$0xff] }
 0x193   :  { %v960_v8 = vld [vmem:[#allocation8 + $0xd48] sm:$0xff] }
 0x194   :  { %3830 = vmatpush2.bf16.msra.mxu0 %v5177_v6  ;;  %v732_v6 = vld [vmem:[#allocation8 + $0x628] sm:$0xff] }
 0x195   :  { %3871 = vmatpush2.bf16.msra.mxu1 %v5305_v7  ;;  %3831 = vmatprep.subr.bf16.mxu0 %v5170_v9  ;;  %v5129_v7 = vcombine.low %v608_v54, %v612_v55  ;;  %v5257_v9 = vcombine.low %v736_v57, %v740_v58  ;;  %v5250_v10 = vcombine.high %v728_v5, %v732_v6  ;;  %v824_v43 = vld [vmem:[#allocation8 + $0x908] sm:$0xff] }
 0x196   :  { %3872 = vmatprep.subr.bf16.mxu1 %v5298_v0  ;;  %v5122_v0 = vcombine.high %v600_v2, %v604_v4  ;;  %v828_v46 = vld [vmem:[#allocation8 + $0x928] sm:$0xff] }
 0x197   :  { %v952_v48 = vld [vmem:[#allocation8 + $0xd08] sm:$0xff] }
 0x198   :  { %3832 = vmatpush2.bf16.msra.mxu0 %v5169_v20  ;;  %v980_v20 = vld [vmem:[#allocation8 + $0xde8] sm:$0xff] }
 0x199   :  { %3873 = vmatpush2.bf16.msra.mxu1 %v5297_v21  ;;  %3833 = vmatprep.subr.bf16.mxu0 %v5162_v22  ;;  %v5121_v21 = vcombine.low %v600_v2, %v604_v4  ;;  %v5249_v22 = vcombine.low %v728_v5, %v732_v6  ;;  %v5498_v24 = vcombine.high %v976_v19, %v980_v20  ;;  %v816_v55 = vld [vmem:[#allocation8 + $0x8c8] sm:$0xff] }
 0x19a   :  { %3874 = vmatprep.subr.bf16.mxu1 %v5290_v23  ;;  %v5370_v23 = vcombine.high %v848_v11, %v852_v18  ;;  %v820_v57 = vld [vmem:[#allocation8 + $0x8e8] sm:$0xff] }
 0x19b   :  { %v944_v58 = vld [vmem:[#allocation8 + $0xcc8] sm:$0xff] }
 0x19c   :  { %3834 = vmatpush2.bf16.msra.mxu0 %v5161_v27  ;;  %v968_v27 = vld [vmem:[#allocation8 + $0xd88] sm:$0xff] }
 0x19d   :  { %3875 = vmatpush2.bf16.msra.mxu1 %v5289_v28  ;;  %3835 = vmatprep.subr.bf16.mxu0 %v5154_v29  ;;  %v972_v28 = vld [vmem:[#allocation8 + $0xda8] sm:$0xff]  ;;  %v5497_v29 = vcombine.low %v976_v19, %v980_v20 }
 0x19e   :  { %3876 = vmatprep.subr.bf16.mxu1 %v5282_v30  ;;  %v5362_v30 = vcombine.high %v840_v25, %v844_v14  ;;  %v5490_v33 = vcombine.high %v968_v27, %v972_v28  ;;  %v808_v4 = vld [vmem:[#allocation8 + $0x888] sm:$0xff] }
 0x19f   :  { %v812_v5 = vld [vmem:[#allocation8 + $0x8a8] sm:$0xff] }
 0x1a0   :  { %3836 = vmatpush2.bf16.msra.mxu0 %v5153_v35  ;;  %v964_v35 = vld [vmem:[#allocation8 + $0xd68] sm:$0xff] }
 0x1a1   :  { %3877 = vmatpush2.bf16.msra.mxu1 %v5281_v3  ;;  %3837 = vmatprep.subr.bf16.mxu0 %v5146_v36  ;;  %v5361_v3 = vcombine.low %v840_v25, %v844_v14  ;;  %v5489_v36 = vcombine.low %v968_v27, %v972_v28  ;;  %v5482_v40 = vcombine.high %v960_v8, %v964_v35  ;;  %v936_v6 = vld [vmem:[#allocation8 + $0xc88] sm:$0xff] }
 0x1a2   :  { %3878 = vmatprep.subr.bf16.mxu1 %v5274_v37  ;;  %v5354_v37 = vcombine.high %v832_v31, %v836_v32  ;;  %v800_v18 = vld [vmem:[#allocation8 + $0x848] sm:$0xff] }
 0x1a3   :  { %v804_v19 = vld [vmem:[#allocation8 + $0x868] sm:$0xff] }
 0x1a4   :  { %3838 = vmatpush2.bf16.msra.mxu0 %v5145_v49  ;;  %v956_v49 = vld [vmem:[#allocation8 + $0xd28] sm:$0xff] }
 0x1a5   :  { %3879 = vmatpush2.bf16.msra.mxu1 %v5273_v50  ;;  %3839 = vmatprep.subr.bf16.mxu0 %v5138_v51  ;;  %v5353_v50 = vcombine.low %v832_v31, %v836_v32  ;;  %v5481_v51 = vcombine.low %v960_v8, %v964_v35  ;;  %v5474_v54 = vcombine.high %v952_v48, %v956_v49  ;;  %v928_v20 = vld [vmem:[#allocation8 + $0xc48] sm:$0xff] }
 0x1a6   :  { %3880 = vmatprep.subr.bf16.mxu1 %v5266_v52  ;;  %v5346_v52 = vcombine.high %v824_v43, %v828_v46  ;;  %v792_v14 = vld [vmem:[#allocation8 + $0x808] sm:$0xff] }
 0x1a7   :  { %v920_v27 = vld [vmem:[#allocation8 + $0xc08] sm:$0xff] }
 0x1a8   :  { %3840 = vmatpush2.bf16.msra.mxu0 %v5137_v60  ;;  %v948_v60 = vld [vmem:[#allocation8 + $0xce8] sm:$0xff] }
 0x1a9   :  { %3881 = vmatpush2.bf16.msra.mxu1 %v5265_v62  ;;  %3841 = vmatprep.subr.bf16.mxu0 %v5130_v63  ;;  %v5345_v62 = vcombine.low %v824_v43, %v828_v46  ;;  %v5473_v63 = vcombine.low %v952_v48, %v956_v49  ;;  %v5466_v2 = vcombine.high %v944_v58, %v948_v60  ;;  %v924_v28 = vld [vmem:[#allocation8 + $0xc28] sm:$0xff] }
 0x1aa   :  { %3882 = vmatprep.subr.bf16.mxu1 %v5258_v1  ;;  %v5338_v1 = vcombine.high %v816_v55, %v820_v57  ;;  %v5442_v32 = vcombine.high %v920_v27, %v924_v28  ;;  %v916_v8 = vld [vmem:[#allocation8 + $0xbe8] sm:$0xff] }
 0x1ab   :  { %v1040_v35 = vld [vmem:[#allocation8 + $0xfc8] sm:$0xff] }
 0x1ac   :  { %3842 = vmatpush2.bf16.msra.mxu0 %v5129_v7  ;;  %v940_v7 = vld [vmem:[#allocation8 + $0xca8] sm:$0xff] }
 0x1ad   :  { %3883 = vmatpush2.bf16.msra.mxu1 %v5257_v9  ;;  %3843 = vmatprep.subr.bf16.mxu0 %v5122_v0  ;;  %v5337_v9 = vcombine.low %v816_v55, %v820_v57  ;;  %v5465_v0 = vcombine.low %v944_v58, %v948_v60  ;;  %v5458_v11 = vcombine.high %v936_v6, %v940_v7  ;;  %v904_v46 = vld [vmem:[#allocation8 + $0xb88] sm:$0xff] }
 0x1ae   :  { %3884 = vmatprep.subr.bf16.mxu1 %v5250_v10  ;;  %v5330_v10 = vcombine.high %v808_v4, %v812_v5  ;;  %v908_v48 = vld [vmem:[#allocation8 + $0xba8] sm:$0xff] }
 0x1af   :  { %v1032_v49 = vld [vmem:[#allocation8 + $0xf88] sm:$0xff] }
 0x1b0   :  { %3844 = vmatpush2.bf16.msra.mxu0 %v5121_v21  ;;  %v932_v21 = vld [vmem:[#allocation8 + $0xc68] sm:$0xff] }
 0x1b1   :  { %3885 = vmatpush2.bf16.msra.mxu1 %v5249_v22  ;;  %3895 = vmatprep.subr.bf16.mxu0 %v5370_v23  ;;  %v5329_v22 = vcombine.low %v808_v4, %v812_v5  ;;  %v5457_v23 = vcombine.low %v936_v6, %v940_v7  ;;  %v5450_v25 = vcombine.high %v928_v20, %v932_v21  ;;  %v896_v57 = vld [vmem:[#allocation8 + $0xb48] sm:$0xff] }
 0x1b2   :  { %3936 = vmatprep.subr.bf16.mxu1 %v5498_v24  ;;  %v5322_v24 = vcombine.high %v800_v18, %v804_v19  ;;  %v900_v58 = vld [vmem:[#allocation8 + $0xb68] sm:$0xff] }
 0x1b3   :  { %3846 = vmatmul.mubr.bf16.vlgmr.msra.gmra.mxu0 %v6092_v44  ;;  %v1024_v60 = vld [vmem:[#allocation8 + $0xf48] sm:$0xff] }
 0x1b4   :  { %3887 = vmatmul.mubr.bf16.vlgmr.msra.gmra.mxu1 %v6088_v41  ;;  %3896 = vmatpush1.bf16.msra.mxu0 %v5369_v26  ;;  %v796_v26 = vld [vmem:[#allocation8 + $0x828] sm:$0xff] }
 0x1b5   :  { %3927 = vmatprep.mubr.bf16.mxu0 %v6112_v34  ;;  %3937 = vmatpush1.bf16.msra.mxu1 %v5497_v29  ;;  %v5321_v29 = vcombine.low %v800_v18, %v804_v19  ;;  %v5314_v31 = vcombine.high %v792_v14, %v796_v26  ;;  %v888_v5 = vld [vmem:[#allocation8 + $0xb08] sm:$0xff] }
 0x1b6   :  { %3968 = vmatprep.mubr.bf16.mxu1 %v6114_v38  ;;  %3897 = vmatprep.subr.bf16.mxu0 %v5362_v30  ;;  %v5449_v30 = vcombine.low %v928_v20, %v932_v21  ;;  %v892_v6 = vld [vmem:[#allocation8 + $0xb28] sm:$0xff] }
 0x1b7   :  { %3938 = vmatprep.subr.bf16.mxu1 %v5490_v33  ;;  %v912_v33 = vld [vmem:[#allocation8 + $0xbc8] sm:$0xff] }
 0x1b8   :  { %3898 = vmatpush1.bf16.msra.mxu0 %v5361_v3  ;;  %v1044_v3 = vld [vmem:[#allocation8 + $0xfe8] sm:$0xff] }
 0x1b9   :  { %3939 = vmatpush1.bf16.msra.mxu1 %v5489_v36  ;;  %3899 = vmatprep.subr.bf16.mxu0 %v5354_v37  ;;  %v5313_v36 = vcombine.low %v792_v14, %v796_v26  ;;  %v5441_v37 = vcombine.low %v920_v27, %v924_v28  ;;  %v5562_v43 = vcombine.high %v1040_v35, %v1044_v3  ;;  %v1016_v7 = vld [vmem:[#allocation8 + $0xf08] sm:$0xff] }
 0x1ba   :  { %3940 = vmatprep.subr.bf16.mxu1 %v5482_v40  ;;  %v5434_v40 = vcombine.high %v912_v33, %v916_v8  ;;  %v880_v19 = vld [vmem:[#allocation8 + $0xac8] sm:$0xff] }
 0x1bb   :  { %v884_v20 = vld [vmem:[#allocation8 + $0xae8] sm:$0xff] }
 0x1bc   :  { %3900 = vmatpush1.bf16.msra.mxu0 %v5353_v50  ;;  %v1036_v50 = vld [vmem:[#allocation8 + $0xfa8] sm:$0xff] }
 0x1bd   :  { %3941 = vmatpush1.bf16.msra.mxu1 %v5481_v51  ;;  %3901 = vmatprep.subr.bf16.mxu0 %v5346_v52  ;;  %v5433_v51 = vcombine.low %v912_v33, %v916_v8  ;;  %v5561_v52 = vcombine.low %v1040_v35, %v1044_v3  ;;  %v5554_v55 = vcombine.high %v1032_v49, %v1036_v50  ;;  %v1008_v21 = vld [vmem:[#allocation8 + $0xec8] sm:$0xff] }
 0x1be   :  { %3942 = vmatprep.subr.bf16.mxu1 %v5474_v54  ;;  %v5426_v54 = vcombine.high %v904_v46, %v908_v48  ;;  %v872_v26 = vld [vmem:[#allocation8 + $0xa88] sm:$0xff] }
 0x1bf   :  { %v876_v27 = vld [vmem:[#allocation8 + $0xaa8] sm:$0xff] }
 0x1c0   :  { %3902 = vmatpush1.bf16.msra.mxu0 %v5345_v62  ;;  %v1028_v62 = vld [vmem:[#allocation8 + $0xf68] sm:$0xff] }
 0x1c1   :  { %3943 = vmatpush1.bf16.msra.mxu1 %v5473_v63  ;;  %3903 = vmatprep.subr.bf16.mxu0 %v5338_v1  ;;  %v5425_v63 = vcombine.low %v904_v46, %v908_v48  ;;  %v5553_v1 = vcombine.low %v1032_v49, %v1036_v50  ;;  %v5546_v4 = vcombine.high %v1024_v60, %v1028_v62  ;;  %v1000_v28 = vld [vmem:[#allocation8 + $0xe88] sm:$0xff] }
 0x1c2   :  { %3944 = vmatprep.subr.bf16.mxu1 %v5466_v2  ;;  %v5418_v2 = vcombine.high %v896_v57, %v900_v58  ;;  %v864_v8 = vld [vmem:[#allocation8 + $0xa48] sm:$0xff] }
 0x1c3   :  { %v868_v35 = vld [vmem:[#allocation8 + $0xa68] sm:$0xff] }
 0x1c4   :  { %3904 = vmatpush1.bf16.msra.mxu0 %v5337_v9  ;;  %v1020_v9 = vld [vmem:[#allocation8 + $0xf28] sm:$0xff] }
 0x1c5   :  { %3945 = vmatpush1.bf16.msra.mxu1 %v5465_v0  ;;  %3905 = vmatprep.subr.bf16.mxu0 %v5330_v10  ;;  %v5417_v0 = vcombine.low %v896_v57, %v900_v58  ;;  %v5545_v10 = vcombine.low %v1024_v60, %v1028_v62  ;;  %v5538_v18 = vcombine.high %v1016_v7, %v1020_v9  ;;  %v992_v3 = vld [vmem:[#allocation8 + $0xe48] sm:$0xff]  ;;  %v593_v58 = vld [vmem:[#allocation8 + $0x1d0] sm:$0xff] }
 0x1c6   :  { %3946 = vmatprep.subr.bf16.mxu1 %v5458_v11  ;;  %v5410_v11 = vcombine.high %v888_v5, %v892_v6  ;;  %v856_v48 = vld [vmem:[#allocation8 + $0xa08] sm:$0xff]  ;;  %v597_v60 = vld [vmem:[#allocation8 + $0x1f0] sm:$0xff] }
 0x1c7   :  { %v860_v49 = vld [vmem:[#allocation8 + $0xa28] sm:$0xff]  ;;  %v721_v62 = vld [vmem:[#allocation8 + $0x5d0] sm:$0xff] }
 0x1c8   :  { %3906 = vmatpush1.bf16.msra.mxu0 %v5329_v22  ;;  %v1012_v22 = vld [vmem:[#allocation8 + $0xee8] sm:$0xff] }
 0x1c9   :  { %3947 = vmatpush1.bf16.msra.mxu1 %v5457_v23  ;;  %3907 = vmatprep.subr.bf16.mxu0 %v5322_v24  ;;  %v5409_v23 = vcombine.low %v888_v5, %v892_v6  ;;  %v5537_v24 = vcombine.low %v1016_v7, %v1020_v9  ;;  %v5530_v14 = vcombine.high %v1008_v21, %v1012_v22  ;;  %v984_v50 = vld [vmem:[#allocation8 + $0xe08] sm:$0xff]  ;;  %v6140_v5 = vld [vmem:[#allocation10] sm:$0xff]  ;;  %v585_v7 = vld [vmem:[#allocation8 + $0x190] sm:$0xff] }
 0x1ca   :  { %3948 = vmatprep.subr.bf16.mxu1 %v5450_v25  ;;  %v5402_v25 = vcombine.high %v880_v19, %v884_v20  ;;  %v589_v9 = vld [vmem:[#allocation8 + $0x1b0] sm:$0xff] }
 0x1cc   :  { %3908 = vmatpush1.bf16.msra.mxu0 %v5321_v29  ;;  %v1004_v29 = vld [vmem:[#allocation8 + $0xea8] sm:$0xff] }
 0x1cd   :  { %3949 = vmatpush1.bf16.msra.mxu1 %v5449_v30  ;;  %3909 = vmatprep.subr.bf16.mxu0 %v5314_v31  ;;  %v5401_v30 = vcombine.low %v880_v19, %v884_v20  ;;  %v5529_v31 = vcombine.low %v1008_v21, %v1012_v22  ;;  %v5522_v33 = vcombine.high %v1000_v28, %v1004_v29  ;;  %v577_v22 = vld [vmem:[#allocation8 + $0x150] sm:$0xff] }
 0x1ce   :  { %3950 = vmatprep.subr.bf16.mxu1 %v5442_v32  ;;  %v5394_v32 = vcombine.high %v872_v26, %v876_v27  ;;  %v1056_v20 = vrot.slane %v6140_v5, %v157_v16  ;;  %v5108_v21 = vcombine.high %v585_v7, %v589_v9 }
 0x1d0   :  { %3910 = vmatpush1.bf16.msra.mxu0 %v5313_v36  ;;  %v996_v36 = vld [vmem:[#allocation8 + $0xe68] sm:$0xff] }
 0x1d1   :  { %3951 = vmatpush1.bf16.msra.mxu1 %v5441_v37  ;;  %3911 = vmatprep.subr.bf16.mxu0 %v5434_v40  ;;  %v5393_v37 = vcombine.low %v872_v26, %v876_v27  ;;  %v5521_v40 = vcombine.low %v1000_v28, %v1004_v29  ;;  %v5514_v46 = vcombine.high %v992_v3, %v996_v36  ;;  %v709_v26 = vld [vmem:[#allocation8 + $0x570] sm:$0xff] }
 0x1d2   :  { %3952 = vmatprep.subr.bf16.mxu1 %v5562_v43  ;;  %v5386_v43 = vcombine.high %v864_v8, %v868_v35  ;;  %v5107_v28 = vcombine.low %v585_v7, %v589_v9  ;;  %v681_v7 = vld [vmem:[#allocation8 + $0x490] sm:$0xff] }
 0x1d3   :  { %v685_v9 = vld [vmem:[#allocation8 + $0x4b0] sm:$0xff] }
 0x1d4   :  { %3912 = vmatpush2.bf16.msra.mxu0 %v5433_v51  ;;  %v988_v51 = vld [vmem:[#allocation8 + $0xe28] sm:$0xff] }
 0x1d5   :  { %3953 = vmatpush2.bf16.msra.mxu1 %v5561_v52  ;;  %3913 = vmatprep.subr.bf16.mxu0 %v5426_v54  ;;  %v5385_v52 = vcombine.low %v864_v8, %v868_v35  ;;  %v5513_v54 = vcombine.low %v992_v3, %v996_v36  ;;  %v5506_v57 = vcombine.high %v984_v50, %v988_v51  ;;  %v569_v35 = vld [vmem:[#allocation8 + $0x110] sm:$0xff] }
 0x1d6   :  { %3954 = vmatprep.subr.bf16.mxu1 %v5554_v55  ;;  %v5378_v55 = vcombine.high %v856_v48, %v860_v49  ;;  %v573_v3 = vld [vmem:[#allocation8 + $0x130] sm:$0xff] }
 0x1d8   :  { %3914 = vmatpush2.bf16.msra.mxu0 %v5425_v63  ;;  %v725_v63 = vld [vmem:[#allocation8 + $0x5f0] sm:$0xff] }
 0x1d9   :  { %3955 = vmatpush2.bf16.msra.mxu1 %v5553_v1  ;;  %3915 = vmatprep.subr.bf16.mxu0 %v5418_v2  ;;  %v5377_v1 = vcombine.low %v856_v48, %v860_v49  ;;  %v5505_v2 = vcombine.low %v984_v50, %v988_v51  ;;  %v5244_v6 = vcombine.high %v721_v62, %v725_v63 }
 0x1da   :  { %3956 = vmatprep.subr.bf16.mxu1 %v5546_v4  ;;  %v5116_v4 = vcombine.high %v593_v58, %v597_v60  ;;  %v5243_v19 = vcombine.low %v721_v62, %v725_v63  ;;  %v5092_v51 = vcombine.high %v569_v35, %v573_v3  ;;  %v5091_v62 = vcombine.low %v569_v35, %v573_v3  ;;  %v785_v35 = vld [vmem:[#allocation8 + $0x7d0] sm:$0xff] }
 0x1db   :  { %v789_v3 = vld [vmem:[#allocation8 + $0x7f0] sm:$0xff] }
 0x1dc   :  { %3916 = vmatpush2.bf16.msra.mxu0 %v5417_v0  ;;  %v5115_v0 = vcombine.low %v593_v58, %v597_v60  ;;  %v689_v58 = vld [vmem:[#allocation8 + $0x4d0] sm:$0xff] }
 0x1dd   :  { %3957 = vmatpush2.bf16.msra.mxu1 %v5545_v10  ;;  %3917 = vmatprep.subr.bf16.mxu0 %v5410_v11  ;;  %v1052_v10 = vrot.slane %v6140_v5, %v153_v13  ;;  %v713_v11 = vld [vmem:[#allocation8 + $0x590] sm:$0xff] }
 0x1de   :  { %3958 = vmatprep.subr.bf16.mxu1 %v5538_v18  ;;  %v717_v18 = vld [vmem:[#allocation8 + $0x5b0] sm:$0xff] }
 0x1df   :  { %v5235_v16 = vcombine.low %v713_v11, %v717_v18  ;;  %v693_v60 = vld [vmem:[#allocation8 + $0x4f0] sm:$0xff] }
 0x1e0   :  { %3918 = vmatpush2.bf16.msra.mxu0 %v5409_v23  ;;  %v581_v23 = vld [vmem:[#allocation8 + $0x170] sm:$0xff] }
 0x1e1   :  { %3959 = vmatpush2.bf16.msra.mxu1 %v5537_v24  ;;  %3919 = vmatprep.subr.bf16.mxu0 %v5402_v25  ;;  %v5236_v25 = vcombine.high %v713_v11, %v717_v18  ;;  %v5099_v48 = vcombine.low %v577_v22, %v581_v23  ;;  %v5204_v18 = vcombine.high %v681_v7, %v685_v9 }
 0x1e2   :  { %3960 = vmatprep.subr.bf16.mxu1 %v5530_v14  ;;  %v705_v14 = vld [vmem:[#allocation8 + $0x550] sm:$0xff] }
 0x1e3   :  { %v5228_v8 = vcombine.high %v705_v14, %v709_v26  ;;  %v5227_v50 = vcombine.low %v705_v14, %v709_v26  ;;  %v537_v26 = vld [vmem:[#allocation8 + $0x10] sm:$0xff] }
 0x1e4   :  { %3920 = vmatpush2.bf16.msra.mxu0 %v5401_v30  ;;  %v5100_v30 = vcombine.high %v577_v22, %v581_v23  ;;  %v677_v22 = vld [vmem:[#allocation8 + $0x470] sm:$0xff] }
 0x1e5   :  { %3961 = vmatpush2.bf16.msra.mxu1 %v5529_v31  ;;  %3921 = vmatprep.subr.bf16.mxu0 %v5394_v32 }
 0x1e6   :  { %3962 = vmatprep.subr.bf16.mxu1 %v5522_v33 }
 0x1e8   :  { %3922 = vmatpush2.bf16.msra.mxu0 %v5393_v37  ;;  %v697_v37 = vld [vmem:[#allocation8 + $0x510] sm:$0xff] }
 0x1e9   :  { %3963 = vmatpush2.bf16.msra.mxu1 %v5521_v40  ;;  %3923 = vmatprep.subr.bf16.mxu0 %v5386_v43  ;;  %v701_v40 = vld [vmem:[#allocation8 + $0x530] sm:$0xff] }
 0x1ea   :  { %3964 = vmatprep.subr.bf16.mxu1 %v5514_v46  ;;  %v5219_v63 = vcombine.low %v697_v37, %v701_v40 }
 0x1ec   :  { %3924 = vmatpush2.bf16.msra.mxu0 %v5385_v52 }
 0x1ed   :  { %3965 = vmatpush2.bf16.msra.mxu1 %v5513_v54  ;;  %3925 = vmatprep.subr.bf16.mxu0 %v5378_v55  ;;  %v5220_v54 = vcombine.high %v697_v37, %v701_v40  ;;  %v561_v55 = vld [vmem:[#allocation8 + $0xd0] sm:$0xff] }
 0x1ee   :  { %3966 = vmatprep.subr.bf16.mxu1 %v5506_v57  ;;  %v565_v57 = vld [vmem:[#allocation8 + $0xf0] sm:$0xff] }
 0x1f0   :  { %3926 = vmatpush2.bf16.msra.mxu0 %v5377_v1  ;;  %v5084_v1 = vcombine.high %v561_v55, %v565_v57 }
 0x1f1   :  { %3967 = vmatpush2.bf16.msra.mxu1 %v5505_v2  ;;  %3977 = vmatprep.subr.bf16.mxu0 %v5116_v4  ;;  %v5212_v2 = vcombine.high %v689_v58, %v693_v60  ;;  %v553_v4 = vld [vmem:[#allocation8 + $0x90] sm:$0xff] }
 0x1f2   :  { %4018 = vmatprep.subr.bf16.mxu1 %v5244_v6  ;;  %v557_v6 = vld [vmem:[#allocation8 + $0xb0] sm:$0xff] }
 0x1f3   :  { %3928 = vmatmul.mubr.bf16.vlgmr.msra.gmra.mxu0 %v6130_v47  ;;  %v3683_v24 = vpop.f32.mrf.mxu0  ;;  %v3724_v27 = vpop.f32.mrf.mxu1  ;;  %v5076_v11 = vcombine.high %v553_v4, %v557_v6  ;;  %v5075_v23 = vcombine.low %v553_v4, %v557_v6 }
 0x1f4   :  { %3969 = vmatmul.mubr.bf16.vlgmr.msra.gmra.mxu1 %v6128_v39  ;;  %v3684_v13 = vadd.f32 %v3683_v24, %v1052_v10  ;;  %3978 = vmatpush1.bf16.msra.mxu0 %v5115_v0  ;;  %v5083_v0 = vcombine.low %v561_v55, %v565_v57  ;;  %v5211_v10 = vcombine.low %v689_v58, %v693_v60  ;;  %v641_v58 = vld [vmem:[#allocation8 + $0x350] sm:$0xff] }
 0x1f5   :  { %4009 = vmatprep.mubr.bf16.mxu0 %v6090_v42  ;;  %4019 = vmatpush1.bf16.msra.mxu1 %v5243_v19  ;;  %v3685_v29 = vpop.f32.mrf.mxu0  ;;  %v3726_v33 = vpop.f32.mrf.mxu1  ;;  %v545_v19 = vld [vmem:[#allocation8 + $0x50] sm:$0xff]  ;;  %v5203_v24 = vcombine.low %v681_v7, %v685_v9 }
 0x1f6   :  { %v6151_v31 = vadd.f32 %v3724_v27, %v3684_v13  ;;  %4050 = vmatprep.mubr.bf16.mxu1 %v6094_v45  ;;  %v3686_v32 = vadd.f32 %v3685_v29, %v1056_v20  ;;  %3979 = vmatprep.subr.bf16.mxu0 %v5108_v21  ;;  %v549_v20 = vld [vmem:[#allocation8 + $0x70] sm:$0xff] }
 0x1f7   :  { %4020 = vmatprep.subr.bf16.mxu1 %v5236_v25  ;;  %v3687_v36 = vpop.f32.mrf.mxu0  ;;  %v3728_v46 = vpop.f32.mrf.mxu1  ;;  %v673_v21 = vld [vmem:[#allocation8 + $0x450] sm:$0xff]  ;;  %v5068_v25 = vcombine.high %v545_v19, %v549_v20  ;;  %v5067_v29 = vcombine.low %v545_v19, %v549_v20 }
 0x1f8   :  { %v6154_v43 = vadd.f32 %v3726_v33, %v3686_v32  ;;  %3980 = vmatpush1.bf16.msra.mxu0 %v5107_v28  ;;  %v5196_v14 = vcombine.high %v673_v21, %v677_v22  ;;  %v541_v13 = vld [vmem:[#allocation8 + $0x30] sm:$0xff]  ;;  %v5308_v46 = vcombine.high %v785_v35, %v789_v3 }
 0x1f9   :  { %4021 = vmatpush1.bf16.msra.mxu1 %v5235_v16  ;;  %v3688_v49 = vpop.f32.mrf.mxu0  ;;  %3981 = vmatprep.subr.bf16.mxu0 %v5100_v30  ;;  %v3729_v52 = vpop.f32.mrf.mxu1  ;;  %v665_v27 = vld [vmem:[#allocation8 + $0x410] sm:$0xff]  ;;  %v5195_v16 = vcombine.low %v673_v21, %v677_v22  ;;  %v5060_v30 = vcombine.high %v537_v26, %v541_v13  ;;  %v5059_v36 = vcombine.low %v537_v26, %v541_v13 }
 0x1fa   :  { %4022 = vmatprep.subr.bf16.mxu1 %v5228_v8  ;;  %v669_v28 = vld [vmem:[#allocation8 + $0x430] sm:$0xff] }
 0x1fb   :  { %v5188_v32 = vcombine.high %v665_v27, %v669_v28  ;;  %v657_v33 = vld [vmem:[#allocation8 + $0x3d0] sm:$0xff]  ;;  %v5187_v37 = vcombine.low %v665_v27, %v669_v28 }
 0x1fc   :  { %3982 = vmatpush1.bf16.msra.mxu0 %v5099_v48  ;;  %v661_v8 = vld [vmem:[#allocation8 + $0x3f0] sm:$0xff] }
 0x1fd   :  { %4023 = vmatpush1.bf16.msra.mxu1 %v5227_v50  ;;  %3983 = vmatprep.subr.bf16.mxu0 %v5092_v51  ;;  %v5180_v40 = vcombine.high %v657_v33, %v661_v8  ;;  %v649_v48 = vld [vmem:[#allocation8 + $0x390] sm:$0xff]  ;;  %v5179_v52 = vcombine.low %v657_v33, %v661_v8 }
 0x1fe   :  { %4024 = vmatprep.subr.bf16.mxu1 %v5220_v54  ;;  %v653_v49 = vld [vmem:[#allocation8 + $0x3b0] sm:$0xff]  ;;  %v5307_v54 = vcombine.low %v785_v35, %v789_v3 }
 0x1ff   :  { %v777_v50 = vld [vmem:[#allocation8 + $0x790] sm:$0xff]  ;;  %v5172_v55 = vcombine.high %v649_v48, %v653_v49 }
 0x200   :  { %3984 = vmatpush1.bf16.msra.mxu0 %v5091_v62  ;;  %v781_v51 = vld [vmem:[#allocation8 + $0x7b0] sm:$0xff] }
 0x201   :  { %4025 = vmatpush1.bf16.msra.mxu1 %v5219_v63  ;;  %3985 = vmatprep.subr.bf16.mxu0 %v5084_v1  ;;  %v5300_v57 = vcombine.high %v777_v50, %v781_v51  ;;  %v645_v60 = vld [vmem:[#allocation8 + $0x370] sm:$0xff]  ;;  %v5171_v1 = vcombine.low %v649_v48, %v653_v49 }
 0x202   :  { %4026 = vmatprep.subr.bf16.mxu1 %v5212_v2  ;;  %v769_v62 = vld [vmem:[#allocation8 + $0x750] sm:$0xff]  ;;  %v5299_v2 = vcombine.low %v777_v50, %v781_v51  ;;  %v5164_v4 = vcombine.high %v641_v58, %v645_v60 }
 0x203   :  { %v773_v63 = vld [vmem:[#allocation8 + $0x770] sm:$0xff] }
 0x204   :  { %3986 = vmatpush1.bf16.msra.mxu0 %v5083_v0  ;;  %v5292_v6 = vcombine.high %v769_v62, %v773_v63  ;;  %v633_v7 = vld [vmem:[#allocation8 + $0x310] sm:$0xff] }
 0x205   :  { %4027 = vmatpush1.bf16.msra.mxu1 %v5211_v10  ;;  %3987 = vmatprep.subr.bf16.mxu0 %v5076_v11  ;;  %v637_v9 = vld [vmem:[#allocation8 + $0x330] sm:$0xff]  ;;  %v5163_v11 = vcombine.low %v641_v58, %v645_v60 }
 0x206   :  { %4028 = vmatprep.subr.bf16.mxu1 %v5204_v18  ;;  %v761_v0 = vld [vmem:[#allocation8 + $0x710] sm:$0xff]  ;;  %v5291_v18 = vcombine.low %v769_v62, %v773_v63  ;;  %v5156_v19 = vcombine.high %v633_v7, %v637_v9 }
 0x207   :  { %v765_v10 = vld [vmem:[#allocation8 + $0x730] sm:$0xff] }
 0x208   :  { %3988 = vmatpush1.bf16.msra.mxu0 %v5075_v23  ;;  %v5284_v20 = vcombine.high %v761_v0, %v765_v10  ;;  %v625_v21 = vld [vmem:[#allocation8 + $0x2d0] sm:$0xff] }
 0x209   :  { %4029 = vmatpush1.bf16.msra.mxu1 %v5203_v24  ;;  %3989 = vmatprep.subr.bf16.mxu0 %v5068_v25  ;;  %v629_v22 = vld [vmem:[#allocation8 + $0x2f0] sm:$0xff]  ;;  %v5155_v25 = vcombine.low %v633_v7, %v637_v9 }
 0x20a   :  { %4030 = vmatprep.subr.bf16.mxu1 %v5196_v14  ;;  %v753_v23 = vld [vmem:[#allocation8 + $0x6d0] sm:$0xff]  ;;  %v5283_v14 = vcombine.low %v761_v0, %v765_v10  ;;  %v5148_v26 = vcombine.high %v625_v21, %v629_v22 }
 0x20b   :  { %v757_v24 = vld [vmem:[#allocation8 + $0x6f0] sm:$0xff] }
 0x20c   :  { %3990 = vmatpush1.bf16.msra.mxu0 %v5067_v29  ;;  %v5276_v13 = vcombine.high %v753_v23, %v757_v24  ;;  %v617_v27 = vld [vmem:[#allocation8 + $0x290] sm:$0xff] }
 0x20d   :  { %4031 = vmatpush1.bf16.msra.mxu1 %v5195_v16  ;;  %3991 = vmatprep.subr.bf16.mxu0 %v5060_v30  ;;  %v621_v28 = vld [vmem:[#allocation8 + $0x2b0] sm:$0xff]  ;;  %v5147_v30 = vcombine.low %v625_v21, %v629_v22 }
 0x20e   :  { %4032 = vmatprep.subr.bf16.mxu1 %v5188_v32  ;;  %v745_v29 = vld [vmem:[#allocation8 + $0x690] sm:$0xff]  ;;  %v5275_v32 = vcombine.low %v753_v23, %v757_v24  ;;  %v5140_v33 = vcombine.high %v617_v27, %v621_v28 }
 0x20f   :  { %v749_v16 = vld [vmem:[#allocation8 + $0x6b0] sm:$0xff] }
 0x210   :  { %3992 = vmatpush1.bf16.msra.mxu0 %v5059_v36  ;;  %v5268_v8 = vcombine.high %v745_v29, %v749_v16  ;;  %v609_v35 = vld [vmem:[#allocation8 + $0x250] sm:$0xff] }
 0x211   :  { %4033 = vmatpush1.bf16.msra.mxu1 %v5187_v37  ;;  %3993 = vmatprep.subr.bf16.mxu0 %v5180_v40  ;;  %v613_v3 = vld [vmem:[#allocation8 + $0x270] sm:$0xff]  ;;  %v5139_v40 = vcombine.low %v617_v27, %v621_v28 }
 0x212   :  { %4034 = vmatprep.subr.bf16.mxu1 %v5308_v46  ;;  %v737_v36 = vld [vmem:[#allocation8 + $0x650] sm:$0xff]  ;;  %v5267_v46 = vcombine.low %v745_v29, %v749_v16  ;;  %v5132_v48 = vcombine.high %v609_v35, %v613_v3 }
 0x213   :  { %v741_v37 = vld [vmem:[#allocation8 + $0x670] sm:$0xff] }
 0x214   :  { %3994 = vmatpush2.bf16.msra.mxu0 %v5179_v52  ;;  %v5260_v49 = vcombine.high %v737_v36, %v741_v37  ;;  %v601_v50 = vld [vmem:[#allocation8 + $0x210] sm:$0xff] }
 0x215   :  { %4035 = vmatpush2.bf16.msra.mxu1 %v5307_v54  ;;  %3995 = vmatprep.subr.bf16.mxu0 %v5172_v55  ;;  %v605_v51 = vld [vmem:[#allocation8 + $0x230] sm:$0xff]  ;;  %v5131_v55 = vcombine.low %v609_v35, %v613_v3 }
 0x216   :  { %4036 = vmatprep.subr.bf16.mxu1 %v5300_v57  ;;  %v729_v52 = vld [vmem:[#allocation8 + $0x610] sm:$0xff]  ;;  %v5259_v57 = vcombine.low %v737_v36, %v741_v37  ;;  %v5124_v58 = vcombine.high %v601_v50, %v605_v51 }
 0x217   :  { %v733_v54 = vld [vmem:[#allocation8 + $0x630] sm:$0xff] }
 0x218   :  { %3996 = vmatpush2.bf16.msra.mxu0 %v5171_v1  ;;  %v5252_v60 = vcombine.high %v729_v52, %v733_v54  ;;  %v849_v62 = vld [vmem:[#allocation8 + $0x9d0] sm:$0xff] }
 0x219   :  { %4037 = vmatpush2.bf16.msra.mxu1 %v5299_v2  ;;  %3997 = vmatprep.subr.bf16.mxu0 %v5164_v4  ;;  %v853_v63 = vld [vmem:[#allocation8 + $0x9f0] sm:$0xff]  ;;  %v5123_v4 = vcombine.low %v601_v50, %v605_v51 }
 0x21a   :  { %4038 = vmatprep.subr.bf16.mxu1 %v5292_v6  ;;  %v977_v1 = vld [vmem:[#allocation8 + $0xdd0] sm:$0xff]  ;;  %v5251_v6 = vcombine.low %v729_v52, %v733_v54  ;;  %v5372_v7 = vcombine.high %v849_v62, %v853_v63 }
 0x21b   :  { %v981_v2 = vld [vmem:[#allocation8 + $0xdf0] sm:$0xff] }
 0x21c   :  { %3998 = vmatpush2.bf16.msra.mxu0 %v5163_v11  ;;  %v5500_v9 = vcombine.high %v977_v1, %v981_v2  ;;  %v841_v0 = vld [vmem:[#allocation8 + $0x990] sm:$0xff]  ;;  %v5371_v11 = vcombine.low %v849_v62, %v853_v63 }
 0x21d   :  { %4039 = vmatpush2.bf16.msra.mxu1 %v5291_v18  ;;  %3999 = vmatprep.subr.bf16.mxu0 %v5156_v19  ;;  %v845_v10 = vld [vmem:[#allocation8 + $0x9b0] sm:$0xff] }
 0x21e   :  { %4040 = vmatprep.subr.bf16.mxu1 %v5284_v20  ;;  %v969_v18 = vld [vmem:[#allocation8 + $0xd90] sm:$0xff]  ;;  %v5499_v20 = vcombine.low %v977_v1, %v981_v2  ;;  %v5364_v21 = vcombine.high %v841_v0, %v845_v10  ;;  %v5363_v28 = vcombine.low %v841_v0, %v845_v10 }
 0x21f   :  { %v973_v19 = vld [vmem:[#allocation8 + $0xdb0] sm:$0xff] }
 0x220   :  { %4000 = vmatpush2.bf16.msra.mxu0 %v5155_v25  ;;  %v833_v22 = vld [vmem:[#allocation8 + $0x950] sm:$0xff]  ;;  %v5492_v25 = vcombine.high %v969_v18, %v973_v19  ;;  %v5491_v16 = vcombine.low %v969_v18, %v973_v19 }
 0x221   :  { %4041 = vmatpush2.bf16.msra.mxu1 %v5283_v14  ;;  %4001 = vmatprep.subr.bf16.mxu0 %v5148_v26  ;;  %v837_v23 = vld [vmem:[#allocation8 + $0x970] sm:$0xff] }
 0x222   :  { %4042 = vmatprep.subr.bf16.mxu1 %v5276_v13  ;;  %v961_v14 = vld [vmem:[#allocation8 + $0xd50] sm:$0xff] }
 0x223   :  { %v965_v26 = vld [vmem:[#allocation8 + $0xd70] sm:$0xff] }
 0x224   :  { %4002 = vmatpush2.bf16.msra.mxu0 %v5147_v30  ;;  %v5356_v30 = vcombine.high %v833_v22, %v837_v23  ;;  %v825_v35 = vld [vmem:[#allocation8 + $0x910] sm:$0xff]  ;;  %v5483_v51 = vcombine.low %v961_v14, %v965_v26 }
 0x225   :  { %4043 = vmatpush2.bf16.msra.mxu1 %v5275_v32  ;;  %4003 = vmatprep.subr.bf16.mxu0 %v5140_v33  ;;  %v829_v3 = vld [vmem:[#allocation8 + $0x930] sm:$0xff] }
 0x226   :  { %4044 = vmatprep.subr.bf16.mxu1 %v5268_v8  ;;  %v953_v37 = vld [vmem:[#allocation8 + $0xd10] sm:$0xff]  ;;  %v5348_v52 = vcombine.high %v825_v35, %v829_v3  ;;  %v5347_v62 = vcombine.low %v825_v35, %v829_v3 }
 0x227   :  { %v801_v19 = vld [vmem:[#allocation8 + $0x850] sm:$0xff] }
 0x228   :  { %4004 = vmatpush2.bf16.msra.mxu0 %v5139_v40  ;;  %v957_v40 = vld [vmem:[#allocation8 + $0xd30] sm:$0xff] }
 0x229   :  { %4045 = vmatpush2.bf16.msra.mxu1 %v5267_v46  ;;  %4005 = vmatprep.subr.bf16.mxu0 %v5132_v48  ;;  %v5476_v54 = vcombine.high %v953_v37, %v957_v40  ;;  %v5475_v63 = vcombine.low %v953_v37, %v957_v40  ;;  %v1041_v35 = vld [vmem:[#allocation8 + $0xfd0] sm:$0xff] }
 0x22a   :  { %4046 = vmatprep.subr.bf16.mxu1 %v5260_v49  ;;  %v5355_v49 = vcombine.low %v833_v22, %v837_v23  ;;  %v933_v22 = vld [vmem:[#allocation8 + $0xc70] sm:$0xff] }
 0x22b   :  { %v1045_v3 = vld [vmem:[#allocation8 + $0xff0] sm:$0xff] }
 0x22c   :  { %4006 = vmatpush2.bf16.msra.mxu0 %v5131_v55  ;;  %v817_v55 = vld [vmem:[#allocation8 + $0x8d0] sm:$0xff] }
 0x22d   :  { %4047 = vmatpush2.bf16.msra.mxu1 %v5259_v57  ;;  %4007 = vmatprep.subr.bf16.mxu0 %v5124_v58  ;;  %v821_v57 = vld [vmem:[#allocation8 + $0x8f0] sm:$0xff] }
 0x22e   :  { %4048 = vmatprep.subr.bf16.mxu1 %v5252_v60  ;;  %v945_v58 = vld [vmem:[#allocation8 + $0xcd0] sm:$0xff]  ;;  %v5340_v1 = vcombine.high %v817_v55, %v821_v57  ;;  %v5339_v0 = vcombine.low %v817_v55, %v821_v57 }
 0x22f   :  { %v949_v60 = vld [vmem:[#allocation8 + $0xcf0] sm:$0xff] }
 0x230   :  { %4008 = vmatpush2.bf16.msra.mxu0 %v5123_v4  ;;  %v5468_v2 = vcombine.high %v945_v58, %v949_v60  ;;  %v809_v4 = vld [vmem:[#allocation8 + $0x890] sm:$0xff]  ;;  %v5467_v10 = vcombine.low %v945_v58, %v949_v60 }
 0x231   :  { %4049 = vmatpush2.bf16.msra.mxu1 %v5251_v6  ;;  %4059 = vmatprep.subr.bf16.mxu0 %v5372_v7  ;;  %v813_v6 = vld [vmem:[#allocation8 + $0x8b0] sm:$0xff] }
 0x232   :  { %4100 = vmatprep.subr.bf16.mxu1 %v5500_v9  ;;  %v937_v7 = vld [vmem:[#allocation8 + $0xc90] sm:$0xff]  ;;  %v5331_v23 = vcombine.low %v809_v4, %v813_v6 }
 0x233   :  { %v3765_v24 = vpop.f32.mrf.mxu0  ;;  %4010 = vmatmul.mubr.bf16.vlgmr.msra.gmra.mxu0 %v6092_v44  ;;  %v3806_v27 = vpop.f32.mrf.mxu1  ;;  %v941_v9 = vld [vmem:[#allocation8 + $0xcb0] sm:$0xff] }
 0x234   :  { %v3766_v13 = vadd.f32 %v3765_v24, %v6151_v31  ;;  %4051 = vmatmul.mubr.bf16.vlgmr.msra.gmra.mxu1 %v6088_v41  ;;  %4060 = vmatpush1.bf16.msra.mxu0 %v5371_v11  ;;  %v5484_v31 = vcombine.high %v961_v14, %v965_v26  ;;  %v5332_v11 = vcombine.high %v809_v4, %v813_v6  ;;  %v793_v26 = vld [vmem:[#allocation8 + $0x810] sm:$0xff] }
 0x235   :  { %4091 = vmatprep.mubr.bf16.mxu0 %v6112_v34  ;;  %4101 = vmatpush1.bf16.msra.mxu1 %v5499_v20  ;;  %v3767_v29 = vpop.f32.mrf.mxu0  ;;  %v3808_v8 = vpop.f32.mrf.mxu1  ;;  %v5460_v18 = vcombine.high %v937_v7, %v941_v9  ;;  %v805_v20 = vld [vmem:[#allocation8 + $0x870] sm:$0xff]  ;;  %v5459_v24 = vcombine.low %v937_v7, %v941_v9 }
 0x236   :  { %v6160_v32 = vadd.f32 %v3806_v27, %v3766_v13  ;;  %4132 = vmatprep.mubr.bf16.mxu1 %v6114_v38  ;;  %v3768_v33 = vadd.f32 %v3767_v29, %v6154_v43  ;;  %4061 = vmatprep.subr.bf16.mxu0 %v5364_v21  ;;  %v929_v21 = vld [vmem:[#allocation8 + $0xc50] sm:$0xff]  ;;  %v5323_v29 = vcombine.low %v801_v19, %v805_v20 }
 0x237   :  { %v3769_v36 = vpop.f32.mrf.mxu0  ;;  %4102 = vmatprep.subr.bf16.mxu1 %v5492_v25  ;;  %v3810_v48 = vpop.f32.mrf.mxu1  ;;  %v5324_v25 = vcombine.high %v801_v19, %v805_v20  ;;  %v5452_v14 = vcombine.high %v929_v21, %v933_v22  ;;  %v797_v13 = vld [vmem:[#allocation8 + $0x830] sm:$0xff] }
 0x238   :  { %v6164_v46 = vadd.f32 %v3808_v8, %v3768_v33  ;;  %4062 = vmatpush1.bf16.msra.mxu0 %v5363_v28  ;;  %v921_v27 = vld [vmem:[#allocation8 + $0xc10] sm:$0xff]  ;;  %v5315_v36 = vcombine.low %v793_v26, %v797_v13  ;;  %v5564_v48 = vcombine.high %v1041_v35, %v1045_v3 }
 0x239   :  { %4103 = vmatpush1.bf16.msra.mxu1 %v5491_v16  ;;  %v3770_v50 = vpop.f32.mrf.mxu0  ;;  %4063 = vmatprep.subr.bf16.mxu0 %v5356_v30  ;;  %v3811_v43 = vpop.f32.mrf.mxu1  ;;  %v925_v28 = vld [vmem:[#allocation8 + $0xc30] sm:$0xff]  ;;  %v5451_v16 = vcombine.low %v929_v21, %v933_v22  ;;  %v5316_v30 = vcombine.high %v793_v26, %v797_v13 }
 0x23a   :  { %4104 = vmatprep.subr.bf16.mxu1 %v5484_v31  ;;  %v5444_v33 = vcombine.high %v921_v27, %v925_v28  ;;  %v913_v8 = vld [vmem:[#allocation8 + $0xbd0] sm:$0xff]  ;;  %v5443_v37 = vcombine.low %v921_v27, %v925_v28 }
 0x23b   :  { %v917_v31 = vld [vmem:[#allocation8 + $0xbf0] sm:$0xff] }
 0x23c   :  { %4064 = vmatpush1.bf16.msra.mxu0 %v5355_v49  ;;  %v5436_v40 = vcombine.high %v913_v8, %v917_v31  ;;  %v905_v49 = vld [vmem:[#allocation8 + $0xb90] sm:$0xff]  ;;  %v5435_v43 = vcombine.low %v913_v8, %v917_v31 }
 0x23d   :  { %4105 = vmatpush1.bf16.msra.mxu1 %v5483_v51  ;;  %4065 = vmatprep.subr.bf16.mxu0 %v5348_v52  ;;  %v909_v50 = vld [vmem:[#allocation8 + $0xbb0] sm:$0xff] }
 0x23e   :  { %4106 = vmatprep.subr.bf16.mxu1 %v5476_v54  ;;  %v1033_v51 = vld [vmem:[#allocation8 + $0xf90] sm:$0xff]  ;;  %v5563_v54 = vcombine.low %v1041_v35, %v1045_v3  ;;  %v5428_v55 = vcombine.high %v905_v49, %v909_v50 }
 0x23f   :  { %v1037_v52 = vld [vmem:[#allocation8 + $0xfb0] sm:$0xff] }
 0x240   :  { %4066 = vmatpush1.bf16.msra.mxu0 %v5347_v62  ;;  %v5556_v57 = vcombine.high %v1033_v51, %v1037_v52  ;;  %v897_v58 = vld [vmem:[#allocation8 + $0xb50] sm:$0xff] }
 0x241   :  { %4107 = vmatpush1.bf16.msra.mxu1 %v5475_v63  ;;  %4067 = vmatprep.subr.bf16.mxu0 %v5340_v1  ;;  %v901_v60 = vld [vmem:[#allocation8 + $0xb70] sm:$0xff]  ;;  %v5427_v1 = vcombine.low %v905_v49, %v909_v50 }
 0x242   :  { %4108 = vmatprep.subr.bf16.mxu1 %v5468_v2  ;;  %v1025_v62 = vld [vmem:[#allocation8 + $0xf50] sm:$0xff]  ;;  %v5555_v2 = vcombine.low %v1033_v51, %v1037_v52  ;;  %v5420_v4 = vcombine.high %v897_v58, %v901_v60 }
 0x243   :  { %v1029_v63 = vld [vmem:[#allocation8 + $0xf70] sm:$0xff] }
 0x244   :  { %4068 = vmatpush1.bf16.msra.mxu0 %v5339_v0  ;;  %v5548_v6 = vcombine.high %v1025_v62, %v1029_v63  ;;  %v889_v7 = vld [vmem:[#allocation8 + $0xb10] sm:$0xff] }
 0x245   :  { %4109 = vmatpush1.bf16.msra.mxu1 %v5467_v10  ;;  %4069 = vmatprep.subr.bf16.mxu0 %v5332_v11  ;;  %v893_v9 = vld [vmem:[#allocation8 + $0xb30] sm:$0xff]  ;;  %v5419_v11 = vcombine.low %v897_v58, %v901_v60 }
 0x246   :  { %4110 = vmatprep.subr.bf16.mxu1 %v5460_v18  ;;  %v1017_v0 = vld [vmem:[#allocation8 + $0xf10] sm:$0xff]  ;;  %v5547_v18 = vcombine.low %v1025_v62, %v1029_v63  ;;  %v5412_v19 = vcombine.high %v889_v7, %v893_v9  ;;  %v594_v62 = vld [vmem:[#allocation8 + $0x1d8] sm:$0xff] }
 0x247   :  { %v1021_v10 = vld [vmem:[#allocation8 + $0xf30] sm:$0xff]  ;;  %v598_v63 = vld [vmem:[#allocation8 + $0x1f8] sm:$0xff] }
 0x248   :  { %4070 = vmatpush1.bf16.msra.mxu0 %v5331_v23  ;;  %v5540_v20 = vcombine.high %v1017_v0, %v1021_v10  ;;  %v881_v21 = vld [vmem:[#allocation8 + $0xad0] sm:$0xff] }
 0x249   :  { %4111 = vmatpush1.bf16.msra.mxu1 %v5459_v24  ;;  %4071 = vmatprep.subr.bf16.mxu0 %v5324_v25  ;;  %v885_v22 = vld [vmem:[#allocation8 + $0xaf0] sm:$0xff]  ;;  %v5411_v25 = vcombine.low %v889_v7, %v893_v9  ;;  %v5118_v7 = vcombine.high %v594_v62, %v598_v63 }
 0x24a   :  { %4112 = vmatprep.subr.bf16.mxu1 %v5452_v14  ;;  %v1009_v23 = vld [vmem:[#allocation8 + $0xed0] sm:$0xff]  ;;  %v5539_v14 = vcombine.low %v1017_v0, %v1021_v10  ;;  %v5404_v26 = vcombine.high %v881_v21, %v885_v22  ;;  %v586_v0 = vld [vmem:[#allocation8 + $0x198] sm:$0xff] }
 0x24b   :  { %v1013_v24 = vld [vmem:[#allocation8 + $0xef0] sm:$0xff]  ;;  %v590_v10 = vld [vmem:[#allocation8 + $0x1b8] sm:$0xff] }
 0x24c   :  { %4072 = vmatpush1.bf16.msra.mxu0 %v5323_v29  ;;  %v5532_v13 = vcombine.high %v1009_v23, %v1013_v24  ;;  %v873_v27 = vld [vmem:[#allocation8 + $0xa90] sm:$0xff] }
 0x24d   :  { %4113 = vmatpush1.bf16.msra.mxu1 %v5451_v16  ;;  %4073 = vmatprep.subr.bf16.mxu0 %v5316_v30  ;;  %v877_v28 = vld [vmem:[#allocation8 + $0xab0] sm:$0xff]  ;;  %v5403_v30 = vcombine.low %v881_v21, %v885_v22  ;;  %v1064_v22 = vrot.slane %v6140_v5, %v165_v17 }
 0x24e   :  { %4114 = vmatprep.subr.bf16.mxu1 %v5444_v33  ;;  %v1001_v29 = vld [vmem:[#allocation8 + $0xe90] sm:$0xff]  ;;  %v5531_v33 = vcombine.low %v1009_v23, %v1013_v24  ;;  %v5396_v8 = vcombine.high %v873_v27, %v877_v28  ;;  %v5110_v23 = vcombine.high %v586_v0, %v590_v10  ;;  %v578_v24 = vld [vmem:[#allocation8 + $0x158] sm:$0xff] }
 0x24f   :  { %v1005_v16 = vld [vmem:[#allocation8 + $0xeb0] sm:$0xff] }
 0x250   :  { %4074 = vmatpush1.bf16.msra.mxu0 %v5315_v36  ;;  %v5524_v31 = vcombine.high %v1001_v29, %v1005_v16  ;;  %v865_v35 = vld [vmem:[#allocation8 + $0xa50] sm:$0xff] }
 0x251   :  { %4115 = vmatpush1.bf16.msra.mxu1 %v5443_v37  ;;  %4075 = vmatprep.subr.bf16.mxu0 %v5436_v40  ;;  %v869_v3 = vld [vmem:[#allocation8 + $0xa70] sm:$0xff]  ;;  %v5395_v40 = vcombine.low %v873_v27, %v877_v28 }
 0x252   :  { %4116 = vmatprep.subr.bf16.mxu1 %v5564_v48  ;;  %v993_v36 = vld [vmem:[#allocation8 + $0xe50] sm:$0xff]  ;;  %v5523_v48 = vcombine.low %v1001_v29, %v1005_v16  ;;  %v5388_v49 = vcombine.high %v865_v35, %v869_v3  ;;  %v5109_v29 = vcombine.low %v586_v0, %v590_v10 }
 0x253   :  { %v997_v37 = vld [vmem:[#allocation8 + $0xe70] sm:$0xff] }
 0x254   :  { %4076 = vmatpush2.bf16.msra.mxu0 %v5435_v43  ;;  %v5516_v50 = vcombine.high %v993_v36, %v997_v37  ;;  %v857_v51 = vld [vmem:[#allocation8 + $0xa10] sm:$0xff] }
 0x255   :  { %4117 = vmatpush2.bf16.msra.mxu1 %v5563_v54  ;;  %4077 = vmatprep.subr.bf16.mxu0 %v5428_v55  ;;  %v861_v52 = vld [vmem:[#allocation8 + $0xa30] sm:$0xff]  ;;  %v5387_v55 = vcombine.low %v865_v35, %v869_v3  ;;  %v570_v35 = vld [vmem:[#allocation8 + $0x118] sm:$0xff] }
 0x256   :  { %4118 = vmatprep.subr.bf16.mxu1 %v5556_v57  ;;  %v985_v43 = vld [vmem:[#allocation8 + $0xe10] sm:$0xff]  ;;  %v5515_v57 = vcombine.low %v993_v36, %v997_v37  ;;  %v5380_v58 = vcombine.high %v857_v51, %v861_v52  ;;  %v574_v3 = vld [vmem:[#allocation8 + $0x138] sm:$0xff] }
 0x257   :  { %v989_v54 = vld [vmem:[#allocation8 + $0xe30] sm:$0xff]  ;;  %v698_v37 = vld [vmem:[#allocation8 + $0x518] sm:$0xff] }
 0x258   :  { %4078 = vmatpush2.bf16.msra.mxu0 %v5427_v1  ;;  %v5508_v60 = vcombine.high %v985_v43, %v989_v54  ;;  %v722_v1 = vld [vmem:[#allocation8 + $0x5d8] sm:$0xff] }
 0x259   :  { %4119 = vmatpush2.bf16.msra.mxu1 %v5555_v2  ;;  %4079 = vmatprep.subr.bf16.mxu0 %v5420_v4  ;;  %v726_v2 = vld [vmem:[#allocation8 + $0x5f8] sm:$0xff]  ;;  %v5379_v4 = vcombine.low %v857_v51, %v861_v52 }
 0x25a   :  { %4120 = vmatprep.subr.bf16.mxu1 %v5548_v6  ;;  %v5507_v6 = vcombine.low %v985_v43, %v989_v54  ;;  %v5246_v9 = vcombine.high %v722_v1, %v726_v2  ;;  %v5245_v21 = vcombine.low %v722_v1, %v726_v2  ;;  %v562_v54 = vld [vmem:[#allocation8 + $0xd8] sm:$0xff] }
 0x25b   :  { %v554_v2 = vld [vmem:[#allocation8 + $0x98] sm:$0xff] }
 0x25c   :  { %4080 = vmatpush2.bf16.msra.mxu0 %v5419_v11  ;;  %v1060_v11 = vrot.slane %v6140_v5, %v161_v15  ;;  %v710_v15 = vld [vmem:[#allocation8 + $0x578] sm:$0xff] }
 0x25d   :  { %4121 = vmatpush2.bf16.msra.mxu1 %v5547_v18  ;;  %4081 = vmatprep.subr.bf16.mxu0 %v5412_v19  ;;  %v5117_v18 = vcombine.low %v594_v62, %v598_v63  ;;  %v714_v19 = vld [vmem:[#allocation8 + $0x598] sm:$0xff] }
 0x25e   :  { %4122 = vmatprep.subr.bf16.mxu1 %v5540_v20  ;;  %v718_v20 = vld [vmem:[#allocation8 + $0x5b8] sm:$0xff] }
 0x25f   :  { %v5237_v17 = vcombine.low %v714_v19, %v718_v20 }
 0x260   :  { %4082 = vmatpush2.bf16.msra.mxu0 %v5411_v25  ;;  %v582_v25 = vld [vmem:[#allocation8 + $0x178] sm:$0xff] }
 0x261   :  { %4123 = vmatpush2.bf16.msra.mxu1 %v5539_v14  ;;  %4083 = vmatprep.subr.bf16.mxu0 %v5404_v26  ;;  %v5238_v26 = vcombine.high %v714_v19, %v718_v20  ;;  %v5102_v5 = vcombine.high %v578_v24, %v582_v25  ;;  %v550_v19 = vld [vmem:[#allocation8 + $0x78] sm:$0xff] }
 0x262   :  { %4124 = vmatprep.subr.bf16.mxu1 %v5532_v13  ;;  %v706_v13 = vld [vmem:[#allocation8 + $0x558] sm:$0xff] }
 0x263   :  { %v5229_v51 = vcombine.low %v706_v13, %v710_v15  ;;  %v674_v20 = vld [vmem:[#allocation8 + $0x458] sm:$0xff] }
 0x264   :  { %4084 = vmatpush2.bf16.msra.mxu0 %v5403_v30 }
 0x265   :  { %4125 = vmatpush2.bf16.msra.mxu1 %v5531_v33  ;;  %4085 = vmatprep.subr.bf16.mxu0 %v5396_v8 }
 0x266   :  { %4126 = vmatprep.subr.bf16.mxu1 %v5524_v31  ;;  %v5230_v31 = vcombine.high %v706_v13, %v710_v15  ;;  %v666_v13 = vld [vmem:[#allocation8 + $0x418] sm:$0xff] }
 0x267   :  { %v670_v15 = vld [vmem:[#allocation8 + $0x438] sm:$0xff] }
 0x268   :  { %4086 = vmatpush2.bf16.msra.mxu0 %v5395_v40  ;;  %v702_v40 = vld [vmem:[#allocation8 + $0x538] sm:$0xff] }
 0x269   :  { %4127 = vmatpush2.bf16.msra.mxu1 %v5523_v48  ;;  %4087 = vmatprep.subr.bf16.mxu0 %v5388_v49  ;;  %v5101_v49 = vcombine.low %v578_v24, %v582_v25  ;;  %v5222_v43 = vcombine.high %v698_v37, %v702_v40  ;;  %v5221_v62 = vcombine.low %v698_v37, %v702_v40  ;;  %v650_v37 = vld [vmem:[#allocation8 + $0x398] sm:$0xff] }
 0x26a   :  { %4128 = vmatprep.subr.bf16.mxu1 %v5516_v50  ;;  %v654_v40 = vld [vmem:[#allocation8 + $0x3b8] sm:$0xff] }
 0x26c   :  { %4088 = vmatpush2.bf16.msra.mxu0 %v5387_v55  ;;  %v566_v55 = vld [vmem:[#allocation8 + $0xf8] sm:$0xff] }
 0x26d   :  { %4129 = vmatpush2.bf16.msra.mxu1 %v5515_v57  ;;  %4089 = vmatprep.subr.bf16.mxu0 %v5380_v58  ;;  %v690_v57 = vld [vmem:[#allocation8 + $0x4d8] sm:$0xff]  ;;  %v5086_v63 = vcombine.high %v562_v54, %v566_v55 }
 0x26e   :  { %4130 = vmatprep.subr.bf16.mxu1 %v5508_v60  ;;  %v694_v58 = vld [vmem:[#allocation8 + $0x4f8] sm:$0xff]  ;;  %v5093_v60 = vcombine.low %v570_v35, %v574_v3 }
 0x26f   :  { %v5214_v1 = vcombine.high %v690_v57, %v694_v58  ;;  %v5213_v0 = vcombine.low %v690_v57, %v694_v58  ;;  %v774_v57 = vld [vmem:[#allocation8 + $0x778] sm:$0xff]  ;;  %v5173_v58 = vcombine.low %v650_v37, %v654_v40 }
 0x270   :  { %4090 = vmatpush2.bf16.msra.mxu0 %v5379_v4  ;;  %v558_v4 = vld [vmem:[#allocation8 + $0xb8] sm:$0xff] }
 0x271   :  { %4131 = vmatpush2.bf16.msra.mxu1 %v5507_v6  ;;  %4141 = vmatprep.subr.bf16.mxu0 %v5118_v7  ;;  %v682_v6 = vld [vmem:[#allocation8 + $0x498] sm:$0xff]  ;;  %v5078_v10 = vcombine.high %v554_v2, %v558_v4 }
 0x272   :  { %4182 = vmatprep.subr.bf16.mxu1 %v5246_v9  ;;  %v686_v7 = vld [vmem:[#allocation8 + $0x4b8] sm:$0xff]  ;;  %v5085_v9 = vcombine.low %v562_v54, %v566_v55 }
 0x273   :  { %v3847_v14 = vpop.f32.mrf.mxu0  ;;  %4092 = vmatmul.mubr.bf16.vlgmr.msra.gmra.mxu0 %v6130_v47  ;;  %v646_v54 = vld [vmem:[#allocation8 + $0x378] sm:$0xff] }
 0x274   :  { %v3848_v27 = vadd.f32 %v3847_v14, %v1060_v11  ;;  %v3888_v28 = vpop.f32.mrf.mxu1  ;;  %4133 = vmatmul.mubr.bf16.vlgmr.msra.gmra.mxu1 %v6128_v39  ;;  %4142 = vmatpush1.bf16.msra.mxu0 %v5117_v18  ;;  %v5206_v11 = vcombine.high %v682_v6, %v686_v7  ;;  %v546_v18 = vld [vmem:[#allocation8 + $0x58] sm:$0xff] }
 0x275   :  { %4173 = vmatprep.mubr.bf16.mxu0 %v6090_v42  ;;  %4183 = vmatpush1.bf16.msra.mxu1 %v5245_v21  ;;  %v3849_v16 = vpop.f32.mrf.mxu0  ;;  %v678_v21 = vld [vmem:[#allocation8 + $0x478] sm:$0xff]  ;;  %v5070_v24 = vcombine.high %v546_v18, %v550_v19 }
 0x276   :  { %v6175_v30 = vadd.f32 %v3888_v28, %v3848_v27  ;;  %4214 = vmatprep.mubr.bf16.mxu1 %v6094_v45  ;;  %v3850_v33 = vadd.f32 %v3849_v16, %v1064_v22  ;;  %v3890_v8 = vpop.f32.mrf.mxu1  ;;  %4143 = vmatprep.subr.bf16.mxu0 %v5110_v23  ;;  %v5094_v45 = vcombine.high %v570_v35, %v574_v3  ;;  %v538_v14 = vld [vmem:[#allocation8 + $0x18] sm:$0xff] }
 0x277   :  { %v3851_v36 = vpop.f32.mrf.mxu0  ;;  %4184 = vmatprep.subr.bf16.mxu1 %v5238_v26  ;;  %v5077_v22 = vcombine.low %v554_v2, %v558_v4  ;;  %v5205_v23 = vcombine.low %v682_v6, %v686_v7  ;;  %v5198_v25 = vcombine.high %v674_v20, %v678_v21  ;;  %v542_v26 = vld [vmem:[#allocation8 + $0x38] sm:$0xff]  ;;  %v5069_v27 = vcombine.low %v546_v18, %v550_v19 }
 0x278   :  { %v6178_v48 = vadd.f32 %v3890_v8, %v3850_v33  ;;  %v3892_v42 = vpop.f32.mrf.mxu1  ;;  %4144 = vmatpush1.bf16.msra.mxu0 %v5109_v29  ;;  %v5197_v28 = vcombine.low %v674_v20, %v678_v21  ;;  %v5062_v29 = vcombine.high %v538_v14, %v542_v26  ;;  %v5190_v16 = vcombine.high %v666_v13, %v670_v15  ;;  %v786_v33 = vld [vmem:[#allocation8 + $0x7d8] sm:$0xff] }
 0x279   :  { %4185 = vmatpush1.bf16.msra.mxu1 %v5237_v17  ;;  %v3852_v50 = vpop.f32.mrf.mxu0  ;;  %4145 = vmatprep.subr.bf16.mxu0 %v5102_v5  ;;  %v658_v17 = vld [vmem:[#allocation8 + $0x3d8] sm:$0xff]  ;;  %v5189_v35 = vcombine.low %v666_v13, %v670_v15 }
 0x27a   :  { %v3893_v52 = vpop.f32.mrf.mxu1  ;;  %4186 = vmatprep.subr.bf16.mxu1 %v5230_v31  ;;  %v662_v5 = vld [vmem:[#allocation8 + $0x3f8] sm:$0xff]  ;;  %v5061_v31 = vcombine.low %v538_v14, %v542_v26 }
 0x27b   :  { %v790_v8 = vld [vmem:[#allocation8 + $0x7f8] sm:$0xff]  ;;  %v5182_v3 = vcombine.high %v658_v17, %v662_v5  ;;  %v5181_v50 = vcombine.low %v658_v17, %v662_v5 }
 0x27c   :  { %4146 = vmatpush1.bf16.msra.mxu0 %v5101_v49  ;;  %v5310_v36 = vcombine.high %v786_v33, %v790_v8  ;;  %v778_v42 = vld [vmem:[#allocation8 + $0x798] sm:$0xff] }
 0x27d   :  { %4187 = vmatpush1.bf16.msra.mxu1 %v5229_v51  ;;  %4147 = vmatprep.subr.bf16.mxu0 %v5094_v45  ;;  %v782_v49 = vld [vmem:[#allocation8 + $0x7b8] sm:$0xff]  ;;  %v5309_v51 = vcombine.low %v786_v33, %v790_v8  ;;  %v5174_v45 = vcombine.high %v650_v37, %v654_v40 }
 0x27e   :  { %4188 = vmatprep.subr.bf16.mxu1 %v5222_v43  ;;  %v5302_v52 = vcombine.high %v778_v42, %v782_v49  ;;  %v642_v43 = vld [vmem:[#allocation8 + $0x358] sm:$0xff] }
 0x27f   :  { %v770_v55 = vld [vmem:[#allocation8 + $0x758] sm:$0xff]  ;;  %v5165_v7 = vcombine.low %v642_v43, %v646_v54 }
 0x280   :  { %4148 = vmatpush1.bf16.msra.mxu0 %v5093_v60  ;;  %v5301_v60 = vcombine.low %v778_v42, %v782_v49  ;;  %v638_v2 = vld [vmem:[#allocation8 + $0x338] sm:$0xff] }
 0x281   :  { %4189 = vmatpush1.bf16.msra.mxu1 %v5221_v62  ;;  %4149 = vmatprep.subr.bf16.mxu0 %v5086_v63  ;;  %v5166_v62 = vcombine.high %v642_v43, %v646_v54  ;;  %v5294_v63 = vcombine.high %v770_v55, %v774_v57  ;;  %v762_v4 = vld [vmem:[#allocation8 + $0x718] sm:$0xff] }
 0x282   :  { %4190 = vmatprep.subr.bf16.mxu1 %v5214_v1  ;;  %v634_v1 = vld [vmem:[#allocation8 + $0x318] sm:$0xff] }
 0x283   :  { %v766_v6 = vld [vmem:[#allocation8 + $0x738] sm:$0xff]  ;;  %v5157_v21 = vcombine.low %v634_v1, %v638_v2 }
 0x284   :  { %4150 = vmatpush1.bf16.msra.mxu0 %v5085_v9  ;;  %v5293_v9 = vcombine.low %v770_v55, %v774_v57  ;;  %v630_v18 = vld [vmem:[#allocation8 + $0x2f8] sm:$0xff] }
 0x285   :  { %4191 = vmatpush1.bf16.msra.mxu1 %v5213_v0  ;;  %4151 = vmatprep.subr.bf16.mxu0 %v5078_v10  ;;  %v5158_v0 = vcombine.high %v634_v1, %v638_v2  ;;  %v5286_v10 = vcombine.high %v762_v4, %v766_v6  ;;  %v754_v19 = vld [vmem:[#allocation8 + $0x6d8] sm:$0xff] }
 0x286   :  { %4192 = vmatprep.subr.bf16.mxu1 %v5206_v11  ;;  %v626_v11 = vld [vmem:[#allocation8 + $0x2d8] sm:$0xff] }
 0x287   :  { %v758_v20 = vld [vmem:[#allocation8 + $0x6f8] sm:$0xff]  ;;  %v5149_v15 = vcombine.low %v626_v11, %v630_v18 }
 0x288   :  { %4152 = vmatpush1.bf16.msra.mxu0 %v5077_v22  ;;  %v5285_v22 = vcombine.low %v762_v4, %v766_v6  ;;  %v622_v14 = vld [vmem:[#allocation8 + $0x2b8] sm:$0xff] }
 0x289   :  { %4193 = vmatpush1.bf16.msra.mxu1 %v5205_v23  ;;  %4153 = vmatprep.subr.bf16.mxu0 %v5070_v24  ;;  %v5150_v23 = vcombine.high %v626_v11, %v630_v18  ;;  %v5278_v24 = vcombine.high %v754_v19, %v758_v20  ;;  %v746_v26 = vld [vmem:[#allocation8 + $0x698] sm:$0xff] }
 0x28a   :  { %4194 = vmatprep.subr.bf16.mxu1 %v5198_v25  ;;  %v618_v25 = vld [vmem:[#allocation8 + $0x298] sm:$0xff] }
 0x28b   :  { %v750_v13 = vld [vmem:[#allocation8 + $0x6b8] sm:$0xff]  ;;  %v5141_v8 = vcombine.low %v618_v25, %v622_v14 }
 0x28c   :  { %4154 = vmatpush1.bf16.msra.mxu0 %v5069_v27  ;;  %v5277_v27 = vcombine.low %v754_v19, %v758_v20  ;;  %v614_v17 = vld [vmem:[#allocation8 + $0x278] sm:$0xff] }
 0x28d   :  { %4195 = vmatpush1.bf16.msra.mxu1 %v5197_v28  ;;  %4155 = vmatprep.subr.bf16.mxu0 %v5062_v29  ;;  %v5142_v28 = vcombine.high %v618_v25, %v622_v14  ;;  %v5270_v29 = vcombine.high %v746_v26, %v750_v13  ;;  %v738_v5 = vld [vmem:[#allocation8 + $0x658] sm:$0xff] }
 0x28e   :  { %4196 = vmatprep.subr.bf16.mxu1 %v5190_v16  ;;  %v610_v16 = vld [vmem:[#allocation8 + $0x258] sm:$0xff] }
 0x28f   :  { %v742_v33 = vld [vmem:[#allocation8 + $0x678] sm:$0xff]  ;;  %v5133_v49 = vcombine.low %v610_v16, %v614_v17 }
 0x290   :  { %4156 = vmatpush1.bf16.msra.mxu0 %v5061_v31  ;;  %v5269_v31 = vcombine.low %v746_v26, %v750_v13  ;;  %v606_v37 = vld [vmem:[#allocation8 + $0x238] sm:$0xff] }
 0x291   :  { %4197 = vmatpush1.bf16.msra.mxu1 %v5189_v35  ;;  %4157 = vmatprep.subr.bf16.mxu0 %v5182_v3  ;;  %v5134_v35 = vcombine.high %v610_v16, %v614_v17  ;;  %v5262_v3 = vcombine.high %v738_v5, %v742_v33  ;;  %v730_v40 = vld [vmem:[#allocation8 + $0x618] sm:$0xff] }
 0x292   :  { %4198 = vmatprep.subr.bf16.mxu1 %v5310_v36  ;;  %v602_v36 = vld [vmem:[#allocation8 + $0x218] sm:$0xff] }
 0x293   :  { %v734_v42 = vld [vmem:[#allocation8 + $0x638] sm:$0xff]  ;;  %v5125_v57 = vcombine.low %v602_v36, %v606_v37 }
 0x294   :  { %4158 = vmatpush2.bf16.msra.mxu0 %v5181_v50  ;;  %v5261_v50 = vcombine.low %v738_v5, %v742_v33  ;;  %v854_v43 = vld [vmem:[#allocation8 + $0x9f8] sm:$0xff] }
 0x295   :  { %4199 = vmatpush2.bf16.msra.mxu1 %v5309_v51  ;;  %4159 = vmatprep.subr.bf16.mxu0 %v5174_v45  ;;  %v5126_v51 = vcombine.high %v602_v36, %v606_v37  ;;  %v5254_v45 = vcombine.high %v730_v40, %v734_v42  ;;  %v978_v54 = vld [vmem:[#allocation8 + $0xdd8] sm:$0xff] }
 0x296   :  { %4200 = vmatprep.subr.bf16.mxu1 %v5302_v52  ;;  %v850_v52 = vld [vmem:[#allocation8 + $0x9d8] sm:$0xff] }
 0x297   :  { %v982_v55 = vld [vmem:[#allocation8 + $0xdf8] sm:$0xff]  ;;  %v5373_v2 = vcombine.low %v850_v52, %v854_v43 }
 0x298   :  { %4160 = vmatpush2.bf16.msra.mxu0 %v5173_v58  ;;  %v5253_v58 = vcombine.low %v730_v40, %v734_v42  ;;  %v846_v1 = vld [vmem:[#allocation8 + $0x9b8] sm:$0xff] }
 0x299   :  { %4201 = vmatpush2.bf16.msra.mxu1 %v5301_v60  ;;  %4161 = vmatprep.subr.bf16.mxu0 %v5166_v62  ;;  %v5374_v60 = vcombine.high %v850_v52, %v854_v43  ;;  %v5502_v62 = vcombine.high %v978_v54, %v982_v55  ;;  %v970_v4 = vld [vmem:[#allocation8 + $0xd98] sm:$0xff] }
 0x29a   :  { %4202 = vmatprep.subr.bf16.mxu1 %v5294_v63  ;;  %v842_v63 = vld [vmem:[#allocation8 + $0x998] sm:$0xff] }
 0x29b   :  { %v974_v6 = vld [vmem:[#allocation8 + $0xdb8] sm:$0xff] }
 0x29c   :  { %4162 = vmatpush2.bf16.msra.mxu0 %v5165_v7  ;;  %v5501_v7 = vcombine.low %v978_v54, %v982_v55  ;;  %v5494_v18 = vcombine.high %v970_v4, %v974_v6  ;;  %v962_v19 = vld [vmem:[#allocation8 + $0xd58] sm:$0xff]  ;;  %v5493_v25 = vcombine.low %v970_v4, %v974_v6 }
 0x29d   :  { %4203 = vmatpush2.bf16.msra.mxu1 %v5293_v9  ;;  %4163 = vmatprep.subr.bf16.mxu0 %v5158_v0  ;;  %v5366_v9 = vcombine.high %v842_v63, %v846_v1  ;;  %v834_v0 = vld [vmem:[#allocation8 + $0x958] sm:$0xff] }
 0x29e   :  { %4204 = vmatprep.subr.bf16.mxu1 %v5286_v10  ;;  %v838_v10 = vld [vmem:[#allocation8 + $0x978] sm:$0xff] }
 0x29f   :  { %v966_v20 = vld [vmem:[#allocation8 + $0xd78] sm:$0xff]  ;;  %v5358_v14 = vcombine.high %v834_v0, %v838_v10 }
 0x2a0   :  { %4164 = vmatpush2.bf16.msra.mxu0 %v5157_v21  ;;  %v826_v13 = vld [vmem:[#allocation8 + $0x918] sm:$0xff]  ;;  %v5485_v17 = vcombine.low %v962_v19, %v966_v20 }
 0x2a1   :  { %4205 = vmatpush2.bf16.msra.mxu1 %v5285_v22  ;;  %4165 = vmatprep.subr.bf16.mxu0 %v5150_v23  ;;  %v5365_v23 = vcombine.low %v842_v63, %v846_v1  ;;  %v794_v6 = vld [vmem:[#allocation8 + $0x818] sm:$0xff] }
 0x2a2   :  { %4206 = vmatprep.subr.bf16.mxu1 %v5278_v24 }
 0x2a4   :  { %4166 = vmatpush2.bf16.msra.mxu0 %v5149_v15  ;;  %v830_v15 = vld [vmem:[#allocation8 + $0x938] sm:$0xff] }
 0x2a5   :  { %4207 = vmatpush2.bf16.msra.mxu1 %v5277_v27  ;;  %4167 = vmatprep.subr.bf16.mxu0 %v5142_v28  ;;  %v954_v27 = vld [vmem:[#allocation8 + $0xd18] sm:$0xff]  ;;  %v5350_v5 = vcombine.high %v826_v13, %v830_v15  ;;  %v5349_v36 = vcombine.low %v826_v13, %v830_v15 }
 0x2a6   :  { %4208 = vmatprep.subr.bf16.mxu1 %v5270_v29  ;;  %v958_v28 = vld [vmem:[#allocation8 + $0xd38] sm:$0xff]  ;;  %v5357_v29 = vcombine.low %v834_v0, %v838_v10 }
 0x2a7   :  { %v5477_v37 = vcombine.low %v954_v27, %v958_v28  ;;  %v926_v0 = vld [vmem:[#allocation8 + $0xc38] sm:$0xff] }
 0x2a8   :  { %4168 = vmatpush2.bf16.msra.mxu0 %v5141_v8  ;;  %v818_v8 = vld [vmem:[#allocation8 + $0x8d8] sm:$0xff] }
 0x2a9   :  { %4209 = vmatpush2.bf16.msra.mxu1 %v5269_v31  ;;  %4169 = vmatprep.subr.bf16.mxu0 %v5134_v35  ;;  %v822_v31 = vld [vmem:[#allocation8 + $0x8f8] sm:$0xff] }
 0x2aa   :  { %4210 = vmatprep.subr.bf16.mxu1 %v5262_v3  ;;  %v946_v35 = vld [vmem:[#allocation8 + $0xcd8] sm:$0xff]  ;;  %v5342_v40 = vcombine.high %v818_v8, %v822_v31  ;;  %v5341_v52 = vcombine.low %v818_v8, %v822_v31 }
 0x2ab   :  { %v950_v3 = vld [vmem:[#allocation8 + $0xcf8] sm:$0xff] }
 0x2ac   :  { %4170 = vmatpush2.bf16.msra.mxu0 %v5133_v49  ;;  %v5470_v42 = vcombine.high %v946_v35, %v950_v3  ;;  %v810_v49 = vld [vmem:[#allocation8 + $0x898] sm:$0xff]  ;;  %v5469_v43 = vcombine.low %v946_v35, %v950_v3 }
 0x2ad   :  { %4211 = vmatpush2.bf16.msra.mxu1 %v5261_v50  ;;  %4171 = vmatprep.subr.bf16.mxu0 %v5126_v51  ;;  %v814_v50 = vld [vmem:[#allocation8 + $0x8b8] sm:$0xff] }
 0x2ae   :  { %4212 = vmatprep.subr.bf16.mxu1 %v5254_v45  ;;  %v938_v51 = vld [vmem:[#allocation8 + $0xc98] sm:$0xff]  ;;  %v5334_v54 = vcombine.high %v810_v49, %v814_v50  ;;  %v5333_v63 = vcombine.low %v810_v49, %v814_v50 }
 0x2af   :  { %v942_v45 = vld [vmem:[#allocation8 + $0xcb8] sm:$0xff] }
 0x2b0   :  { %4172 = vmatpush2.bf16.msra.mxu0 %v5125_v57  ;;  %v5462_v55 = vcombine.high %v938_v51, %v942_v45  ;;  %v802_v57 = vld [vmem:[#allocation8 + $0x858] sm:$0xff]  ;;  %v5461_v1 = vcombine.low %v938_v51, %v942_v45 }
 0x2b1   :  { %4213 = vmatpush2.bf16.msra.mxu1 %v5253_v58  ;;  %4223 = vmatprep.subr.bf16.mxu0 %v5374_v60  ;;  %v806_v58 = vld [vmem:[#allocation8 + $0x878] sm:$0xff] }
 0x2b2   :  { %4264 = vmatprep.subr.bf16.mxu1 %v5502_v62  ;;  %v930_v60 = vld [vmem:[#allocation8 + $0xc58] sm:$0xff]  ;;  %v5325_v10 = vcombine.low %v802_v57, %v806_v58 }
 0x2b3   :  { %v3929_v11 = vpop.f32.mrf.mxu0  ;;  %4174 = vmatmul.mubr.bf16.vlgmr.msra.gmra.mxu0 %v6092_v44  ;;  %v934_v62 = vld [vmem:[#allocation8 + $0xc78] sm:$0xff] }
 0x2b4   :  { %v3930_v21 = vadd.f32 %v3929_v11, %v6175_v30  ;;  %v3970_v22 = vpop.f32.mrf.mxu1  ;;  %4215 = vmatmul.mubr.bf16.vlgmr.msra.gmra.mxu1 %v6088_v41  ;;  %4224 = vmatpush1.bf16.msra.mxu0 %v5373_v2  ;;  %v5486_v30 = vcombine.high %v962_v19, %v966_v20  ;;  %v5326_v2 = vcombine.high %v802_v57, %v806_v58  ;;  %v914_v20 = vld [vmem:[#allocation8 + $0xbd8] sm:$0xff] }
 0x2b5   :  { %4255 = vmatprep.mubr.bf16.mxu0 %v6112_v34  ;;  %4265 = vmatpush1.bf16.msra.mxu1 %v5501_v7  ;;  %v6184_v24 = vpop.f32.mrf.mxu0  ;;  %v5454_v4 = vcombine.high %v930_v60, %v934_v62  ;;  %v798_v7 = vld [vmem:[#allocation8 + $0x838] sm:$0xff]  ;;  %v5453_v11 = vcombine.low %v930_v60, %v934_v62 }
 0x2b6   :  { %v6186_v26 = vadd.f32 %v3970_v22, %v3930_v21  ;;  %4296 = vmatprep.mubr.bf16.mxu1 %v6114_v38  ;;  %v6189_v44 = vpop.f32.mrf.mxu1  ;;  %4225 = vmatprep.subr.bf16.mxu0 %v5366_v9  ;;  %v5478_v38 = vcombine.high %v954_v27, %v958_v28  ;;  %v922_v9 = vld [vmem:[#allocation8 + $0xc18] sm:$0xff] }
 0x2b7   :  { %v3933_v41 = vpop.f32.mrf.mxu0  ;;  %4266 = vmatprep.subr.bf16.mxu1 %v5494_v18  ;;  %v5318_v18 = vcombine.high %v794_v6, %v798_v7  ;;  %v5446_v19 = vcombine.high %v922_v9, %v926_v0  ;;  %v918_v21 = vld [vmem:[#allocation8 + $0xbf8] sm:$0xff] }
 0x2b8   :  { %v3974_v34 = vpop.f32.mrf.mxu1  ;;  %4226 = vmatpush1.bf16.msra.mxu0 %v5365_v23  ;;  %v1042_v22 = vld [vmem:[#allocation8 + $0xfd8] sm:$0xff] }
 0x2b9   :  { %4267 = vmatpush1.bf16.msra.mxu1 %v5493_v25  ;;  %v3934_v16 = vpop.f32.mrf.mxu0  ;;  %4227 = vmatprep.subr.bf16.mxu0 %v5358_v14  ;;  %v1046_v23 = vld [vmem:[#allocation8 + $0xff8] sm:$0xff]  ;;  %v5317_v25 = vcombine.low %v794_v6, %v798_v7  ;;  %v5445_v14 = vcombine.low %v922_v9, %v926_v0  ;;  %v5437_v34 = vcombine.low %v914_v20, %v918_v21 }
 0x2ba   :  { %v3975_v33 = vpop.f32.mrf.mxu1  ;;  %4268 = vmatprep.subr.bf16.mxu1 %v5486_v30  ;;  %v5438_v30 = vcombine.high %v914_v20, %v918_v21  ;;  %v5566_v13 = vcombine.high %v1042_v22, %v1046_v23  ;;  %v906_v15 = vld [vmem:[#allocation8 + $0xb98] sm:$0xff] }
 0x2bb   :  { %v910_v41 = vld [vmem:[#allocation8 + $0xbb8] sm:$0xff] }
 0x2bc   :  { %4228 = vmatpush1.bf16.msra.mxu0 %v5357_v29  ;;  %v1034_v27 = vld [vmem:[#allocation8 + $0xf98] sm:$0xff]  ;;  %v5565_v29 = vcombine.low %v1042_v22, %v1046_v23  ;;  %v5430_v16 = vcombine.high %v906_v15, %v910_v41  ;;  %v5429_v31 = vcombine.low %v906_v15, %v910_v41  ;;  %v3932_v41 = vadd.f32 %v6184_v24, %v6178_v48 }
 0x2bd   :  { %4269 = vmatpush1.bf16.msra.mxu1 %v5485_v17  ;;  %4229 = vmatprep.subr.bf16.mxu0 %v5350_v5  ;;  %v1038_v28 = vld [vmem:[#allocation8 + $0xfb8] sm:$0xff]  ;;  %v4306_v48 = vmax.f32 %v6164_v46, 0.0 }
 0x2be   :  { %4270 = vmatprep.subr.bf16.mxu1 %v5478_v38  ;;  %v5558_v17 = vcombine.high %v1034_v27, %v1038_v28  ;;  %v898_v5 = vld [vmem:[#allocation8 + $0xb58] sm:$0xff]  ;;  %v5557_v35 = vcombine.low %v1034_v27, %v1038_v28 }
 0x2bf   :  { %v902_v33 = vld [vmem:[#allocation8 + $0xb78] sm:$0xff] }
 0x2c0   :  { %4230 = vmatpush1.bf16.msra.mxu0 %v5349_v36  ;;  %v1026_v38 = vld [vmem:[#allocation8 + $0xf58] sm:$0xff]  ;;  %v5422_v3 = vcombine.high %v898_v5, %v902_v33  ;;  %v5421_v50 = vcombine.low %v898_v5, %v902_v33  ;;  %v5733_v33 = vld [vmem:[#allocation11 + $0x78] sm:$0xff]  }
 0x2c1   :  { %4271 = vmatpush1.bf16.msra.mxu1 %v5477_v37  ;;  %4231 = vmatprep.subr.bf16.mxu0 %v5342_v40  ;;  %v1030_v8 = vld [vmem:[#allocation8 + $0xf78] sm:$0xff] }
 0x2c2   :  { %4272 = vmatprep.subr.bf16.mxu1 %v5470_v42  ;;  %v5550_v36 = vcombine.high %v1026_v38, %v1030_v8  ;;  %v890_v37 = vld [vmem:[#allocation8 + $0xb18] sm:$0xff]  ;;  %v5549_v51 = vcombine.low %v1026_v38, %v1030_v8  ;;  %v5734_v38 = vld [vmem:[#allocation11 + $0xf8] sm:$0xff]  }
 0x2c3   :  { %v894_v40 = vld [vmem:[#allocation8 + $0xb38] sm:$0xff]  ;;  %v5735_v8 = vld [vmem:[#allocation11 + $0x38] sm:$0xff]  }
 0x2c4   :  { %4232 = vmatpush1.bf16.msra.mxu0 %v5341_v52  ;;  %v1018_v42 = vld [vmem:[#allocation8 + $0xf18] sm:$0xff]  ;;  %v5414_v45 = vcombine.high %v890_v37, %v894_v40  ;;  %v5413_v58 = vcombine.low %v890_v37, %v894_v40 }
 0x2c5   :  { %4273 = vmatpush1.bf16.msra.mxu1 %v5469_v43  ;;  %4233 = vmatprep.subr.bf16.mxu0 %v5334_v54  ;;  %v1022_v49 = vld [vmem:[#allocation8 + $0xf38] sm:$0xff] }
 0x2c6   :  { %4274 = vmatprep.subr.bf16.mxu1 %v5462_v55  ;;  %v5542_v52 = vcombine.high %v1018_v42, %v1022_v49  ;;  %v882_v43 = vld [vmem:[#allocation8 + $0xad8] sm:$0xff]  ;;  %v5541_v60 = vcombine.low %v1018_v42, %v1022_v49 }
 0x2c7   :  { %v886_v54 = vld [vmem:[#allocation8 + $0xaf8] sm:$0xff] }
 0x2c8   :  { %4234 = vmatpush1.bf16.msra.mxu0 %v5333_v63  ;;  %v1010_v55 = vld [vmem:[#allocation8 + $0xed8] sm:$0xff]  ;;  %v5406_v62 = vcombine.high %v882_v43, %v886_v54  ;;  %v5405_v7 = vcombine.low %v882_v43, %v886_v54  ;;  %v5743_v43 = vld [vmem:[#allocation11 + $0x28] sm:$0xff]  }
 0x2c9   :  { %4275 = vmatpush1.bf16.msra.mxu1 %v5461_v1  ;;  %4235 = vmatprep.subr.bf16.mxu0 %v5326_v2  ;;  %v1014_v57 = vld [vmem:[#allocation8 + $0xef8] sm:$0xff]  ;;  %v5744_v54 = vld [vmem:[#allocation11 + $0xa8] sm:$0xff]  }
 0x2ca   :  { %4276 = vmatprep.subr.bf16.mxu1 %v5454_v4  ;;  %v5534_v63 = vcombine.high %v1010_v55, %v1014_v57  ;;  %v874_v1 = vld [vmem:[#allocation8 + $0xa98] sm:$0xff]  ;;  %v5533_v9 = vcombine.low %v1010_v55, %v1014_v57  ;;  %v5745_v55 = vld [vmem:[#allocation11 + $0x60] sm:$0xff]  }
 0x2cb   :  { %v878_v2 = vld [vmem:[#allocation8 + $0xab8] sm:$0xff] }
 0x2cc   :  { %4236 = vmatpush1.bf16.msra.mxu0 %v5325_v10  ;;  %v1002_v4 = vld [vmem:[#allocation8 + $0xe98] sm:$0xff]  ;;  %v5398_v0 = vcombine.high %v874_v1, %v878_v2  ;;  %v5397_v21 = vcombine.low %v874_v1, %v878_v2  ;;  %v5750_v1 = vld [vmem:[#allocation11 + $0xd8] sm:$0xff]  }
 0x2cd   :  { %4277 = vmatpush1.bf16.msra.mxu1 %v5453_v11  ;;  %4237 = vmatprep.subr.bf16.mxu0 %v5318_v18  ;;  %v1006_v6 = vld [vmem:[#allocation8 + $0xeb8] sm:$0xff]  ;;  %v5751_v2 = vld [vmem:[#allocation11 + $0x18] sm:$0xff]  }
 0x2ce   :  { %4278 = vmatprep.subr.bf16.mxu1 %v5446_v19  ;;  %v5526_v10 = vcombine.high %v1002_v4, %v1006_v6  ;;  %v866_v11 = vld [vmem:[#allocation8 + $0xa58] sm:$0xff]  ;;  %v5525_v22 = vcombine.low %v1002_v4, %v1006_v6  ;;  %v5752_v4 = vld [vmem:[#allocation11 + $0x98] sm:$0xff]  }
 0x2cf   :  { %v870_v18 = vld [vmem:[#allocation8 + $0xa78] sm:$0xff] }
 0x2d0   :  { %4238 = vmatpush1.bf16.msra.mxu0 %v5317_v25  ;;  %v994_v19 = vld [vmem:[#allocation8 + $0xe58] sm:$0xff]  ;;  %v5390_v23 = vcombine.high %v866_v11, %v870_v18  ;;  %v5389_v27 = vcombine.low %v866_v11, %v870_v18  ;;  %v5758_v11 = vld [vmem:[#allocation11 + $0xc8] sm:$0xff]  }
 0x2d1   :  { %4279 = vmatpush1.bf16.msra.mxu1 %v5445_v14  ;;  %4239 = vmatprep.subr.bf16.mxu0 %v5438_v30  ;;  %v998_v20 = vld [vmem:[#allocation8 + $0xe78] sm:$0xff]  ;;  %v5759_v18 = vld [vmem:[#allocation11 + $0x8] sm:$0xff]  }
 0x2d2   :  { %4280 = vmatprep.subr.bf16.mxu1 %v5566_v13  ;;  %v5518_v25 = vcombine.high %v994_v19, %v998_v20  ;;  %v858_v14 = vld [vmem:[#allocation8 + $0xa18] sm:$0xff]  ;;  %v5517_v28 = vcombine.low %v994_v19, %v998_v20  ;;  %v5760_v19 = vld [vmem:[#allocation11 + $0x88] sm:$0xff]   ;;  %v5761_v20 = vld [vmem:[#allocation11 + $0x40] sm:$0xff]  }
 0x2d3   :  { %v862_v30 = vld [vmem:[#allocation8 + $0xa38] sm:$0xff] }
 0x2d4   :  { %4240 = vmatpush2.bf16.msra.mxu0 %v5437_v34  ;;  %v986_v13 = vld [vmem:[#allocation8 + $0xe18] sm:$0xff]  ;;  %v5382_v34 = vcombine.high %v858_v14, %v862_v30 }
 0x2d5   :  { %4281 = vmatpush2.bf16.msra.mxu1 %v5565_v29  ;;  %4241 = vmatprep.subr.bf16.mxu0 %v5430_v16  ;;  %v990_v15 = vld [vmem:[#allocation8 + $0xe38] sm:$0xff]  ;;  %v3973_v16 = vadd.f32 %v6189_v44, %v3932_v41 }
 0x2d6   :  { %4282 = vmatprep.subr.bf16.mxu1 %v5558_v17  ;;  %v5510_v29 = vcombine.high %v986_v13, %v990_v15  ;;  %v5381_v17 = vcombine.low %v858_v14, %v862_v30  ;;  %v5509_v5 = vcombine.low %v986_v13, %v990_v15  ;;  %v5739_v46 = vld [vmem:[#allocation11 + $0x30] sm:$0xff]   ;;  %v5765_v14 = vld [vmem:[#allocation11 + $0x178] sm:$0xff]   ;;  %v4307_v30 = vmax.f32 %v6186_v26, 0.0 }
 0x2d7   :  { %v4308_v24 = vmax.f32 %v3973_v16, 0.0  ;;  %v5740_v49 = vld [vmem:[#allocation11 + $0xb0] sm:$0xff]   ;;  %v5781_v13 = vld [vmem:[#allocation11 + $0x1f8] sm:$0xff]   ;;  %v5769_v16 = vld [vmem:[#allocation11 + $0x168] sm:$0xff]  }
 0x2d8   :  { %4242 = vmatpush2.bf16.msra.mxu0 %v5429_v31  ;;  %v5736_v31 = vld [vmem:[#allocation11 + $0xb8] sm:$0xff]   ;;  %v5753_v6 = vld [vmem:[#allocation11 + $0x50] sm:$0xff]  }
 0x2d9   :  { %4283 = vmatpush2.bf16.msra.mxu1 %v5557_v35  ;;  %4243 = vmatprep.subr.bf16.mxu0 %v5422_v3  ;;  %v5737_v35 = vld [vmem:[#allocation11 + $0x70] sm:$0xff]   ;;  %v4314_v3 = vpack.c.bf16 %v4306_v48, %v4306_v48  ;;  %v4316_v37 = vpack.c.bf16 %v4308_v24, %v4308_v24  ;;  %v5766_v15 = vld [vmem:[#allocation11 + $0x138] sm:$0xff]   ;;  %v5787_v48 = vld [vmem:[#allocation11 + $0x1e0] sm:$0xff]  }
 0x2da   :  { %4284 = vmatprep.subr.bf16.mxu1 %v5550_v36  ;;  %v5738_v36 = vld [vmem:[#allocation11 + $0xf0] sm:$0xff]   ;;  %v5772_v24 = vld [vmem:[#allocation11 + $0x120] sm:$0xff]  }
 0x2db   :  { %v5784_v26 = vld [vmem:[#allocation11 + $0x1b0] sm:$0xff]  }
 0x2dc   :  { %4244 = vmatpush2.bf16.msra.mxu0 %v5421_v50  ;;  %v5741_v50 = vld [vmem:[#allocation11 + $0x68] sm:$0xff]  }
 0x2dd   :  { %4285 = vmatpush2.bf16.msra.mxu1 %v5549_v51  ;;  %4245 = vmatprep.subr.bf16.mxu0 %v5414_v45  ;;  %v5742_v45 = vld [vmem:[#allocation11 + $0xe8] sm:$0xff]  }
 0x2de   :  { %4286 = vmatprep.subr.bf16.mxu1 %v5542_v52 }
 0x2e0   :  { %4246 = vmatpush2.bf16.msra.mxu0 %v5413_v58  ;;  %v5746_v58 = vld [vmem:[#allocation11 + $0xe0] sm:$0xff]  }
 0x2e1   :  { %4287 = vmatpush2.bf16.msra.mxu1 %v5541_v60  ;;  %4247 = vmatprep.subr.bf16.mxu0 %v5406_v62  ;;  %v5747_v60 = vld [vmem:[#allocation11 + $0x20] sm:$0xff]  }
 0x2e2   :  { %4288 = vmatprep.subr.bf16.mxu1 %v5534_v63  ;;  %v5748_v62 = vld [vmem:[#allocation11 + $0xa0] sm:$0xff]   ;;  %v5749_v63 = vld [vmem:[#allocation11 + $0x58] sm:$0xff]  }
 0x2e4   :  { %4248 = vmatpush2.bf16.msra.mxu0 %v5405_v7  ;;  %v5754_v7 = vld [vmem:[#allocation11 + $0xd0] sm:$0xff]  }
 0x2e5   :  { %4289 = vmatpush2.bf16.msra.mxu1 %v5533_v9  ;;  %4249 = vmatprep.subr.bf16.mxu0 %v5398_v0  ;;  %v5755_v9 = vld [vmem:[#allocation11 + $0x10] sm:$0xff]  }
 0x2e6   :  { %4290 = vmatprep.subr.bf16.mxu1 %v5526_v10  ;;  %v5756_v0 = vld [vmem:[#allocation11 + $0x90] sm:$0xff]   ;;  %v5757_v10 = vld [vmem:[#allocation11 + $0x48] sm:$0xff]  }
 0x2e8   :  { %4250 = vmatpush2.bf16.msra.mxu0 %v5397_v21  ;;  %v5762_v21 = vld [vmem:[#allocation11 + $0xc0] sm:$0xff]  }
 0x2e9   :  { %4291 = vmatpush2.bf16.msra.mxu1 %v5525_v22  ;;  %4251 = vmatprep.subr.bf16.mxu0 %v5390_v23  ;;  %v5763_v22 = vld [vmem:[#allocation11] sm:$0xff]   ;;  %v4305_v23 = vmax.f32 %v6160_v32, 0.0  ;;  %v5768_v32 = vld [vmem:[#allocation11 + $0x130] sm:$0xff]  }
 0x2ea   :  { %4292 = vmatprep.subr.bf16.mxu1 %v5518_v25  ;;  %v5764_v25 = vld [vmem:[#allocation11 + $0x80] sm:$0xff]  }
 0x2eb   :  { %v4313_v41 = vpack.c.bf16 %v4305_v23, %v4305_v23 }
 0x2ec   :  { %4252 = vmatpush2.bf16.msra.mxu0 %v5389_v27  ;;  %v5767_v27 = vld [vmem:[#allocation11 + $0x170] sm:$0xff]  }
 0x2ed   :  { %4293 = vmatpush2.bf16.msra.mxu1 %v5517_v28  ;;  %4253 = vmatprep.subr.bf16.mxu0 %v5382_v34  ;;  %v5782_v28 = vld [vmem:[#allocation11 + $0x1b8] sm:$0xff]   ;;  %v4315_v34 = vpack.c.bf16 %v4307_v30, %v4307_v30 }
 0x2ee   :  { %4294 = vmatprep.subr.bf16.mxu1 %v5510_v29  ;;  %v5783_v29 = vld [vmem:[#allocation11 + $0x1f0] sm:$0xff]  }
 0x2f0   :  { %4254 = vmatpush2.bf16.msra.mxu0 %v5381_v17  ;;  %v5785_v17 = vld [vmem:[#allocation11 + $0x1e8] sm:$0xff]  }
 0x2f1   :  { %4295 = vmatpush2.bf16.msra.mxu1 %v5509_v5  ;;  %5632 = vmatprep.subr.bf16.mxu0 %v5733_v33  ;;  %v5770_v5 = vld [vmem:[#allocation11 + $0x128] sm:$0xff]   ;;  %v5771_v33 = vld [vmem:[#allocation11 + $0x160] sm:$0xff]  }
 0x2f2   :  { %5654 = vmatprep.subr.bf16.mxu1 %v5734_v38  ;;  %v5786_v38 = vld [vmem:[#allocation11 + $0x1a8] sm:$0xff]  }
 0x2f3   :  { %v6195_v44 = vpop.f32.mrf.mxu0  ;;  %4256 = vmatmul.mubr.bf16.vlgmr.msra.gmra.mxu0 %v6130_v47 }
 0x2f4   :  { %v6198_v40 = vpop.f32.mrf.mxu1  ;;  %4297 = vmatmul.mubr.bf16.vlgmr.msra.gmra.mxu1 %v6128_v39  ;;  %5633 = vmatpush3.bf16.msra.mxu0 %v5735_v8  ;;  %v5773_v8 = vld [vmem:[#allocation11 + $0x158] sm:$0xff]  }
 0x2f5   :  { %4872 = vmatprep.mubr.bf16.mxu0 %v4314_v3  ;;  %5655 = vmatpush3.bf16.msra.mxu1 %v5736_v31  ;;  %v6201_v42 = vpop.f32.mrf.mxu0  ;;  %v5788_v31 = vld [vmem:[#allocation11 + $0x1a0] sm:$0xff]   ;;  %v5774_v3 = vld [vmem:[#allocation11 + $0x118] sm:$0xff]  }
 0x2f6   :  { %4912 = vmatprep.mubr.bf16.mxu1 %v4316_v37  ;;  %v6203_v51 = vpop.f32.mrf.mxu1  ;;  %5634 = vmatprep.subr.bf16.mxu0 %v5737_v35  ;;  %v5789_v35 = vld [vmem:[#allocation11 + $0x1d8] sm:$0xff]  }
 0x2f7   :  { %v4015_v47 = vpop.f32.mrf.mxu0  ;;  %5656 = vmatprep.subr.bf16.mxu1 %v5738_v36  ;;  %v5775_v36 = vld [vmem:[#allocation11 + $0x150] sm:$0xff]   ;;  %v5790_v37 = vld [vmem:[#allocation11 + $0x198] sm:$0xff]  }
 0x2f8   :  { %v4056_v52 = vpop.f32.mrf.mxu1  ;;  %5635 = vmatpush3.bf16.msra.mxu0 %v5739_v46  ;;  %v5776_v46 = vld [vmem:[#allocation11 + $0x110] sm:$0xff]   ;;  %v5797_v47 = vld [vmem:[#allocation10] sm:$0xff] }
 0x2f9   :  { %5657 = vmatpush3.bf16.msra.mxu1 %v5740_v49  ;;  %v4016_v39 = vpop.f32.mrf.mxu0  ;;  %5636 = vmatprep.subr.bf16.mxu0 %v5741_v50  ;;  %v5777_v49 = vld [vmem:[#allocation11 + $0x148] sm:$0xff]   ;;  %v1068_v52 = vrot.slane %v5797_v47, %v169_v61  ;;  %v5792_v61 = vld [vmem:[#allocation11 + $0x190] sm:$0xff]  }
 0x2fa   :  { %v4057_v57 = vpop.f32.mrf.mxu1  ;;  %5658 = vmatprep.subr.bf16.mxu1 %v5742_v45  ;;  %v5778_v50 = vld [vmem:[#allocation11 + $0x108] sm:$0xff]   ;;  %v5779_v45 = vld [vmem:[#allocation11 + $0x140] sm:$0xff]  }
 0x2fb   :  { %v5780_v39 = vld [vmem:[#allocation11 + $0x100] sm:$0xff]  }
 0x2fc   :  { %5637 = vmatpush3.bf16.msra.mxu0 %v5743_v43  ;;  %v1072_v43 = vrot.slane %v5797_v47, %v173_v53 }
 0x2fd   :  { %5659 = vmatpush3.bf16.msra.mxu1 %v5744_v54  ;;  %5638 = vmatprep.subr.bf16.mxu0 %v5745_v55  ;;  %v4012_v54 = vadd.f32 %v6195_v44, %v1068_v52  ;;  %v5793_v44 = vld [vmem:[#allocation11 + $0x1c8] sm:$0xff]  }
 0x2fe   :  { %5660 = vmatprep.subr.bf16.mxu1 %v5746_v58  ;;  %v4014_v55 = vadd.f32 %v6201_v42, %v1072_v43 }
 0x2ff   :  { %v4053_v57 = vadd.f32 %v6198_v40, %v4012_v54 }
 0x300   :  { %5639 = vmatpush3.bf16.msra.mxu0 %v5747_v60  ;;  %v5791_v60 = vld [vmem:[#allocation11 + $0x1d0] sm:$0xff]  }
 0x301   :  { %5661 = vmatpush3.bf16.msra.mxu1 %v5748_v62  ;;  %5640 = vmatprep.subr.bf16.mxu0 %v5749_v63  ;;  %v4055_v62 = vadd.f32 %v6203_v51, %v4014_v55  ;;  %v5795_v51 = vld [vmem:[#allocation11 + $0x1c0] sm:$0xff]  }
 0x302   :  { %5662 = vmatprep.subr.bf16.mxu1 %v5750_v1 }
 0x304   :  { %5641 = vmatpush3.bf16.msra.mxu0 %v5751_v2 }
 0x305   :  { %5663 = vmatpush3.bf16.msra.mxu1 %v5752_v4  ;;  %5642 = vmatprep.subr.bf16.mxu0 %v5753_v6 }
 0x306   :  { %5664 = vmatprep.subr.bf16.mxu1 %v5754_v7 }
 0x308   :  { %5643 = vmatpush3.bf16.msra.mxu0 %v5755_v9 }
 0x309   :  { %5665 = vmatpush3.bf16.msra.mxu1 %v5756_v0  ;;  %5644 = vmatprep.subr.bf16.mxu0 %v5757_v10  ;;  %v5794_v0 = vld [vmem:[#allocation11 + $0x188] sm:$0xff]  }
 0x30a   :  { %5666 = vmatprep.subr.bf16.mxu1 %v5758_v11 }
 0x30c   :  { %5645 = vmatpush3.bf16.msra.mxu0 %v5759_v18 }
 0x30d   :  { %5667 = vmatpush3.bf16.msra.mxu1 %v5760_v19  ;;  %5646 = vmatprep.subr.bf16.mxu0 %v5761_v20  ;;  %v5796_v20 = vld [vmem:[#allocation11 + $0x180] sm:$0xff]  }
 0x30e   :  { %5668 = vmatprep.subr.bf16.mxu1 %v5762_v21 }
 0x310   :  { %5647 = vmatpush3.bf16.msra.mxu0 %v5763_v22 }
 0x311   :  { %5669 = vmatpush3.bf16.msra.mxu1 %v5764_v25  ;;  %5676 = vmatprep.subr.bf16.mxu0 %v5765_v14 }
 0x312   :  { %5698 = vmatprep.subr.bf16.mxu1 %v5781_v13 }
 0x313   :  { %4873 = vmatmul.mubr.bf16.vlgmr.msra.gmra.mxu0 %v4313_v41 }
 0x314   :  { %4913 = vmatmul.mubr.bf16.vlgmr.msra.gmra.mxu1 %v4315_v34  ;;  %5677 = vmatpush3.bf16.msra.mxu0 %v5766_v15 }
 0x315   :  { %5678 = vmatprep.subr.bf16.mxu0 %v5767_v27  ;;  %5699 = vmatpush3.bf16.msra.mxu1 %v5782_v28  ;;  %v1076_v27 = vrot.slane %v5797_v47, %v177_v59  ;;  %v1080_v28 = vrot.slane %v5797_v47, %v181_v56 }
 0x316   :  { %5700 = vmatprep.subr.bf16.mxu1 %v5783_v29 }
 0x318   :  { %5679 = vmatpush3.bf16.msra.mxu0 %v5768_v32 }
 0x319   :  { %5680 = vmatprep.subr.bf16.mxu0 %v5769_v16  ;;  %5701 = vmatpush3.bf16.msra.mxu1 %v5784_v26 }
 0x31a   :  { %5702 = vmatprep.subr.bf16.mxu1 %v5785_v17 }
 0x31c   :  { %5681 = vmatpush3.bf16.msra.mxu0 %v5770_v5 }
 0x31d   :  { %5682 = vmatprep.subr.bf16.mxu0 %v5771_v33  ;;  %5703 = vmatpush3.bf16.msra.mxu1 %v5786_v38 }
 0x31e   :  { %5704 = vmatprep.subr.bf16.mxu1 %v5787_v48 }
 0x320   :  { %5683 = vmatpush3.bf16.msra.mxu0 %v5772_v24 }
 0x321   :  { %5684 = vmatprep.subr.bf16.mxu0 %v5773_v8  ;;  %5705 = vmatpush3.bf16.msra.mxu1 %v5788_v31 }
 0x322   :  { %5706 = vmatprep.subr.bf16.mxu1 %v5789_v35 }
 0x324   :  { %5685 = vmatpush3.bf16.msra.mxu0 %v5774_v3 }
 0x325   :  { %5686 = vmatprep.subr.bf16.mxu0 %v5775_v36  ;;  %5707 = vmatpush3.bf16.msra.mxu1 %v5790_v37 }
 0x326   :  { %5708 = vmatprep.subr.bf16.mxu1 %v5791_v60 }
 0x328   :  { %5687 = vmatpush3.bf16.msra.mxu0 %v5776_v46 }
 0x329   :  { %5688 = vmatprep.subr.bf16.mxu0 %v5777_v49  ;;  %5709 = vmatpush3.bf16.msra.mxu1 %v5792_v61 }
 0x32a   :  { %5710 = vmatprep.subr.bf16.mxu1 %v5793_v44 }
 0x32c   :  { %5689 = vmatpush3.bf16.msra.mxu0 %v5778_v50  ;;  %v5567_v50 = vld [vmem:[#allocation13] ss:$0 sm:$0xff] }
 0x32d   :  { %5690 = vmatprep.subr.bf16.mxu0 %v5779_v45  ;;  %5711 = vmatpush3.bf16.msra.mxu1 %v5794_v0 }
 0x32e   :  { %5712 = vmatprep.subr.bf16.mxu1 %v5795_v51 }
 0x330   :  { %5691 = vmatpush3.bf16.msra.mxu0 %v5780_v39 }
 0x331   :  { %5713 = vmatpush3.bf16.msra.mxu1 %v5796_v20 }
 0x333   :  { %v4093_v58 = vpop.f32.mrf.mxu0 }
 0x334   :  { %v4094_v63 = vadd.f32 %v4093_v58, %v4053_v57  ;;  %v4134_v1 = vpop.f32.mrf.mxu1 }
 0x335   :  { %v4095_v2 = vpop.f32.mrf.mxu0 }
 0x336   :  { %v4135_v53 = vadd.f32 %v4134_v1, %v4094_v63  ;;  %v4096_v4 = vadd.f32 %v4095_v2, %v4055_v62  ;;  %v4136_v6 = vpop.f32.mrf.mxu1 }
 0x337   :  { %v4097_v7 = vpop.f32.mrf.mxu0 }
 0x338   :  { %v4137_v9 = vadd.f32 %v4136_v6, %v4096_v4  ;;  %v4138_v42 = vpop.f32.mrf.mxu1  ;;  %v4309_v10 = vmax.f32 %v4135_v53, 0.0 }
 0x339   :  { %v4098_v40 = vpop.f32.mrf.mxu0 }
 0x33a   :  { %v4310_v11 = vmax.f32 %v4137_v9, 0.0  ;;  %v4139_v18 = vpop.f32.mrf.mxu1  ;;  %v4317_v21 = vpack.c.bf16 %v4309_v10, %v4309_v10 }
 0x33c   :  { %v4318_v19 = vpack.c.bf16 %v4310_v11, %v4310_v11 }
 0x33e   :  { %4952 = vmatprep.mubr.bf16.mxu0 %v4318_v19 }
 0x33f   :  { %4953 = vmatmul.mubr.bf16.vlgmr.msra.gmra.mxu0 %v4317_v21 }
 0x373   :  { %v4175_v22 = vpop.f32.mrf.mxu0 }
 0x374   :  { %v4216_v23 = vpop.f32.mrf.mxu1  ;;  %v4176_v34 = vadd.f32 %v4175_v22, %v1076_v27 }
 0x375   :  { %v4177_v25 = vpop.f32.mrf.mxu0 }
 0x376   :  { %v4218_v14 = vpop.f32.mrf.mxu1  ;;  %v4178_v29 = vadd.f32 %v4177_v25, %v1080_v28  ;;  %v4217_v32 = vadd.f32 %v4216_v23, %v4176_v34 }
 0x377   :  { %v4179_v30 = vpop.f32.mrf.mxu0 }
 0x378   :  { %v4220_v13 = vpop.f32.mrf.mxu1  ;;  %v4219_v26 = vadd.f32 %v4218_v14, %v4178_v29 }
 0x379   :  { %v4180_v15 = vpop.f32.mrf.mxu0 }
 0x37a   :  { %v4221_v41 = vpop.f32.mrf.mxu1 }
 0x3b3   :  { %v4257_v16 = vpop.f32.mrf.mxu0 }
 0x3b4   :  { %v4258_v17 = vadd.f32 %v4257_v16, %v4217_v32  ;;  %v4298_v5 = vpop.f32.mrf.mxu1 }
 0x3b5   :  { %v4259_v33 = vpop.f32.mrf.mxu0 }
 0x3b6   :  { %v4299_v38 = vadd.f32 %v4298_v5, %v4258_v17  ;;  %v4260_v48 = vadd.f32 %v4259_v33, %v4219_v26  ;;  %v4300_v24 = vpop.f32.mrf.mxu1 }
 0x3b7   :  { %v4261_v8 = vpop.f32.mrf.mxu0 }
 0x3b8   :  { %v4301_v31 = vadd.f32 %v4300_v24, %v4260_v48  ;;  %v4302_v35 = vpop.f32.mrf.mxu1  ;;  %v4311_v3 = vmax.f32 %v4299_v38, 0.0 }
 0x3b9   :  { %v4262_v36 = vpop.f32.mrf.mxu0 }
 0x3ba   :  { %v4312_v59 = vmax.f32 %v4301_v31, 0.0  ;;  %v4303_v37 = vpop.f32.mrf.mxu1  ;;  %v4319_v56 = vpack.c.bf16 %v4311_v3, %v4311_v3 }
 0x3bc   :  { %v4320_v12 = vpack.c.bf16 %v4312_v59, %v4312_v59 }
 0x3be   :  { %4992 = vmatprep.mubr.bf16.mxu1 %v4320_v12 }
 0x3bf   :  { %4993 = vmatmul.mubr.bf16.vlgmr.msra.gmra.mxu1 %v4319_v56 }
 0x3d3   :  { %v5648_v46 = vpop.f32.mrf.mxu0 }
 0x3d4   :  { %v5670_v49 = vpop.f32.mrf.mxu1 }
 0x3d5   :  { %v5649_v45 = vpop.f32.mrf.mxu0 }
 0x3d6   :  { %v5650_v47 = vadd.f32 %v5649_v45, %v5648_v46  ;;  %v5671_v52 = vpop.f32.mrf.mxu1 }
 0x3d7   :  { %v5672_v43 = vadd.f32 %v5671_v52, %v5670_v49  ;;  %v5651_v39 = vpop.f32.mrf.mxu0 }
 0x3d8   :  { %v4875_v54 = vadd.f32 %v5650_v47, %v5567_v50  ;;  %v5673_v55 = vpop.f32.mrf.mxu1 }
 0x3d9   :  { %v5652_v57 = vpop.f32.mrf.mxu0 }
 0x3da   :  { %v4915_v58 = vadd.f32 %v5672_v43, %v4875_v54  ;;  %v5674_v60 = vpop.f32.mrf.mxu1 }
 0x3ff   :  { %v5692_v62 = vpop.f32.mrf.mxu0 }
 0x401   :  { %v5693_v63 = vpop.f32.mrf.mxu0 }
 0x402   :  { %v5694_v1 = vadd.f32 %v5693_v63, %v5692_v62 }
 0x403   :  { %v5695_v61 = vpop.f32.mrf.mxu0 }
 0x404   :  { %v4955_v2 = vadd.f32 %v5694_v1, %v4915_v58 }
 0x405   :  { %v5696_v53 = vpop.f32.mrf.mxu0 }
 0x47f   :  { %v5714_v4 = vpop.f32.mrf.mxu1 }
 0x481   :  { %v5715_v6 = vpop.f32.mrf.mxu1 }
 0x482   :  { %v5716_v7 = vadd.f32 %v5715_v6, %v5714_v4 }
 0x483   :  { %v5717_v44 = vpop.f32.mrf.mxu1 }
 0x484   :  { %v4995_v9 = vadd.f32 %v5716_v7, %v4955_v2 }
 0x485   :  { %v5718_v42 = vpop.f32.mrf.mxu1 }
 0x486   :  { %5000 = vst [vmem:[#allocation14] sm:$0xff] %v4995_v9 }
 0x487   :  { %5949 = shalt.err (!%p5946_p11)
}
 0x488   :  { %5010 = dma.vmem_to_hbm [thread:$0]  %s5008_s6, 128, %s6229_s7, [#allocation4]  }
 0x489   :  { %5966 = dma.done.wait [#allocation4], 128  }
 0x48a   :  { %5967 = vsyncadd [#allocation4], 4294967168 }
 0x48b   :  { %5014 = vsyncpa [#allocation3], 1 }
 0x48c   :  { %5015 = vsyncpa [#allocation6], 1 }
 0x48d   :  { %5016 = vsyncpa [#allocation9], 1 }
 0x48e   :  { %5017 = vsyncpa [#allocation12], 1 }
 0x48f   :  { %5018 = vsyncpa [#allocation4], 1 }

</bundles_post_ra>
